<compile_context>
chip_gen: v7x
topology: tpu7x:2x2x1
jax: 0.10.0
libtpu: 0.0.40
codegen_flags: <defaults>
</compile_context>

<pallas_src>
import jax
import jax.numpy as jnp
from jax import lax
from jax.experimental import pallas as pl
from jax.experimental.pallas import tpu as pltpu

EPS = 1e-5
KSIZE = 4  # all DCGAN generator kernels are 4x4

STRIDES = (1, 2, 2, 2, 2)
PADS = (0, 1, 1, 1, 1)
IS_LAST = (False, False, False, False, True)


# ------------------------- generation-aware VMEM budget --------------------- #
def _vmem_limit_bytes():
    """Scoped-VMEM budget derived from the physical VMEM of this generation."""
    cap = 128 * 1024 * 1024
    try:  # pragma: no cover - best effort; falls back off-TPU / old jax
        info_cap = int(pltpu.get_tpu_info().vmem_capacity_bytes)
        if info_cap >= 16 * 1024 * 1024:
            cap = info_cap
    except Exception:
        pass
    # ~60% of physical, capped: v7x (64 MiB) -> ~38 MiB, v5e/v6e (128 MiB) -> ~77 MiB.
    return int(min(cap * 0.6, 96 * 1024 * 1024))


_VMEM_LIMIT = _vmem_limit_bytes()


def _plan_m_tile(m, k_dim, c_out):
    """Pick (tile_m, m_padded): lane-dense 128-multiples within the VMEM budget."""
    per_col = 2 * (k_dim * 2 + c_out * 4)            # double-buffered streams / column
    resident = 2 * c_out * k_dim * 2 + 4 * c_out * 4 + (2 << 20)
    avail = max(_VMEM_LIMIT - resident, 1 << 20)
    cap = int(min(2048, max(128, (avail // per_col) // 128 * 128)))
    m_pad = ((m + 127) // 128) * 128
    tile = 128
    t = min(cap, m_pad)
    t -= t % 128
    while t >= 128:
        if m_pad % t == 0:
            tile = t
            break
        t -= 128
    return tile, m_pad


# ------------------------------ Pallas kernels ------------------------------ #
def _mm_stats_kernel(w_ref, p_ref, y_ref, ssum_ref, ssq_ref):
    """(Cout,K) @ (K,TM) on the MXU (f32 accumulation of bf16-streamed operands),
    bf16 output tile, BatchNorm partial sums accumulated into VMEM-resident
    (Cout,1) blocks across the M grid axis (written back once per phase)."""
    @pl.when(pl.program_id(1) == 0)
    def _init():
        ssum_ref[...] = jnp.zeros_like(ssum_ref)
        ssq_ref[...] = jnp.zeros_like(ssq_ref)

    a = p_ref[0].astype(jnp.float32)                      # (K, TM)
    w = w_ref[0].astype(jnp.float32)                      # (Cout, K)
    acc = jnp.dot(w, a, preferred_element_type=jnp.float32)
    y_ref[0] = acc.astype(y_ref.dtype)
    ssum_ref[0] += jnp.sum(acc, axis=1, keepdims=True)
    ssq_ref[0] += jnp.sum(acc * acc, axis=1, keepdims=True)


def _mm_tanh_kernel(w_ref, p_ref, o_ref):
    """Final layer: matmul + fused tanh (no BatchNorm, no dead operands)."""
    a = p_ref[0].astype(jnp.float32)
    w = w_ref[0].astype(jnp.float32)
    acc = jnp.dot(w, a, preferred_element_type=jnp.float32)
    o_ref[0] = jnp.tanh(acc).astype(o_ref.dtype)


# ----------------------------- pallas_call wrapper -------------------------- #
def _layer_matmul(w_all, p_all, *, tile, last):
    n_ph, c_out, k_dim = w_all.shape
    m_pad = p_all.shape[2]
    grid = (n_ph, m_pad // tile)

    w_spec = pl.BlockSpec((1, c_out, k_dim), lambda ph, mt: (ph, 0, 0))
    p_spec = pl.BlockSpec((1, k_dim, tile), lambda ph, mt: (ph, 0, mt))
    y_spec = pl.BlockSpec((1, c_out, tile), lambda ph, mt: (ph, 0, mt))

    if last:
        return pl.pallas_call(
            _mm_tanh_kernel,
            grid=grid,
            in_specs=[w_spec, p_spec],
            out_specs=y_spec,
            out_shape=jax.ShapeDtypeStruct((n_ph, c_out, m_pad), jnp.float32),
            compiler_params=pltpu.CompilerParams(
                dimension_semantics=("parallel", "parallel"),
                vmem_limit_bytes=_VMEM_LIMIT),
        )(w_all, p_all)

    st_spec = pl.BlockSpec((1, c_out, 1), lambda ph, mt: (ph, 0, 0))
    st_shape = jax.ShapeDtypeStruct((n_ph, c_out, 1), jnp.float32)
    return pl.pallas_call(
        _mm_stats_kernel,
        grid=grid,
        in_specs=[w_spec, p_spec],
        out_specs=(y_spec, st_spec, st_spec),
        out_shape=(jax.ShapeDtypeStruct((n_ph, c_out, m_pad), jnp.bfloat16),
                   st_shape, st_shape),
        compiler_params=pltpu.CompilerParams(
            dimension_semantics=("parallel", "arbitrary"),
            vmem_limit_bytes=_VMEM_LIMIT),
    )(w_all, p_all)


# -------------------------- sub-pixel phase decomposition ------------------- #
def _phase_plan(stride, padding, k):
    """Per output phase (ry,rx): list of taps (ky, kx, y0, x0) where y0/x0 are
    window offsets into the spatially padded input."""
    pad_amt = k - 1 - padding
    plan = []
    for ry in range(stride):
        for rx in range(stride):
            dys = [d for d in range(-k, k + 1) if 0 <= stride * d + ry + padding < k]
            dxs = [d for d in range(-k, k + 1) if 0 <= stride * d + rx + padding < k]
            taps = []
            for dy in dys:
                ky = stride * dy + ry + padding
                for dx in dxs:
                    kx = stride * dx + rx + padding
                    taps.append((ky, kx, pad_amt - dy, pad_amt - dx))
            plan.append(taps)
    return plan, pad_amt


def prepare_params(params):
    """Precompute (outside jit) the phase-decomposed bf16 weight blocks."""
    prepped = []
    for (w, gamma, beta), stride, pad in zip(params, STRIDES, PADS):
        c_in, c_out = w.shape[0], w.shape[1]
        plan, _ = _phase_plan(stride, pad, KSIZE)
        w_phases = []
        for taps in plan:
            w_ph = jnp.stack([w[:, :, ky, kx] for (ky, kx, _, _) in taps], 0)
            w_phases.append(w_ph.reshape(len(taps) * c_in, c_out).T)   # (Cout, K)
        w_all = jnp.stack(w_phases, 0).astype(jnp.bfloat16)            # (P, Cout, K)
        prepped.append((w_all, gamma, beta))
    return prepped


def _build_patches(x, stride, padding, qh, qw, m_pad):
    """x: (Cin, N, H, W) bf16 activation -> (P, taps*Cin, m_pad) bf16 patch slab."""
    c_in, n, _, _ = x.shape
    plan, pad_amt = _phase_plan(stride, padding, KSIZE)
    xp = jnp.pad(x, ((0, 0), (0, 0), (pad_amt, pad_amt), (pad_amt, pad_amt)))
    m = n * qh * qw
    slabs = []
    for taps in plan:
        wins = [xp[:, :, y0:y0 + qh, x0:x0 + qw] for (_ky, _kx, y0, x0) in taps]
        slabs.append(jnp.stack(wins, 0).reshape(len(taps) * c_in, m))
    p_all = jnp.stack(slabs, 0)                                        # (P, K, M)
    if m_pad > m:
        p_all = jnp.pad(p_all, ((0, 0), (0, 0), (0, m_pad - m)))       # zero columns
    return p_all


def _deinterleave(y, stride, c_out, n, qh, qw, oh, ow):
    """(P, Cout, N*qh*qw) phase-major -> (Cout, N, OH, OW)."""
    y = y.reshape(stride, stride, c_out, n, qh, qw)
    return y.transpose(2, 3, 4, 0, 5, 1).reshape(c_out, n, oh, ow)


# --------------------------------- forward ---------------------------------- #
def generator_forward(z, prepped):
    x = jnp.transpose(z, (1, 0, 2, 3)).astype(jnp.bfloat16)   # (C, N, H, W) bf16 stream
    for (w_all, gamma, beta), stride, pad, last in zip(prepped, STRIDES, PADS, IS_LAST):
        _, n, ih, iw = x.shape
        n_ph, c_out, k_dim = w_all.shape
        oh = (ih - 1) * stride - 2 * pad + KSIZE
        ow = (iw - 1) * stride - 2 * pad + KSIZE
        qh, qw = oh // stride, ow // stride
        m = n * qh * qw
        tile, m_pad = _plan_m_tile(m, k_dim, c_out)
        p_all = _build_patches(x, stride, pad, qh, qw, m_pad)

        if last:
            y = _layer_matmul(w_all, p_all, tile=tile, last=True)
            out = _deinterleave(y[:, :, :m], stride, c_out, n, qh, qw, oh, ow)
            return jnp.transpose(out, (1, 0, 2, 3))            # NCHW, once, at the end

        y, ssum, ssq = _layer_matmul(w_all, p_all, tile=tile, last=False)
        # Training-mode BatchNorm statistics (biased variance) from the f32
        # accumulator sums; padded M columns are exact zeros so only the true
        # element count enters.
        total = n_ph * m
        mean = jnp.sum(ssum[:, :, 0], axis=0) / total           # (Cout,)
        var = jnp.maximum(jnp.sum(ssq[:, :, 0], axis=0) / total - mean * mean, 0.0)
        scale = gamma * lax.rsqrt(var + EPS)
        shift = beta - mean * scale
        # Folded BN + ReLU rides the (memory-bound) inter-layer glue stream:
        # no standalone activation pass, no extra HBM round trip.
        act = jnp.maximum(
            y[:, :, :m].astype(jnp.float32) * scale[None, :, None]
            + shift[None, :, None], 0.0).astype(jnp.bfloat16)
        x = _deinterleave(act, stride, c_out, n, qh, qw, oh, ow)
    return x  # unreachable


# ------------------------------ parameter init ------------------------------ #
def init_params(key, hidden_dim, fm, n_channels):
    chans = [hidden_dim, fm * 8, fm * 4, fm * 2, fm, n_channels]
    params = []
    for i in range(5):
        c_in, c_out = chans[i], chans[i + 1]
        key, kw, kg = jax.random.split(key, 3)
        w = 0.02 * jax.random.normal(kw, (c_in, c_out, KSIZE, KSIZE), jnp.float32)
        if IS_LAST[i]:
            gamma = jnp.ones((c_out,), jnp.float32)   # unused (no BN on last layer)
            beta = jnp.zeros((c_out,), jnp.float32)
        else:
            gamma = 1.0 + 0.02 * jax.random.normal(kg, (c_out,), jnp.float32)
            beta = jnp.zeros((c_out,), jnp.float32)
        params.append((w, gamma, beta))
    return params


# --------------------------- pure-XLA reference check ----------------------- #
def reference_forward(z, params):
    """ConvTranspose2d as lhs-dilated conv + training-mode BN + ReLU / tanh.
    bf16 rounding is applied exactly where the Pallas pipeline rounds
    (weights and inter-layer activation streams)."""
    def rnd(t):
        return t.astype(jnp.bfloat16).astype(jnp.float32)

    x = rnd(z)
    for (w, gamma, beta), stride, pad, last in zip(params, STRIDES, PADS, IS_LAST):
        k = w.shape[2]
        w_conv = jnp.flip(rnd(w), (2, 3)).transpose(1, 0, 2, 3)   # (Cout, Cin, k, k)
        y = lax.conv_general_dilated(
            x, w_conv, window_strides=(1, 1),
            padding=[(k - 1 - pad, k - 1 - pad)] * 2,
            lhs_dilation=(stride, stride),
            dimension_numbers=("NCHW", "OIHW", "NCHW"),
            precision=lax.Precision.HIGHEST)
        if last:
            return jnp.tanh(y)
        mean = y.mean(axis=(0, 2, 3))
        var = y.var(axis=(0, 2, 3))
        scale = (gamma * lax.rsqrt(var + EPS)).reshape(1, -1, 1, 1)
        shift = (beta - mean * gamma * lax.rsqrt(var + EPS)).reshape(1, -1, 1, 1)
        x = rnd(jnp.maximum(rnd(y) * scale + shift, 0.0))
    return x


if __name__ == "__main__":
    key = jax.random.PRNGKey(0)
    kz, kp = jax.random.split(key)

    batch, hidden_dim, fm, n_ch = 2, 16, 8, 3
    z = jax.random.normal(kz, (batch, hidden_dim, 1, 1), jnp.float32)
    params = init_params(kp, hidden_dim, fm, n_ch)
    prepped = prepare_params(params)          # bf16 phase weights, built once outside jit

    out = jax.block_until_ready(jax.jit(generator_forward)(z, prepped))

    assert out.shape == (batch, n_ch, 64, 64), out.shape
    assert bool(jnp.all(jnp.isfinite(out)))
    assert bool(jnp.all(jnp.abs(out) <= 1.0 + 1e-6))   # tanh range

    ref = jax.block_until_ready(jax.jit(reference_forward)(z, params))
    max_err = float(jnp.max(jnp.abs(out - ref)))
    assert max_err < 3e-2, f"max abs error vs XLA reference: {max_err}"
    print("KERNEL_OK")
</pallas_src>

<mosaic_0001>
module attributes {stable_mosaic.version = 11 : i64} {
  func.func @_mm_stats_kernel(%arg0: i32, %arg1: i32, %arg2: memref<1x64x256xbf16, #tpu.memory_space<vmem>>, %arg3: memref<1x256x128xbf16, #tpu.memory_space<vmem>>, %arg4: memref<1x64x128xbf16, #tpu.memory_space<vmem>>, %arg5: memref<1x64x1xf32, #tpu.memory_space<vmem>>, %arg6: memref<1x64x1xf32, #tpu.memory_space<vmem>>) attributes {dimension_semantics = [#tpu.dimension_semantics<parallel>, #tpu.dimension_semantics<arbitrary>], iteration_bounds = array<i64: 1, 1>, scalar_prefetch = 0 : i64, scratch_operands = 0 : i64, tpu.core_type = #tpu.core_type<tc>, window_params = [{transform_indices = @transform_0, window_bounds = array<i64: 1, 64, 256>}, {transform_indices = @transform_1, window_bounds = array<i64: 1, 256, 128>}, {transform_indices = @transform_2, window_bounds = array<i64: 1, 64, 128>}, {transform_indices = @transform_3, window_bounds = array<i64: 1, 64, 1>}, {transform_indices = @transform_4, window_bounds = array<i64: 1, 64, 1>}]} {
    %c0_i32 = arith.constant 0 : i32
    %0 = arith.cmpi eq, %arg1, %c0_i32 : i32
    %1 = arith.extui %0 : i1 to i32
    %c0_i32_0 = arith.constant 0 : i32
    %2 = arith.cmpi ne, %1, %c0_i32_0 : i32
    scf.if %2 {
      %cst_23 = arith.constant 0.000000e+00 : f32
      %31 = vector.broadcast %cst_23 : f32 to vector<1x64x1xf32>
      %c0_24 = arith.constant 0 : index
      %c0_25 = arith.constant 0 : index
      %c0_26 = arith.constant 0 : index
      %32 = vector.load %arg5[%c0_24, %c0_25, %c0_26] : memref<1x64x1xf32, #tpu.memory_space<vmem>>, vector<1x64x1xf32>
      tpu.vector_store %arg5[%c0_24, %c0_25, %c0_26], %31 {strides = array<i32>} : memref<1x64x1xf32, #tpu.memory_space<vmem>>, vector<1x64x1xf32>,
      %cst_27 = arith.constant 0.000000e+00 : f32
      %33 = vector.broadcast %cst_27 : f32 to vector<1x64x1xf32>
      %c0_28 = arith.constant 0 : index
      %c0_29 = arith.constant 0 : index
      %c0_30 = arith.constant 0 : index
      %34 = vector.load %arg6[%c0_28, %c0_29, %c0_30] : memref<1x64x1xf32, #tpu.memory_space<vmem>>, vector<1x64x1xf32>
      tpu.vector_store %arg6[%c0_28, %c0_29, %c0_30], %33 {strides = array<i32>} : memref<1x64x1xf32, #tpu.memory_space<vmem>>, vector<1x64x1xf32>,
    } else {
    }
    %c0 = arith.constant 0 : index
    %c0_1 = arith.constant 0 : index
    %c0_2 = arith.constant 0 : index
    %3 = vector.load %arg3[%c0, %c0_1, %c0_2] : memref<1x256x128xbf16, #tpu.memory_space<vmem>>, vector<1x256x128xbf16>
    %4 = vector.shape_cast %3 : vector<1x256x128xbf16> to vector<256x128xbf16>
    %5 = arith.extf %4 : vector<256x128xbf16> to vector<256x128xf32>
    %c0_3 = arith.constant 0 : index
    %c0_4 = arith.constant 0 : index
    %c0_5 = arith.constant 0 : index
    %6 = vector.load %arg2[%c0_3, %c0_4, %c0_5] : memref<1x64x256xbf16, #tpu.memory_space<vmem>>, vector<1x64x256xbf16>
    %7 = vector.shape_cast %6 : vector<1x64x256xbf16> to vector<64x256xbf16>
    %8 = arith.extf %7 : vector<64x256xbf16> to vector<64x256xf32>
    %cst = arith.constant dense<0.000000e+00> : vector<64x128xf32>
    %9 = tpu.matmul %8, %5, %cst {dimension_numbers = #tpu.dot_dimension_numbers<[1], [0], [0], [1], [0, 0, 1, 1], [], []>} : vector<64x256xf32>, vector<256x128xf32>, vector<64x128xf32> -> vector<64x128xf32>
    %10 = arith.truncf %9 : vector<64x128xf32> to vector<64x128xbf16>
    %c0_6 = arith.constant 0 : index
    %c0_7 = arith.constant 0 : index
    %c0_8 = arith.constant 0 : index
    %11 = vector.load %arg4[%c0_6, %c0_7, %c0_8] : memref<1x64x128xbf16, #tpu.memory_space<vmem>>, vector<1x64x128xbf16>
    %12 = vector.shape_cast %11 : vector<1x64x128xbf16> to vector<64x128xbf16>
    %13 = vector.shape_cast %10 : vector<64x128xbf16> to vector<1x64x128xbf16>
    tpu.vector_store %arg4[%c0_6, %c0_7, %c0_8], %13 {strides = array<i32>} : memref<1x64x128xbf16, #tpu.memory_space<vmem>>, vector<1x64x128xbf16>,
    %c0_9 = arith.constant 0 : index
    %c0_10 = arith.constant 0 : index
    %c0_11 = arith.constant 0 : index
    %14 = vector.load %arg5[%c0_9, %c0_10, %c0_11] : memref<1x64x1xf32, #tpu.memory_space<vmem>>, vector<1x64x1xf32>
    %15 = vector.shape_cast %14 : vector<1x64x1xf32> to vector<64x1xf32>
    %cst_12 = arith.constant dense<0.000000e+00> : vector<64xf32>
    %16 = vector.multi_reduction <add>, %9, %cst_12 [1] : vector<64x128xf32> to vector<64xf32>
    %17 = vector.shape_cast %16 : vector<64xf32> to vector<64x1xf32>
    %18 = arith.addf %15, %17 : vector<64x1xf32>
    %c0_13 = arith.constant 0 : index
    %c0_14 = arith.constant 0 : index
    %c0_15 = arith.constant 0 : index
    %19 = vector.load %arg5[%c0_13, %c0_14, %c0_15] : memref<1x64x1xf32, #tpu.memory_space<vmem>>, vector<1x64x1xf32>
    %20 = vector.shape_cast %19 : vector<1x64x1xf32> to vector<64x1xf32>
    %21 = vector.shape_cast %18 : vector<64x1xf32> to vector<1x64x1xf32>
    tpu.vector_store %arg5[%c0_13, %c0_14, %c0_15], %21 {strides = array<i32>} : memref<1x64x1xf32, #tpu.memory_space<vmem>>, vector<1x64x1xf32>,
    %c0_16 = arith.constant 0 : index
    %c0_17 = arith.constant 0 : index
    %c0_18 = arith.constant 0 : index
    %22 = vector.load %arg6[%c0_16, %c0_17, %c0_18] : memref<1x64x1xf32, #tpu.memory_space<vmem>>, vector<1x64x1xf32>
    %23 = vector.shape_cast %22 : vector<1x64x1xf32> to vector<64x1xf32>
    %24 = arith.mulf %9, %9 : vector<64x128xf32>
    %cst_19 = arith.constant dense<0.000000e+00> : vector<64xf32>
    %25 = vector.multi_reduction <add>, %24, %cst_19 [1] : vector<64x128xf32> to vector<64xf32>
    %26 = vector.shape_cast %25 : vector<64xf32> to vector<64x1xf32>
    %27 = arith.addf %23, %26 : vector<64x1xf32>
    %c0_20 = arith.constant 0 : index
    %c0_21 = arith.constant 0 : index
    %c0_22 = arith.constant 0 : index
    %28 = vector.load %arg6[%c0_20, %c0_21, %c0_22] : memref<1x64x1xf32, #tpu.memory_space<vmem>>, vector<1x64x1xf32>
    %29 = vector.shape_cast %28 : vector<1x64x1xf32> to vector<64x1xf32>
    %30 = vector.shape_cast %27 : vector<64x1xf32> to vector<1x64x1xf32>
    tpu.vector_store %arg6[%c0_20, %c0_21, %c0_22], %30 {strides = array<i32>} : memref<1x64x1xf32, #tpu.memory_space<vmem>>, vector<1x64x1xf32>,
    return
  }
  func.func @transform_0(%arg0: i32, %arg1: i32) -> (i32, i32, i32) {
    %c0_i32 = arith.constant 0 : i32
    %c0_i32_0 = arith.constant 0 : i32
    %c0_i32_1 = arith.constant 0 : i32
    return %arg0, %c0_i32, %c0_i32_0 : i32, i32, i32
  }
  func.func @transform_1(%arg0: i32, %arg1: i32) -> (i32, i32, i32) {
    %c0_i32 = arith.constant 0 : i32
    %c0_i32_0 = arith.constant 0 : i32
    return %arg0, %c0_i32, %arg1 : i32, i32, i32
  }
  func.func @transform_2(%arg0: i32, %arg1: i32) -> (i32, i32, i32) {
    %c0_i32 = arith.constant 0 : i32
    %c0_i32_0 = arith.constant 0 : i32
    return %arg0, %c0_i32, %arg1 : i32, i32, i32
  }
  func.func @transform_3(%arg0: i32, %arg1: i32) -> (i32, i32, i32) {
    %c0_i32 = arith.constant 0 : i32
    %c0_i32_0 = arith.constant 0 : i32
    %c0_i32_1 = arith.constant 0 : i32
    return %arg0, %c0_i32, %c0_i32_0 : i32, i32, i32
  }
  func.func @transform_4(%arg0: i32, %arg1: i32) -> (i32, i32, i32) {
    %c0_i32 = arith.constant 0 : i32
    %c0_i32_0 = arith.constant 0 : i32
    %c0_i32_1 = arith.constant 0 : i32
    return %arg0, %c0_i32, %c0_i32_0 : i32, i32, i32
  }
}

module attributes {stable_mosaic.version = 11 : i64} {
  func.func @_mm_stats_kernel(%arg0: i32, %arg1: i32, %arg2: memref<1x32x256xbf16, #tpu.memory_space<vmem>>, %arg3: memref<1x256x128xbf16, #tpu.memory_space<vmem>>, %arg4: memref<1x32x128xbf16, #tpu.memory_space<vmem>>, %arg5: memref<1x32x1xf32, #tpu.memory_space<vmem>>, %arg6: memref<1x32x1xf32, #tpu.memory_space<vmem>>) attributes {dimension_semantics = [#tpu.dimension_semantics<parallel>, #tpu.dimension_semantics<arbitrary>], iteration_bounds = array<i64: 4, 1>, scalar_prefetch = 0 : i64, scratch_operands = 0 : i64, tpu.core_type = #tpu.core_type<tc>, window_params = [{transform_indices = @transform_0, window_bounds = array<i64: 1, 32, 256>}, {transform_indices = @transform_1, window_bounds = array<i64: 1, 256, 128>}, {transform_indices = @transform_2, window_bounds = array<i64: 1, 32, 128>}, {transform_indices = @transform_3, window_bounds = array<i64: 1, 32, 1>}, {transform_indices = @transform_4, window_bounds = array<i64: 1, 32, 1>}]} {
    %c0_i32 = arith.constant 0 : i32
    %0 = arith.cmpi eq, %arg1, %c0_i32 : i32
    %1 = arith.extui %0 : i1 to i32
    %c0_i32_0 = arith.constant 0 : i32
    %2 = arith.cmpi ne, %1, %c0_i32_0 : i32
    scf.if %2 {
      %cst_23 = arith.constant 0.000000e+00 : f32
      %31 = vector.broadcast %cst_23 : f32 to vector<1x32x1xf32>
      %c0_24 = arith.constant 0 : index
      %c0_25 = arith.constant 0 : index
      %c0_26 = arith.constant 0 : index
      %32 = vector.load %arg5[%c0_24, %c0_25, %c0_26] : memref<1x32x1xf32, #tpu.memory_space<vmem>>, vector<1x32x1xf32>
      tpu.vector_store %arg5[%c0_24, %c0_25, %c0_26], %31 {strides = array<i32>} : memref<1x32x1xf32, #tpu.memory_space<vmem>>, vector<1x32x1xf32>,
      %cst_27 = arith.constant 0.000000e+00 : f32
      %33 = vector.broadcast %cst_27 : f32 to vector<1x32x1xf32>
      %c0_28 = arith.constant 0 : index
      %c0_29 = arith.constant 0 : index
      %c0_30 = arith.constant 0 : index
      %34 = vector.load %arg6[%c0_28, %c0_29, %c0_30] : memref<1x32x1xf32, #tpu.memory_space<vmem>>, vector<1x32x1xf32>
      tpu.vector_store %arg6[%c0_28, %c0_29, %c0_30], %33 {strides = array<i32>} : memref<1x32x1xf32, #tpu.memory_space<vmem>>, vector<1x32x1xf32>,
    } else {
    }
    %c0 = arith.constant 0 : index
    %c0_1 = arith.constant 0 : index
    %c0_2 = arith.constant 0 : index
    %3 = vector.load %arg3[%c0, %c0_1, %c0_2] : memref<1x256x128xbf16, #tpu.memory_space<vmem>>, vector<1x256x128xbf16>
    %4 = vector.shape_cast %3 : vector<1x256x128xbf16> to vector<256x128xbf16>
    %5 = arith.extf %4 : vector<256x128xbf16> to vector<256x128xf32>
    %c0_3 = arith.constant 0 : index
    %c0_4 = arith.constant 0 : index
    %c0_5 = arith.constant 0 : index
    %6 = vector.load %arg2[%c0_3, %c0_4, %c0_5] : memref<1x32x256xbf16, #tpu.memory_space<vmem>>, vector<1x32x256xbf16>
    %7 = vector.shape_cast %6 : vector<1x32x256xbf16> to vector<32x256xbf16>
    %8 = arith.extf %7 : vector<32x256xbf16> to vector<32x256xf32>
    %cst = arith.constant dense<0.000000e+00> : vector<32x128xf32>
    %9 = tpu.matmul %8, %5, %cst {dimension_numbers = #tpu.dot_dimension_numbers<[1], [0], [0], [1], [0, 0, 1, 1], [], []>} : vector<32x256xf32>, vector<256x128xf32>, vector<32x128xf32> -> vector<32x128xf32>
    %10 = arith.truncf %9 : vector<32x128xf32> to vector<32x128xbf16>
    %c0_6 = arith.constant 0 : index
    %c0_7 = arith.constant 0 : index
    %c0_8 = arith.constant 0 : index
    %11 = vector.load %arg4[%c0_6, %c0_7, %c0_8] : memref<1x32x128xbf16, #tpu.memory_space<vmem>>, vector<1x32x128xbf16>
    %12 = vector.shape_cast %11 : vector<1x32x128xbf16> to vector<32x128xbf16>
    %13 = vector.shape_cast %10 : vector<32x128xbf16> to vector<1x32x128xbf16>
    tpu.vector_store %arg4[%c0_6, %c0_7, %c0_8], %13 {strides = array<i32>} : memref<1x32x128xbf16, #tpu.memory_space<vmem>>, vector<1x32x128xbf16>,
    %c0_9 = arith.constant 0 : index
    %c0_10 = arith.constant 0 : index
    %c0_11 = arith.constant 0 : index
    %14 = vector.load %arg5[%c0_9, %c0_10, %c0_11] : memref<1x32x1xf32, #tpu.memory_space<vmem>>, vector<1x32x1xf32>
    %15 = vector.shape_cast %14 : vector<1x32x1xf32> to vector<32x1xf32>
    %cst_12 = arith.constant dense<0.000000e+00> : vector<32xf32>
    %16 = vector.multi_reduction <add>, %9, %cst_12 [1] : vector<32x128xf32> to vector<32xf32>
    %17 = vector.shape_cast %16 : vector<32xf32> to vector<32x1xf32>
    %18 = arith.addf %15, %17 : vector<32x1xf32>
    %c0_13 = arith.constant 0 : index
    %c0_14 = arith.constant 0 : index
    %c0_15 = arith.constant 0 : index
    %19 = vector.load %arg5[%c0_13, %c0_14, %c0_15] : memref<1x32x1xf32, #tpu.memory_space<vmem>>, vector<1x32x1xf32>
    %20 = vector.shape_cast %19 : vector<1x32x1xf32> to vector<32x1xf32>
    %21 = vector.shape_cast %18 : vector<32x1xf32> to vector<1x32x1xf32>
    tpu.vector_store %arg5[%c0_13, %c0_14, %c0_15], %21 {strides = array<i32>} : memref<1x32x1xf32, #tpu.memory_space<vmem>>, vector<1x32x1xf32>,
    %c0_16 = arith.constant 0 : index
    %c0_17 = arith.constant 0 : index
    %c0_18 = arith.constant 0 : index
    %22 = vector.load %arg6[%c0_16, %c0_17, %c0_18] : memref<1x32x1xf32, #tpu.memory_space<vmem>>, vector<1x32x1xf32>
    %23 = vector.shape_cast %22 : vector<1x32x1xf32> to vector<32x1xf32>
    %24 = arith.mulf %9, %9 : vector<32x128xf32>
    %cst_19 = arith.constant dense<0.000000e+00> : vector<32xf32>
    %25 = vector.multi_reduction <add>, %24, %cst_19 [1] : vector<32x128xf32> to vector<32xf32>
    %26 = vector.shape_cast %25 : vector<32xf32> to vector<32x1xf32>
    %27 = arith.addf %23, %26 : vector<32x1xf32>
    %c0_20 = arith.constant 0 : index
    %c0_21 = arith.constant 0 : index
    %c0_22 = arith.constant 0 : index
    %28 = vector.load %arg6[%c0_20, %c0_21, %c0_22] : memref<1x32x1xf32, #tpu.memory_space<vmem>>, vector<1x32x1xf32>
    %29 = vector.shape_cast %28 : vector<1x32x1xf32> to vector<32x1xf32>
    %30 = vector.shape_cast %27 : vector<32x1xf32> to vector<1x32x1xf32>
    tpu.vector_store %arg6[%c0_20, %c0_21, %c0_22], %30 {strides = array<i32>} : memref<1x32x1xf32, #tpu.memory_space<vmem>>, vector<1x32x1xf32>,
    return
  }
  func.func @transform_0(%arg0: i32, %arg1: i32) -> (i32, i32, i32) {
    %c0_i32 = arith.constant 0 : i32
    %c0_i32_0 = arith.constant 0 : i32
    %c0_i32_1 = arith.constant 0 : i32
    return %arg0, %c0_i32, %c0_i32_0 : i32, i32, i32
  }
  func.func @transform_1(%arg0: i32, %arg1: i32) -> (i32, i32, i32) {
    %c0_i32 = arith.constant 0 : i32
    %c0_i32_0 = arith.constant 0 : i32
    return %arg0, %c0_i32, %arg1 : i32, i32, i32
  }
  func.func @transform_2(%arg0: i32, %arg1: i32) -> (i32, i32, i32) {
    %c0_i32 = arith.constant 0 : i32
    %c0_i32_0 = arith.constant 0 : i32
    return %arg0, %c0_i32, %arg1 : i32, i32, i32
  }
  func.func @transform_3(%arg0: i32, %arg1: i32) -> (i32, i32, i32) {
    %c0_i32 = arith.constant 0 : i32
    %c0_i32_0 = arith.constant 0 : i32
    %c0_i32_1 = arith.constant 0 : i32
    return %arg0, %c0_i32, %c0_i32_0 : i32, i32, i32
  }
  func.func @transform_4(%arg0: i32, %arg1: i32) -> (i32, i32, i32) {
    %c0_i32 = arith.constant 0 : i32
    %c0_i32_0 = arith.constant 0 : i32
    %c0_i32_1 = arith.constant 0 : i32
    return %arg0, %c0_i32, %c0_i32_0 : i32, i32, i32
  }
}

module attributes {stable_mosaic.version = 11 : i64} {
  func.func @_mm_stats_kernel(%arg0: i32, %arg1: i32, %arg2: memref<1x16x128xbf16, #tpu.memory_space<vmem>>, %arg3: memref<1x128x128xbf16, #tpu.memory_space<vmem>>, %arg4: memref<1x16x128xbf16, #tpu.memory_space<vmem>>, %arg5: memref<1x16x1xf32, #tpu.memory_space<vmem>>, %arg6: memref<1x16x1xf32, #tpu.memory_space<vmem>>) attributes {dimension_semantics = [#tpu.dimension_semantics<parallel>, #tpu.dimension_semantics<arbitrary>], iteration_bounds = array<i64: 4, 1>, scalar_prefetch = 0 : i64, scratch_operands = 0 : i64, tpu.core_type = #tpu.core_type<tc>, window_params = [{transform_indices = @transform_0, window_bounds = array<i64: 1, 16, 128>}, {transform_indices = @transform_1, window_bounds = array<i64: 1, 128, 128>}, {transform_indices = @transform_2, window_bounds = array<i64: 1, 16, 128>}, {transform_indices = @transform_3, window_bounds = array<i64: 1, 16, 1>}, {transform_indices = @transform_4, window_bounds = array<i64: 1, 16, 1>}]} {
    %c0_i32 = arith.constant 0 : i32
    %0 = arith.cmpi eq, %arg1, %c0_i32 : i32
    %1 = arith.extui %0 : i1 to i32
    %c0_i32_0 = arith.constant 0 : i32
    %2 = arith.cmpi ne, %1, %c0_i32_0 : i32
    scf.if %2 {
      %cst_23 = arith.constant 0.000000e+00 : f32
      %31 = vector.broadcast %cst_23 : f32 to vector<1x16x1xf32>
      %c0_24 = arith.constant 0 : index
      %c0_25 = arith.constant 0 : index
      %c0_26 = arith.constant 0 : index
      %32 = vector.load %arg5[%c0_24, %c0_25, %c0_26] : memref<1x16x1xf32, #tpu.memory_space<vmem>>, vector<1x16x1xf32>
      tpu.vector_store %arg5[%c0_24, %c0_25, %c0_26], %31 {strides = array<i32>} : memref<1x16x1xf32, #tpu.memory_space<vmem>>, vector<1x16x1xf32>,
      %cst_27 = arith.constant 0.000000e+00 : f32
      %33 = vector.broadcast %cst_27 : f32 to vector<1x16x1xf32>
      %c0_28 = arith.constant 0 : index
      %c0_29 = arith.constant 0 : index
      %c0_30 = arith.constant 0 : index
      %34 = vector.load %arg6[%c0_28, %c0_29, %c0_30] : memref<1x16x1xf32, #tpu.memory_space<vmem>>, vector<1x16x1xf32>
      tpu.vector_store %arg6[%c0_28, %c0_29, %c0_30], %33 {strides = array<i32>} : memref<1x16x1xf32, #tpu.memory_space<vmem>>, vector<1x16x1xf32>,
    } else {
    }
    %c0 = arith.constant 0 : index
    %c0_1 = arith.constant 0 : index
    %c0_2 = arith.constant 0 : index
    %3 = vector.load %arg3[%c0, %c0_1, %c0_2] : memref<1x128x128xbf16, #tpu.memory_space<vmem>>, vector<1x128x128xbf16>
    %4 = vector.shape_cast %3 : vector<1x128x128xbf16> to vector<128x128xbf16>
    %5 = arith.extf %4 : vector<128x128xbf16> to vector<128x128xf32>
    %c0_3 = arith.constant 0 : index
    %c0_4 = arith.constant 0 : index
    %c0_5 = arith.constant 0 : index
    %6 = vector.load %arg2[%c0_3, %c0_4, %c0_5] : memref<1x16x128xbf16, #tpu.memory_space<vmem>>, vector<1x16x128xbf16>
    %7 = vector.shape_cast %6 : vector<1x16x128xbf16> to vector<16x128xbf16>
    %8 = arith.extf %7 : vector<16x128xbf16> to vector<16x128xf32>
    %cst = arith.constant dense<0.000000e+00> : vector<16x128xf32>
    %9 = tpu.matmul %8, %5, %cst {dimension_numbers = #tpu.dot_dimension_numbers<[1], [0], [0], [1], [0, 0, 1, 1], [], []>} : vector<16x128xf32>, vector<128x128xf32>, vector<16x128xf32> -> vector<16x128xf32>
    %10 = arith.truncf %9 : vector<16x128xf32> to vector<16x128xbf16>
    %c0_6 = arith.constant 0 : index
    %c0_7 = arith.constant 0 : index
    %c0_8 = arith.constant 0 : index
    %11 = vector.load %arg4[%c0_6, %c0_7, %c0_8] : memref<1x16x128xbf16, #tpu.memory_space<vmem>>, vector<1x16x128xbf16>
    %12 = vector.shape_cast %11 : vector<1x16x128xbf16> to vector<16x128xbf16>
    %13 = vector.shape_cast %10 : vector<16x128xbf16> to vector<1x16x128xbf16>
    tpu.vector_store %arg4[%c0_6, %c0_7, %c0_8], %13 {strides = array<i32>} : memref<1x16x128xbf16, #tpu.memory_space<vmem>>, vector<1x16x128xbf16>,
    %c0_9 = arith.constant 0 : index
    %c0_10 = arith.constant 0 : index
    %c0_11 = arith.constant 0 : index
    %14 = vector.load %arg5[%c0_9, %c0_10, %c0_11] : memref<1x16x1xf32, #tpu.memory_space<vmem>>, vector<1x16x1xf32>
    %15 = vector.shape_cast %14 : vector<1x16x1xf32> to vector<16x1xf32>
    %cst_12 = arith.constant dense<0.000000e+00> : vector<16xf32>
    %16 = vector.multi_reduction <add>, %9, %cst_12 [1] : vector<16x128xf32> to vector<16xf32>
    %17 = vector.shape_cast %16 : vector<16xf32> to vector<16x1xf32>
    %18 = arith.addf %15, %17 : vector<16x1xf32>
    %c0_13 = arith.constant 0 : index
    %c0_14 = arith.constant 0 : index
    %c0_15 = arith.constant 0 : index
    %19 = vector.load %arg5[%c0_13, %c0_14, %c0_15] : memref<1x16x1xf32, #tpu.memory_space<vmem>>, vector<1x16x1xf32>
    %20 = vector.shape_cast %19 : vector<1x16x1xf32> to vector<16x1xf32>
    %21 = vector.shape_cast %18 : vector<16x1xf32> to vector<1x16x1xf32>
    tpu.vector_store %arg5[%c0_13, %c0_14, %c0_15], %21 {strides = array<i32>} : memref<1x16x1xf32, #tpu.memory_space<vmem>>, vector<1x16x1xf32>,
    %c0_16 = arith.constant 0 : index
    %c0_17 = arith.constant 0 : index
    %c0_18 = arith.constant 0 : index
    %22 = vector.load %arg6[%c0_16, %c0_17, %c0_18] : memref<1x16x1xf32, #tpu.memory_space<vmem>>, vector<1x16x1xf32>
    %23 = vector.shape_cast %22 : vector<1x16x1xf32> to vector<16x1xf32>
    %24 = arith.mulf %9, %9 : vector<16x128xf32>
    %cst_19 = arith.constant dense<0.000000e+00> : vector<16xf32>
    %25 = vector.multi_reduction <add>, %24, %cst_19 [1] : vector<16x128xf32> to vector<16xf32>
    %26 = vector.shape_cast %25 : vector<16xf32> to vector<16x1xf32>
    %27 = arith.addf %23, %26 : vector<16x1xf32>
    %c0_20 = arith.constant 0 : index
    %c0_21 = arith.constant 0 : index
    %c0_22 = arith.constant 0 : index
    %28 = vector.load %arg6[%c0_20, %c0_21, %c0_22] : memref<1x16x1xf32, #tpu.memory_space<vmem>>, vector<1x16x1xf32>
    %29 = vector.shape_cast %28 : vector<1x16x1xf32> to vector<16x1xf32>
    %30 = vector.shape_cast %27 : vector<16x1xf32> to vector<1x16x1xf32>
    tpu.vector_store %arg6[%c0_20, %c0_21, %c0_22], %30 {strides = array<i32>} : memref<1x16x1xf32, #tpu.memory_space<vmem>>, vector<1x16x1xf32>,
    return
  }
  func.func @transform_0(%arg0: i32, %arg1: i32) -> (i32, i32, i32) {
    %c0_i32 = arith.constant 0 : i32
    %c0_i32_0 = arith.constant 0 : i32
    %c0_i32_1 = arith.constant 0 : i32
    return %arg0, %c0_i32, %c0_i32_0 : i32, i32, i32
  }
  func.func @transform_1(%arg0: i32, %arg1: i32) -> (i32, i32, i32) {
    %c0_i32 = arith.constant 0 : i32
    %c0_i32_0 = arith.constant 0 : i32
    return %arg0, %c0_i32, %arg1 : i32, i32, i32
  }
  func.func @transform_2(%arg0: i32, %arg1: i32) -> (i32, i32, i32) {
    %c0_i32 = arith.constant 0 : i32
    %c0_i32_0 = arith.constant 0 : i32
    return %arg0, %c0_i32, %arg1 : i32, i32, i32
  }
  func.func @transform_3(%arg0: i32, %arg1: i32) -> (i32, i32, i32) {
    %c0_i32 = arith.constant 0 : i32
    %c0_i32_0 = arith.constant 0 : i32
    %c0_i32_1 = arith.constant 0 : i32
    return %arg0, %c0_i32, %c0_i32_0 : i32, i32, i32
  }
  func.func @transform_4(%arg0: i32, %arg1: i32) -> (i32, i32, i32) {
    %c0_i32 = arith.constant 0 : i32
    %c0_i32_0 = arith.constant 0 : i32
    %c0_i32_1 = arith.constant 0 : i32
    return %arg0, %c0_i32, %c0_i32_0 : i32, i32, i32
  }
}

module attributes {stable_mosaic.version = 11 : i64} {
  func.func @_mm_stats_kernel(%arg0: i32, %arg1: i32, %arg2: memref<1x8x64xbf16, #tpu.memory_space<vmem>>, %arg3: memref<1x64x512xbf16, #tpu.memory_space<vmem>>, %arg4: memref<1x8x512xbf16, #tpu.memory_space<vmem>>, %arg5: memref<1x8x1xf32, #tpu.memory_space<vmem>>, %arg6: memref<1x8x1xf32, #tpu.memory_space<vmem>>) attributes {dimension_semantics = [#tpu.dimension_semantics<parallel>, #tpu.dimension_semantics<arbitrary>], iteration_bounds = array<i64: 4, 1>, scalar_prefetch = 0 : i64, scratch_operands = 0 : i64, tpu.core_type = #tpu.core_type<tc>, window_params = [{transform_indices = @transform_0, window_bounds = array<i64: 1, 8, 64>}, {transform_indices = @transform_1, window_bounds = array<i64: 1, 64, 512>}, {transform_indices = @transform_2, window_bounds = array<i64: 1, 8, 512>}, {transform_indices = @transform_3, window_bounds = array<i64: 1, 8, 1>}, {transform_indices = @transform_4, window_bounds = array<i64: 1, 8, 1>}]} {
    %c0_i32 = arith.constant 0 : i32
    %0 = arith.cmpi eq, %arg1, %c0_i32 : i32
    %1 = arith.extui %0 : i1 to i32
    %c0_i32_0 = arith.constant 0 : i32
    %2 = arith.cmpi ne, %1, %c0_i32_0 : i32
    scf.if %2 {
      %cst_23 = arith.constant 0.000000e+00 : f32
      %31 = vector.broadcast %cst_23 : f32 to vector<1x8x1xf32>
      %c0_24 = arith.constant 0 : index
      %c0_25 = arith.constant 0 : index
      %c0_26 = arith.constant 0 : index
      %32 = vector.load %arg5[%c0_24, %c0_25, %c0_26] : memref<1x8x1xf32, #tpu.memory_space<vmem>>, vector<1x8x1xf32>
      tpu.vector_store %arg5[%c0_24, %c0_25, %c0_26], %31 {strides = array<i32>} : memref<1x8x1xf32, #tpu.memory_space<vmem>>, vector<1x8x1xf32>,
      %cst_27 = arith.constant 0.000000e+00 : f32
      %33 = vector.broadcast %cst_27 : f32 to vector<1x8x1xf32>
      %c0_28 = arith.constant 0 : index
      %c0_29 = arith.constant 0 : index
      %c0_30 = arith.constant 0 : index
      %34 = vector.load %arg6[%c0_28, %c0_29, %c0_30] : memref<1x8x1xf32, #tpu.memory_space<vmem>>, vector<1x8x1xf32>
      tpu.vector_store %arg6[%c0_28, %c0_29, %c0_30], %33 {strides = array<i32>} : memref<1x8x1xf32, #tpu.memory_space<vmem>>, vector<1x8x1xf32>,
    } else {
    }
    %c0 = arith.constant 0 : index
    %c0_1 = arith.constant 0 : index
    %c0_2 = arith.constant 0 : index
    %3 = vector.load %arg3[%c0, %c0_1, %c0_2] : memref<1x64x512xbf16, #tpu.memory_space<vmem>>, vector<1x64x512xbf16>
    %4 = vector.shape_cast %3 : vector<1x64x512xbf16> to vector<64x512xbf16>
    %5 = arith.extf %4 : vector<64x512xbf16> to vector<64x512xf32>
    %c0_3 = arith.constant 0 : index
    %c0_4 = arith.constant 0 : index
    %c0_5 = arith.constant 0 : index
    %6 = vector.load %arg2[%c0_3, %c0_4, %c0_5] : memref<1x8x64xbf16, #tpu.memory_space<vmem>>, vector<1x8x64xbf16>
    %7 = vector.shape_cast %6 : vector<1x8x64xbf16> to vector<8x64xbf16>
    %8 = arith.extf %7 : vector<8x64xbf16> to vector<8x64xf32>
    %cst = arith.constant dense<0.000000e+00> : vector<8x512xf32>
    %9 = tpu.matmul %8, %5, %cst {dimension_numbers = #tpu.dot_dimension_numbers<[1], [0], [0], [1], [0, 0, 1, 1], [], []>} : vector<8x64xf32>, vector<64x512xf32>, vector<8x512xf32> -> vector<8x512xf32>
    %10 = arith.truncf %9 : vector<8x512xf32> to vector<8x512xbf16>
    %c0_6 = arith.constant 0 : index
    %c0_7 = arith.constant 0 : index
    %c0_8 = arith.constant 0 : index
    %11 = vector.load %arg4[%c0_6, %c0_7, %c0_8] : memref<1x8x512xbf16, #tpu.memory_space<vmem>>, vector<1x8x512xbf16>
    %12 = vector.shape_cast %11 : vector<1x8x512xbf16> to vector<8x512xbf16>
    %13 = vector.shape_cast %10 : vector<8x512xbf16> to vector<1x8x512xbf16>
    tpu.vector_store %arg4[%c0_6, %c0_7, %c0_8], %13 {strides = array<i32>} : memref<1x8x512xbf16, #tpu.memory_space<vmem>>, vector<1x8x512xbf16>,
    %c0_9 = arith.constant 0 : index
    %c0_10 = arith.constant 0 : index
    %c0_11 = arith.constant 0 : index
    %14 = vector.load %arg5[%c0_9, %c0_10, %c0_11] : memref<1x8x1xf32, #tpu.memory_space<vmem>>, vector<1x8x1xf32>
    %15 = vector.shape_cast %14 : vector<1x8x1xf32> to vector<8x1xf32>
    %cst_12 = arith.constant dense<0.000000e+00> : vector<8xf32>
    %16 = vector.multi_reduction <add>, %9, %cst_12 [1] : vector<8x512xf32> to vector<8xf32>
    %17 = vector.shape_cast %16 : vector<8xf32> to vector<8x1xf32>
    %18 = arith.addf %15, %17 : vector<8x1xf32>
    %c0_13 = arith.constant 0 : index
    %c0_14 = arith.constant 0 : index
    %c0_15 = arith.constant 0 : index
    %19 = vector.load %arg5[%c0_13, %c0_14, %c0_15] : memref<1x8x1xf32, #tpu.memory_space<vmem>>, vector<1x8x1xf32>
    %20 = vector.shape_cast %19 : vector<1x8x1xf32> to vector<8x1xf32>
    %21 = vector.shape_cast %18 : vector<8x1xf32> to vector<1x8x1xf32>
    tpu.vector_store %arg5[%c0_13, %c0_14, %c0_15], %21 {strides = array<i32>} : memref<1x8x1xf32, #tpu.memory_space<vmem>>, vector<1x8x1xf32>,
    %c0_16 = arith.constant 0 : index
    %c0_17 = arith.constant 0 : index
    %c0_18 = arith.constant 0 : index
    %22 = vector.load %arg6[%c0_16, %c0_17, %c0_18] : memref<1x8x1xf32, #tpu.memory_space<vmem>>, vector<1x8x1xf32>
    %23 = vector.shape_cast %22 : vector<1x8x1xf32> to vector<8x1xf32>
    %24 = arith.mulf %9, %9 : vector<8x512xf32>
    %cst_19 = arith.constant dense<0.000000e+00> : vector<8xf32>
    %25 = vector.multi_reduction <add>, %24, %cst_19 [1] : vector<8x512xf32> to vector<8xf32>
    %26 = vector.shape_cast %25 : vector<8xf32> to vector<8x1xf32>
    %27 = arith.addf %23, %26 : vector<8x1xf32>
    %c0_20 = arith.constant 0 : index
    %c0_21 = arith.constant 0 : index
    %c0_22 = arith.constant 0 : index
    %28 = vector.load %arg6[%c0_20, %c0_21, %c0_22] : memref<1x8x1xf32, #tpu.memory_space<vmem>>, vector<1x8x1xf32>
    %29 = vector.shape_cast %28 : vector<1x8x1xf32> to vector<8x1xf32>
    %30 = vector.shape_cast %27 : vector<8x1xf32> to vector<1x8x1xf32>
    tpu.vector_store %arg6[%c0_20, %c0_21, %c0_22], %30 {strides = array<i32>} : memref<1x8x1xf32, #tpu.memory_space<vmem>>, vector<1x8x1xf32>,
    return
  }
  func.func @transform_0(%arg0: i32, %arg1: i32) -> (i32, i32, i32) {
    %c0_i32 = arith.constant 0 : i32
    %c0_i32_0 = arith.constant 0 : i32
    %c0_i32_1 = arith.constant 0 : i32
    return %arg0, %c0_i32, %c0_i32_0 : i32, i32, i32
  }
  func.func @transform_1(%arg0: i32, %arg1: i32) -> (i32, i32, i32) {
    %c0_i32 = arith.constant 0 : i32
    %c0_i32_0 = arith.constant 0 : i32
    return %arg0, %c0_i32, %arg1 : i32, i32, i32
  }
  func.func @transform_2(%arg0: i32, %arg1: i32) -> (i32, i32, i32) {
    %c0_i32 = arith.constant 0 : i32
    %c0_i32_0 = arith.constant 0 : i32
    return %arg0, %c0_i32, %arg1 : i32, i32, i32
  }
  func.func @transform_3(%arg0: i32, %arg1: i32) -> (i32, i32, i32) {
    %c0_i32 = arith.constant 0 : i32
    %c0_i32_0 = arith.constant 0 : i32
    %c0_i32_1 = arith.constant 0 : i32
    return %arg0, %c0_i32, %c0_i32_0 : i32, i32, i32
  }
  func.func @transform_4(%arg0: i32, %arg1: i32) -> (i32, i32, i32) {
    %c0_i32 = arith.constant 0 : i32
    %c0_i32_0 = arith.constant 0 : i32
    %c0_i32_1 = arith.constant 0 : i32
    return %arg0, %c0_i32, %c0_i32_0 : i32, i32, i32
  }
}

module attributes {stable_mosaic.version = 11 : i64} {
  func.func @_mm_tanh_kernel(%arg0: i32, %arg1: i32, %arg2: memref<1x3x32xbf16, #tpu.memory_space<vmem>>, %arg3: memref<1x32x2048xbf16, #tpu.memory_space<vmem>>, %arg4: memref<1x3x2048xf32, #tpu.memory_space<vmem>>) attributes {dimension_semantics = [#tpu.dimension_semantics<parallel>, #tpu.dimension_semantics<parallel>], iteration_bounds = array<i64: 4, 1>, scalar_prefetch = 0 : i64, scratch_operands = 0 : i64, tpu.core_type = #tpu.core_type<tc>, window_params = [{transform_indices = @transform_0, window_bounds = array<i64: 1, 3, 32>}, {transform_indices = @transform_1, window_bounds = array<i64: 1, 32, 2048>}, {transform_indices = @transform_2, window_bounds = array<i64: 1, 3, 2048>}]} {
    %c0 = arith.constant 0 : index
    %c0_0 = arith.constant 0 : index
    %c0_1 = arith.constant 0 : index
    %0 = vector.load %arg3[%c0, %c0_0, %c0_1] : memref<1x32x2048xbf16, #tpu.memory_space<vmem>>, vector<1x32x2048xbf16>
    %1 = vector.shape_cast %0 : vector<1x32x2048xbf16> to vector<32x2048xbf16>
    %2 = arith.extf %1 : vector<32x2048xbf16> to vector<32x2048xf32>
    %c0_2 = arith.constant 0 : index
    %c0_3 = arith.constant 0 : index
    %c0_4 = arith.constant 0 : index
    %3 = vector.load %arg2[%c0_2, %c0_3, %c0_4] : memref<1x3x32xbf16, #tpu.memory_space<vmem>>, vector<1x3x32xbf16>
    %4 = vector.shape_cast %3 : vector<1x3x32xbf16> to vector<3x32xbf16>
    %5 = arith.extf %4 : vector<3x32xbf16> to vector<3x32xf32>
    %cst = arith.constant dense<0.000000e+00> : vector<3x2048xf32>
    %6 = tpu.matmul %5, %2, %cst {dimension_numbers = #tpu.dot_dimension_numbers<[1], [0], [0], [1], [0, 0, 1, 1], [], []>} : vector<3x32xf32>, vector<32x2048xf32>, vector<3x2048xf32> -> vector<3x2048xf32>
    %7 = math.tanh %6 : vector<3x2048xf32>
    %c0_5 = arith.constant 0 : index
    %c0_6 = arith.constant 0 : index
    %c0_7 = arith.constant 0 : index
    %8 = vector.load %arg4[%c0_5, %c0_6, %c0_7] : memref<1x3x2048xf32, #tpu.memory_space<vmem>>, vector<1x3x2048xf32>
    %9 = vector.shape_cast %8 : vector<1x3x2048xf32> to vector<3x2048xf32>
    %10 = vector.shape_cast %7 : vector<3x2048xf32> to vector<1x3x2048xf32>
    tpu.vector_store %arg4[%c0_5, %c0_6, %c0_7], %10 {strides = array<i32>} : memref<1x3x2048xf32, #tpu.memory_space<vmem>>, vector<1x3x2048xf32>,
    return
  }
  func.func @transform_0(%arg0: i32, %arg1: i32) -> (i32, i32, i32) {
    %c0_i32 = arith.constant 0 : i32
    %c0_i32_0 = arith.constant 0 : i32
    %c0_i32_1 = arith.constant 0 : i32
    return %arg0, %c0_i32, %c0_i32_0 : i32, i32, i32
  }
  func.func @transform_1(%arg0: i32, %arg1: i32) -> (i32, i32, i32) {
    %c0_i32 = arith.constant 0 : i32
    %c0_i32_0 = arith.constant 0 : i32
    return %arg0, %c0_i32, %arg1 : i32, i32, i32
  }
  func.func @transform_2(%arg0: i32, %arg1: i32) -> (i32, i32, i32) {
    %c0_i32 = arith.constant 0 : i32
    %c0_i32_0 = arith.constant 0 : i32
    return %arg0, %c0_i32, %arg1 : i32, i32, i32
  }
}

</mosaic_0001>

<bundles_post_ra>
// kernel: generator_forward.5
= control target key start
LH: loop header
LB: loop body
LE: loop exit
PB: predicated region body
PF: predicated region fallthrough
CT: control target
= control target key end

     0   :  { %10 = vsyncpa [#allocation3], 0  ;;  %s928_s0 = inlined_call_operand.hbm [shape: bf16[1,64,256], index: 0, kind: input, shape index: {}]   ;;  %s929_s1 = inlined_call_operand.hbm [shape: bf16[1,256,128], index: 1, kind: input, shape index: {}]   ;;  %s930_s2 = inlined_call_operand.hbm [shape: bf16[1,64,128], index: 2, kind: output, shape index: {0}]   ;;  %s931_s3 = inlined_call_operand.hbm [shape: f32[1,64,1], index: 3, kind: output, shape index: {1}]   ;;  %s932_s4 = inlined_call_operand.hbm [shape: f32[1,64,1], index: 4, kind: output, shape index: {2}]  }
   0x1   :  { %11 = vsyncpa [#allocation6], 0 }
   0x2   :  { %12 = vsyncpa [#allocation4], 0 }
   0x3   :  { %13 = vsyncpa [#allocation9], 0  ;;  %s786_s15 = smov [#allocation2]   ;;  %s668_s19 = scalar_lea.hbm %s928_s0, 1024 }
   0x4   :  { %s19_s16 = sshll.u32 %s786_s15, 4  ;;  %p669_p0 = scmp.ne.s32.totalorder %s928_s0, %s668_s19  ;;  %s20_s16 = int_to_ptr.vmem [resolvable:$true] %s19_s16 }
   0x5   :  { %p672_p1 = scmp.lt.u32.totalorder %s668_s19, %s928_s0 }
   0x7   :  { %p674_p2 = pnand %p672_p1, %p669_p0 }
   0x9   :  { %677 = shalt.err (!%p674_p2)
}
   0xa   :  { %s678_s24 = scalar_lea.vmem %s20_s16, 1024  ;;  %p683_p4 = scmp.lt.s32.totalorder %s20_s16, %s20_s16 }
   0xb   :  { %p679_p3 = scmp.ne.s32.totalorder %s20_s16, %s678_s24  ;;  %p684_p5 = scmp.lt.s32.totalorder %s678_s24, %s678_s24 }
   0xd   :  { %p685_p6 = por %p684_p5, %p683_p4 }
   0xf   :  { %p686_p7 = pnand %p685_p6, %p679_p3 }
  0x11   :  { %689 = shalt.err (!%p686_p7)
}
  0x12   :  { %s787_s25 = smov 128   ;;  %s788_s26 = smov 8  }
  0x13   :  { %25 = dma.hbm_to_vmem [thread:$0]  %s928_s0, 1024, %s20_s16, [#allocation3], %s787_s25, %s787_s25, %s788_s26  }
  0x14   :  { %s789_s29 = smov [#allocation5]   ;;  %s690_s7 = scalar_lea.hbm %s929_s1, 2048 }
  0x15   :  { %s31_s30 = sshll.u32 %s789_s29, 4  ;;  %p691_p8 = scmp.ne.s32.totalorder %s929_s1, %s690_s7  ;;  %s32_s30 = int_to_ptr.vmem [resolvable:$true] %s31_s30 }
  0x16   :  { %p694_p9 = scmp.lt.u32.totalorder %s690_s7, %s929_s1 }
  0x18   :  { %p696_p10 = pnand %p694_p9, %p691_p8 }
  0x1a   :  { %699 = shalt.err (!%p696_p10)
}
  0x1b   :  { %s700_s12 = scalar_lea.vmem %s32_s30, 2048  ;;  %p705_p12 = scmp.lt.s32.totalorder %s32_s30, %s32_s30 }
  0x1c   :  { %p701_p11 = scmp.ne.s32.totalorder %s32_s30, %s700_s12  ;;  %p706_p13 = scmp.lt.s32.totalorder %s700_s12, %s700_s12 }
  0x1e   :  { %p707_p0 = por %p706_p13, %p705_p12 }
  0x20   :  { %p708_p1 = pnand %p707_p0, %p701_p11 }
  0x22   :  { %711 = shalt.err (!%p708_p1)
}
  0x23   :  { %s790_s0 = smov 64   ;;  %s791_s13 = smov 4  }
  0x24   :  { %37 = dma.hbm_to_vmem [thread:$0]  %s929_s1, 2048, %s32_s30, [#allocation6], %s790_s0, %s790_s0, %s791_s13  }
  0x25   :  { %778 = dma.done.wait [#allocation3], 1024  }
  0x26   :  { %779 = vsyncadd [#allocation3], 4294966272 }
  0x27   :  { %780 = dma.done.wait [#allocation6], 2048  }
  0x28   :  { %781 = vsyncadd [#allocation6], 4294965248  ;;  %v543_v0 = vld [vmem:[#allocation5 + $0x40] sm:$0xff]   ;;  %v544_v2 = vld [vmem:[#allocation5 + $0x48] sm:$0xff]   ;;  %vm48_vm0 = vcmask 7168   ;;  %v792_v40 = vmov 0.0  }
  0x29   :  { %v453_v1 = vld [vmem:[#allocation5] sm:$0xff]   ;;  %611 = vmatprep.subr.bf16.mxu0 %v543_v0  ;;  %642 = vmatprep.subr.bf16.mxu1 %v543_v0  ;;  %v536_v3 = vld [vmem:[#allocation5 + $0x8] sm:$0xff]   ;;  %v545_v4 = vld [vmem:[#allocation5 + $0x50] sm:$0xff]   ;;  %49 = vst.msk [vmem:[#allocation8] sm:$0xff] %vm48_vm0, %v792_v40  ;;  %s793_s1 = smov [#allocation7]  }
  0x2a   :  { %613 = vmatpush3.bf16.msra.mxu0 %v453_v1  ;;  %650 = vmatpush3.bf16.msra.mxu1 %v453_v1  ;;  %v129_v5 = vld [vmem:[#allocation2] sm:$0xff]  ;;  %v537_v9 = vld [vmem:[#allocation5 + $0x10] sm:$0xff]   ;;  %v546_v10 = vld [vmem:[#allocation5 + $0x58] sm:$0xff]   ;;  %50 = vst.msk [vmem:[#allocation8 + $0x8] sm:$0xff] %vm48_vm0, %v792_v40  ;;  %s392_s16 = sshll.u32 %s793_s1, 4  ;;  %s393_s16 = int_to_ptr.vmem [resolvable:$true] %s392_s16 }
  0x2b   :  { %615 = vmatprep.subr.bf16.mxu0 %v544_v2  ;;  %643 = vmatprep.subr.bf16.mxu1 %v544_v2  ;;  %v133_v6 = vld [vmem:[#allocation2 + $0x20] sm:$0xff]  ;;  %v138_v7 = vunpack.c.h.bf16 %v129_v5  ;;  %v538_v11 = vld [vmem:[#allocation5 + $0x18] sm:$0xff]   ;;  %v548_v14 = vld [vmem:[#allocation5 + $0x68] sm:$0xff]   ;;  %v137_v22 = vunpack.c.l.bf16 %v129_v5  ;;  %51 = vst.msk [vmem:[#allocation8 + $0x10] sm:$0xff] %vm48_vm0, %v792_v40  ;;  %s712_s17 = scalar_lea.vmem %s393_s16, 512  ;;  %p717_p3 = scmp.lt.s32.totalorder %s393_s16, %s393_s16 }
  0x2c   :  { %v146_v8 = vunpack.c.h.bf16 %v133_v6  ;;  %v547_v12 = vld [vmem:[#allocation5 + $0x60] sm:$0xff]   ;;  %v540_v15 = vld [vmem:[#allocation5 + $0x28] sm:$0xff]   ;;  %v549_v16 = vld [vmem:[#allocation5 + $0x70] sm:$0xff]   ;;  %v145_v23 = vunpack.c.l.bf16 %v133_v6  ;;  %52 = vst.msk [vmem:[#allocation8 + $0x18] sm:$0xff] %vm48_vm0, %v792_v40  ;;  %p713_p2 = scmp.ne.s32.totalorder %s393_s16, %s712_s17  ;;  %p718_p4 = scmp.lt.s32.totalorder %s712_s17, %s712_s17 }
  0x2d   :  { %217 = vmatprep.mubr.f32.mxu0 %v138_v7  ;;  %v539_v13 = vld [vmem:[#allocation5 + $0x20] sm:$0xff]   ;;  %v541_v17 = vld [vmem:[#allocation5 + $0x30] sm:$0xff]   ;;  %v550_v18 = vld [vmem:[#allocation5 + $0x78] sm:$0xff]   ;;  %53 = vst.msk [vmem:[#allocation8 + $0x20] sm:$0xff] %vm48_vm0, %v792_v40 }
  0x2e   :  { %617 = vmatpush3.bf16.msra.mxu0 %v536_v3  ;;  %651 = vmatpush3.bf16.msra.mxu1 %v536_v3  ;;  %v542_v19 = vld [vmem:[#allocation5 + $0x38] sm:$0xff]   ;;  %v130_v20 = vld [vmem:[#allocation2 + $0x8] sm:$0xff]  ;;  %v131_v26 = vld [vmem:[#allocation2 + $0x10] sm:$0xff]  ;;  %54 = vst.msk [vmem:[#allocation8 + $0x28] sm:$0xff] %vm48_vm0, %v792_v40  ;;  %p719_p5 = por %p718_p4, %p717_p3 }
  0x2f   :  { %619 = vmatprep.subr.bf16.mxu0 %v545_v4  ;;  %644 = vmatprep.subr.bf16.mxu1 %v545_v4  ;;  %v134_v21 = vld [vmem:[#allocation2 + $0x28] sm:$0xff]  ;;  %v140_v24 = vunpack.c.h.bf16 %v130_v20  ;;  %v135_v27 = vld [vmem:[#allocation2 + $0x30] sm:$0xff]  ;;  %v139_v28 = vunpack.c.l.bf16 %v130_v20  ;;  %v142_v30 = vunpack.c.h.bf16 %v131_v26  ;;  %v132_v32 = vld [vmem:[#allocation2 + $0x18] sm:$0xff]  ;;  %v141_v34 = vunpack.c.l.bf16 %v131_v26  ;;  %55 = vst.msk [vmem:[#allocation8 + $0x30] sm:$0xff] %vm48_vm0, %v792_v40 }
  0x30   :  { %237 = vmatprep.mubr.f32.mxu1 %v146_v8  ;;  %v148_v25 = vunpack.c.h.bf16 %v134_v21  ;;  %v147_v29 = vunpack.c.l.bf16 %v134_v21  ;;  %v150_v31 = vunpack.c.h.bf16 %v135_v27  ;;  %v136_v33 = vld [vmem:[#allocation2 + $0x38] sm:$0xff]  ;;  %v149_v35 = vunpack.c.l.bf16 %v135_v27  ;;  %56 = vst.msk [vmem:[#allocation8 + $0x38] sm:$0xff] %vm48_vm0, %v792_v40  ;;  %57 = vst.msk [vmem:[#allocation10] sm:$0xff] %vm48_vm0, %v792_v40  ;;  %p720_p6 = pnand %p719_p5, %p713_p2 }
  0x31   :  { %v144_v36 = vunpack.c.h.bf16 %v132_v32  ;;  %v152_v37 = vunpack.c.h.bf16 %v136_v33  ;;  %v143_v38 = vunpack.c.l.bf16 %v132_v32  ;;  %v151_v39 = vunpack.c.l.bf16 %v136_v33  ;;  %58 = vst.msk [vmem:[#allocation10 + $0x8] sm:$0xff] %vm48_vm0, %v792_v40  ;;  %59 = vst.msk [vmem:[#allocation10 + $0x10] sm:$0xff] %vm48_vm0, %v792_v40 }
  0x32   :  { %621 = vmatpush3.bf16.msra.mxu0 %v537_v9  ;;  %652 = vmatpush3.bf16.msra.mxu1 %v537_v9  ;;  %60 = vst.msk [vmem:[#allocation10 + $0x18] sm:$0xff] %vm48_vm0, %v792_v40  ;;  %61 = vst.msk [vmem:[#allocation10 + $0x20] sm:$0xff] %vm48_vm0, %v792_v40 }
  0x33   :  { %623 = vmatprep.subr.bf16.mxu0 %v546_v10  ;;  %645 = vmatprep.subr.bf16.mxu1 %v546_v10  ;;  %62 = vst.msk [vmem:[#allocation10 + $0x28] sm:$0xff] %vm48_vm0, %v792_v40  ;;  %63 = vst.msk [vmem:[#allocation10 + $0x30] sm:$0xff] %vm48_vm0, %v792_v40 }
  0x34   :  { %64 = vst.msk [vmem:[#allocation10 + $0x38] sm:$0xff] %vm48_vm0, %v792_v40 }
  0x36   :  { %625 = vmatpush3.bf16.msra.mxu0 %v538_v11  ;;  %653 = vmatpush3.bf16.msra.mxu1 %v538_v11 }
  0x37   :  { %627 = vmatprep.subr.bf16.mxu0 %v547_v12  ;;  %646 = vmatprep.subr.bf16.mxu1 %v547_v12 }
  0x3a   :  { %629 = vmatpush3.bf16.msra.mxu0 %v539_v13  ;;  %654 = vmatpush3.bf16.msra.mxu1 %v539_v13 }
  0x3b   :  { %631 = vmatprep.subr.bf16.mxu0 %v548_v14  ;;  %647 = vmatprep.subr.bf16.mxu1 %v548_v14 }
  0x3e   :  { %633 = vmatpush3.bf16.msra.mxu0 %v540_v15  ;;  %655 = vmatpush3.bf16.msra.mxu1 %v540_v15 }
  0x3f   :  { %635 = vmatprep.subr.bf16.mxu0 %v549_v16  ;;  %648 = vmatprep.subr.bf16.mxu1 %v549_v16 }
  0x42   :  { %637 = vmatpush3.bf16.msra.mxu0 %v541_v17  ;;  %656 = vmatpush3.bf16.msra.mxu1 %v541_v17 }
  0x43   :  { %639 = vmatprep.subr.bf16.mxu0 %v550_v18  ;;  %649 = vmatprep.subr.bf16.mxu1 %v550_v18 }
  0x46   :  { %641 = vmatpush3.bf16.msra.mxu0 %v542_v19  ;;  %657 = vmatpush3.bf16.msra.mxu1 %v542_v19 }
  0x49   :  { %218 = vmatmul.mubr.f32.vlgmr.msra.gmra.mrb[0].mxu0 %v137_v22  ;;  %238 = vmatmul.mubr.f32.vlgmr.msra.gmra.mrb[0].mxu1 %v145_v23 }
  0x4a   :  { %222 = vmatprep.mubr.f32.mxu0 %v140_v24  ;;  %242 = vmatprep.mubr.f32.mxu1 %v148_v25 }
  0x4d   :  { %223 = vmatmul.mubr.f32.gmra.mrb[2].mxu0 %v139_v28  ;;  %243 = vmatmul.mubr.f32.gmra.mrb[2].mxu1 %v147_v29 }
  0x4e   :  { %227 = vmatprep.mubr.f32.mxu0 %v142_v30  ;;  %247 = vmatprep.mubr.f32.mxu1 %v150_v31 }
  0x51   :  { %228 = vmatmul.mubr.f32.gmra.mrb[4].mxu0 %v141_v34  ;;  %248 = vmatmul.mubr.f32.gmra.mrb[4].mxu1 %v149_v35 }
  0x52   :  { %232 = vmatprep.mubr.f32.mxu0 %v144_v36  ;;  %252 = vmatprep.mubr.f32.mxu1 %v152_v37 }
  0x55   :  { %233 = vmatmul.mubr.f32.gmra.mrb[6].mxu0 %v143_v38  ;;  %253 = vmatmul.mubr.f32.gmra.mrb[6].mxu1 %v151_v39 }
 0x11c   :  { %v586_v41 = vpop.f32.mrb[0].mxu0  ;;  %v598_v42 = vpop.f32.mrb[0].mxu1 }
 0x11d   :  { %v587_v43 = vpop.f32.mrb[1].mxu0  ;;  %v599_v44 = vpop.f32.mrb[1].mxu1 }
 0x11e   :  { %v588_v45 = vadd.f32 %v587_v43, %v586_v41  ;;  %v600_v46 = vadd.f32 %v599_v44, %v598_v42 }
 0x120   :  { %v589_v47 = vpop.f32.mrb[2].mxu0  ;;  %v601_v48 = vpop.f32.mrb[2].mxu1  ;;  %306 = vadd.xlane.f32.xlu0 %v588_v45  ;;  %v347_v60 = vmul.f32 %v588_v45, %v588_v45  ;;  %v351_v5 = vmul.f32 %v600_v46, %v600_v46 }
 0x121   :  { %v590_v49 = vpop.f32.mrb[3].mxu0  ;;  %v602_v50 = vpop.f32.mrb[3].mxu1 }
 0x122   :  { %v591_v51 = vadd.f32 %v590_v49, %v589_v47  ;;  %v603_v52 = vadd.f32 %v602_v50, %v601_v48 }
 0x124   :  { %v519_v53 = vpack.c.bf16 %v591_v51, %v588_v45  ;;  %v529_v54 = vpack.c.bf16 %v603_v52, %v600_v46  ;;  %316 = vadd.xlane.f32.xlu1 %v603_v52  ;;  %314 = vadd.xlane.f32.xlu0 %v600_v46  ;;  %v348_v55 = vmul.f32 %v591_v51, %v591_v51  ;;  %v592_v56 = vpop.f32.mrb[4].mxu0  ;;  %v604_v57 = vpop.f32.mrb[4].mxu1 }
 0x125   :  { %v593_v58 = vpop.f32.mrb[5].mxu0  ;;  %v605_v59 = vpop.f32.mrb[5].mxu1  ;;  %v352_v4 = vmul.f32 %v603_v52, %v603_v52 }
 0x126   :  { %520 = vst [vmem:[#allocation7] sm:$0xff] %v519_v53   ;;  %552 = vst [vmem:[#allocation7 + $0x10] sm:$0xff] %v529_v54   ;;  %v594_v61 = vadd.f32 %v593_v58, %v592_v56  ;;  %v606_v62 = vadd.f32 %v605_v59, %v604_v57 }
 0x128   :  { %357 = vadd.xlane.f32.xlu1 %v348_v55  ;;  %355 = vadd.xlane.f32.xlu0 %v347_v60  ;;  %v595_v63 = vpop.f32.mrb[6].mxu0  ;;  %v607_v0 = vpop.f32.mrb[6].mxu1  ;;  %v349_v9 = vmul.f32 %v594_v61, %v594_v61  ;;  %v353_v11 = vmul.f32 %v606_v62, %v606_v62 }
 0x129   :  { %v596_v1 = vpop.f32.mrb[7].mxu0  ;;  %v608_v2 = vpop.f32.mrb[7].mxu1 }
 0x12a   :  { %v597_v3 = vadd.f32 %v596_v1, %v595_v63  ;;  %v609_v6 = vadd.f32 %v608_v2, %v607_v0 }
 0x12c   :  { %v524_v7 = vpack.c.bf16 %v597_v3, %v594_v61  ;;  %365 = vadd.xlane.f32.xlu1 %v352_v4  ;;  %363 = vadd.xlane.f32.xlu0 %v351_v5  ;;  %v534_v8 = vpack.c.bf16 %v609_v6, %v606_v62  ;;  %v350_v10 = vmul.f32 %v597_v3, %v597_v3 }
 0x12d   :  { %v354_v12 = vmul.f32 %v609_v6, %v609_v6 }
 0x12e   :  { %551 = vst [vmem:[#allocation7 + $0x8] sm:$0xff] %v524_v7   ;;  %553 = vst [vmem:[#allocation7 + $0x18] sm:$0xff] %v534_v8  }
 0x130   :  { %310 = vadd.xlane.f32.xlu1 %v594_v61  ;;  %308 = vadd.xlane.f32.xlu0 %v591_v51 }
 0x134   :  { %312 = vadd.xlane.f32.xlu1 %v597_v3  ;;  %318 = vadd.xlane.f32.xlu0 %v606_v62 }
 0x138   :  { %320 = vadd.xlane.f32.xlu1 %v609_v6  ;;  %359 = vadd.xlane.f32.xlu0 %v349_v9 }
 0x13c   :  { %361 = vadd.xlane.f32.xlu1 %v350_v10  ;;  %367 = vadd.xlane.f32.xlu0 %v353_v11 }
 0x140   :  { %369 = vadd.xlane.f32.xlu1 %v354_v12 }
 0x141   :  { %723 = shalt.err (!%p720_p6)
}
 0x142   :  { %s724_s20 = scalar_lea.hbm %s930_s2, 512 }
 0x143   :  { %p725_p7 = scmp.ne.s32.totalorder %s930_s2, %s724_s20  ;;  %p728_p8 = scmp.lt.u32.totalorder %s724_s20, %s930_s2 }
 0x145   :  { %p730_p9 = pnand %p728_p8, %p725_p7 }
 0x147   :  { %733 = shalt.err (!%p730_p9)
}
 0x148   :  { %398 = dma.vmem_to_hbm [thread:$0]  %s393_s16, 512, %s930_s2, [#allocation4], %s790_s0, %s790_s0, %s791_s13   ;;  %v298_v13 = vld [vmem:[#allocation8] sm:$0xff]  ;;  %v303_v16 = vld [vmem:[#allocation8 + $0x28] sm:$0xff]  ;;  %v300_v34 = vld [vmem:[#allocation8 + $0x10] sm:$0xff] }
 0x149   :  { %v302_v17 = vld [vmem:[#allocation8 + $0x20] sm:$0xff]  ;;  %v340_v22 = vld [vmem:[#allocation10 + $0x8] sm:$0xff]  ;;  %v301_v40 = vld [vmem:[#allocation8 + $0x18] sm:$0xff]  ;;  %s794_s2 = smov [#allocation8]  }
 0x14a   :  { %v339_v23 = vld [vmem:[#allocation10] sm:$0xff]  ;;  %v344_v28 = vld [vmem:[#allocation10 + $0x28] sm:$0xff]  ;;  %v304_v41 = vld [vmem:[#allocation8 + $0x30] sm:$0xff]  ;;  %s404_s29 = sshll.u32 %s794_s2, 4  ;;  %s405_s29 = int_to_ptr.vmem [resolvable:$true] %s404_s29 }
 0x14b   :  { %v343_v29 = vld [vmem:[#allocation10 + $0x20] sm:$0xff]  ;;  %v299_v35 = vld [vmem:[#allocation8 + $0x8] sm:$0xff]  ;;  %v305_v46 = vld [vmem:[#allocation8 + $0x38] sm:$0xff]  ;;  %s734_s30 = scalar_lea.vmem %s405_s29, 1024  ;;  %p739_p11 = scmp.lt.s32.totalorder %s405_s29, %s405_s29 }
 0x14c   :  { %v341_v47 = vld [vmem:[#allocation10 + $0x10] sm:$0xff]  ;;  %v342_v52 = vld [vmem:[#allocation10 + $0x18] sm:$0xff]  ;;  %p735_p10 = scmp.ne.s32.totalorder %s405_s29, %s734_s30  ;;  %p740_p12 = scmp.lt.s32.totalorder %s734_s30, %s734_s30 }
 0x14d   :  { %v345_v53 = vld [vmem:[#allocation10 + $0x30] sm:$0xff] }
 0x14e   :  { %p741_p13 = por %p740_p12, %p739_p11 }
 0x150   :  { %p742_p0 = pnand %p741_p13, %p735_p10 }
 0x1ad   :  { %v307_v14 = vpop.xlane.xlu0 %306 }
 0x1ae   :  { %v322_v15 = vadd.f32 %v307_v14, %v298_v13 }
 0x1b0   :  { %331 = vst.msk [vmem:[#allocation8] sm:$0xff] %vm48_vm0, %v322_v15 }
 0x1b1   :  { %v317_v18 = vpop.xlane.xlu1 %316  ;;  %v315_v19 = vpop.xlane.xlu0 %314 }
 0x1b2   :  { %v327_v20 = vadd.f32 %v317_v18, %v303_v16  ;;  %v326_v21 = vadd.f32 %v315_v19, %v302_v17 }
 0x1b4   :  { %336 = vst.msk [vmem:[#allocation8 + $0x28] sm:$0xff] %vm48_vm0, %v327_v20  ;;  %335 = vst.msk [vmem:[#allocation8 + $0x20] sm:$0xff] %vm48_vm0, %v326_v21 }
 0x1b5   :  { %v358_v24 = vpop.xlane.xlu1 %357  ;;  %v356_v25 = vpop.xlane.xlu0 %355 }
 0x1b6   :  { %v372_v26 = vadd.f32 %v358_v24, %v340_v22  ;;  %v371_v27 = vadd.f32 %v356_v25, %v339_v23 }
 0x1b8   :  { %380 = vst.msk [vmem:[#allocation10 + $0x8] sm:$0xff] %vm48_vm0, %v372_v26  ;;  %379 = vst.msk [vmem:[#allocation10] sm:$0xff] %vm48_vm0, %v371_v27 }
 0x1b9   :  { %v366_v30 = vpop.xlane.xlu1 %365  ;;  %v364_v31 = vpop.xlane.xlu0 %363 }
 0x1ba   :  { %v376_v32 = vadd.f32 %v366_v30, %v344_v28  ;;  %v375_v33 = vadd.f32 %v364_v31, %v343_v29 }
 0x1bc   :  { %384 = vst.msk [vmem:[#allocation10 + $0x28] sm:$0xff] %vm48_vm0, %v376_v32  ;;  %383 = vst.msk [vmem:[#allocation10 + $0x20] sm:$0xff] %vm48_vm0, %v375_v33 }
 0x1bd   :  { %v311_v36 = vpop.xlane.xlu1 %310  ;;  %v309_v37 = vpop.xlane.xlu0 %308 }
 0x1be   :  { %v324_v38 = vadd.f32 %v311_v36, %v300_v34  ;;  %v323_v39 = vadd.f32 %v309_v37, %v299_v35 }
 0x1c0   :  { %333 = vst.msk [vmem:[#allocation8 + $0x10] sm:$0xff] %vm48_vm0, %v324_v38  ;;  %332 = vst.msk [vmem:[#allocation8 + $0x8] sm:$0xff] %vm48_vm0, %v323_v39 }
 0x1c1   :  { %v313_v42 = vpop.xlane.xlu1 %312  ;;  %v319_v43 = vpop.xlane.xlu0 %318 }
 0x1c2   :  { %v325_v44 = vadd.f32 %v313_v42, %v301_v40  ;;  %v328_v45 = vadd.f32 %v319_v43, %v304_v41 }
 0x1c4   :  { %334 = vst.msk [vmem:[#allocation8 + $0x18] sm:$0xff] %vm48_vm0, %v325_v44  ;;  %337 = vst.msk [vmem:[#allocation8 + $0x30] sm:$0xff] %vm48_vm0, %v328_v45 }
 0x1c5   :  { %v321_v48 = vpop.xlane.xlu1 %320  ;;  %v360_v49 = vpop.xlane.xlu0 %359 }
 0x1c6   :  { %v329_v50 = vadd.f32 %v321_v48, %v305_v46  ;;  %v373_v51 = vadd.f32 %v360_v49, %v341_v47 }
 0x1c8   :  { %338 = vst.msk [vmem:[#allocation8 + $0x38] sm:$0xff] %vm48_vm0, %v329_v50  ;;  %381 = vst.msk [vmem:[#allocation10 + $0x10] sm:$0xff] %vm48_vm0, %v373_v51 }
 0x1c9   :  { %v362_v54 = vpop.xlane.xlu1 %361  ;;  %v368_v55 = vpop.xlane.xlu0 %367 }
 0x1ca   :  { %745 = shalt.err (!%p742_p0)
}
 0x1cb   :  { %s746_s7 = scalar_lea.hbm %s931_s3, 1024 }
 0x1cc   :  { %p747_p1 = scmp.ne.s32.totalorder %s931_s3, %s746_s7  ;;  %p750_p2 = scmp.lt.u32.totalorder %s746_s7, %s931_s3 }
 0x1ce   :  { %p752_p3 = pnand %p750_p2, %p747_p1 }
 0x1d0   :  { %755 = shalt.err (!%p752_p3)
}
 0x1d1   :  { %410 = dma.vmem_to_hbm [thread:$0]  %s405_s29, 1024, %s931_s3, [#allocation9], %s787_s25, %s787_s25, %s788_s26   ;;  %v374_v56 = vadd.f32 %v362_v54, %v342_v52  ;;  %v377_v57 = vadd.f32 %v368_v55, %v345_v53  ;;  %v346_v58 = vld [vmem:[#allocation10 + $0x38] sm:$0xff]  ;;  %v370_v59 = vpop.xlane.xlu1 %369 }
 0x1d2   :  { %s795_s13 = smov [#allocation10]   ;;  %v378_v60 = vadd.f32 %v370_v59, %v346_v58 }
 0x1d3   :  { %s416_s14 = sshll.u32 %s795_s13, 4  ;;  %382 = vst.msk [vmem:[#allocation10 + $0x18] sm:$0xff] %vm48_vm0, %v374_v56  ;;  %385 = vst.msk [vmem:[#allocation10 + $0x30] sm:$0xff] %vm48_vm0, %v377_v57  ;;  %s417_s14 = int_to_ptr.vmem [resolvable:$true] %s416_s14 }
 0x1d4   :  { %386 = vst.msk [vmem:[#allocation10 + $0x38] sm:$0xff] %vm48_vm0, %v378_v60  ;;  %s756_s15 = scalar_lea.vmem %s417_s14, 1024  ;;  %p761_p5 = scmp.lt.s32.totalorder %s417_s14, %s417_s14 }
 0x1d5   :  { %p757_p4 = scmp.ne.s32.totalorder %s417_s14, %s756_s15  ;;  %p762_p6 = scmp.lt.s32.totalorder %s756_s15, %s756_s15 }
 0x1d7   :  { %p763_p7 = por %p762_p6, %p761_p5 }
 0x1d9   :  { %p764_p8 = pnand %p763_p7, %p757_p4 }
 0x1db   :  { %767 = shalt.err (!%p764_p8)
}
 0x1dc   :  { %s768_s16 = scalar_lea.hbm %s932_s4, 1024 }
 0x1dd   :  { %p769_p9 = scmp.ne.s32.totalorder %s932_s4, %s768_s16  ;;  %p772_p10 = scmp.lt.u32.totalorder %s768_s16, %s932_s4 }
 0x1df   :  { %p774_p11 = pnand %p772_p10, %p769_p9 }
 0x1e1   :  { %777 = shalt.err (!%p774_p11)
}
 0x1e2   :  { %422 = dma.vmem_to_hbm [thread:$0]  %s417_s14, 1024, %s932_s4, [#allocation9], %s787_s25, %s787_s25, %s788_s26  }
 0x1e3   :  { %782 = dma.done.wait [#allocation4], 512  }
 0x1e4   :  { %783 = vsyncadd [#allocation4], 4294966784 }
 0x1e5   :  { %784 = dma.done.wait [#allocation9], 2048  }
 0x1e6   :  { %785 = vsyncadd [#allocation9], 4294965248 }
 0x1e7   :  { %432 = vsyncpa [#allocation3], 1 }
 0x1e8   :  { %433 = vsyncpa [#allocation6], 1 }
 0x1e9   :  { %434 = vsyncpa [#allocation4], 1 }
 0x1ea   :  { %435 = vsyncpa [#allocation9], 1 }

// kernel: generator_forward.6
= control target key start
LH: loop header
LB: loop body
LE: loop exit
PB: predicated region body
PF: predicated region fallthrough
CT: control target
= control target key end

     0   :  { %s1692_s0 = inlined_call_operand.hbm [shape: bf16[4,32,256], index: 0, kind: input, shape index: {}]   ;;  %s1693_s1 = inlined_call_operand.hbm [shape: bf16[4,256,128], index: 1, kind: input, shape index: {}]   ;;  %s1694_s2 = inlined_call_operand.hbm [shape: bf16[4,32,128], index: 2, kind: output, shape index: {0}]   ;;  %s1695_s3 = inlined_call_operand.hbm [shape: f32[4,32,1], index: 3, kind: output, shape index: {1}]   ;;  %s1696_s4 = inlined_call_operand.hbm [shape: f32[4,32,1], index: 4, kind: output, shape index: {2}]  }
   0x1   :  { %1700 = sst [smem:[#allocation15_spill]] %s1692_s0 }
   0x2   :  { %10 = vsyncpa [#allocation3], 0 }
   0x3   :  { %12 = vsyncpa [#allocation3 + $0x1], 0 }
   0x4   :  { %13 = vsyncpa [#allocation6], 0 }
   0x5   :  { %15 = vsyncpa [#allocation6 + $0x1], 0 }
   0x6   :  { %16 = vsyncpa [#allocation4], 0 }
   0x7   :  { %18 = vsyncpa [#allocation4 + $0x1], 0 }
   0x8   :  { %19 = vsyncpa [#allocation9], 0 }
   0x9   :  { %21 = vsyncpa [#allocation9 + $0x1], 0  ;;  %s1311_s15 = smov 0   ;;  %s1313_s16 = smov 0  }
   0xa   :  { %s1315_s17 = smov 0   ;;  %s1317_s18 = smov 0  }
   0xb   :  { %s1319_s19 = smov 0   ;;  %s1321_s20 = smov 0  }
   0xc LB: > { %s1342_s21 = sadd.s32 4294967295, %s1270_s20   ;;  %s1698_s22 = sadd.s32 4294967294, %s1270_s20   ;;  %s1270_s20 = sphi %s1321_s20, %s27_s20   ;;  %s1266_s19 = sphi %s1319_s19, %s1717_s19   ;;  %s1262_s18 = sphi %s1317_s18, %s1716_s18   ;;  %s1258_s17 = sphi %s1315_s17, %s1715_s17   ;;  %s1254_s16 = sphi %s1313_s16, %s1714_s16   ;;  %s1250_s15 = sphi %s1311_s15, %s1713_s15  }
   0xd   : > { %s39_s23 = sadd.s32 1, %s1266_s19  ;;  %s46_s24 = sadd.s32 1, %s1258_s17 }
   0xe   : > { %p41_p0 = scmp.ge.s32.totalorder %s39_s23, 4  ;;  %p53_p1 = scmp.ne.s32.totalorder %s1258_s17, %s1254_s16 }
   0xf   : > { %p54_p2 = scmp.eq.s32.totalorder %s1270_s20, 0  ;;  %p59_p3 = scmp.ne.s32.totalorder %s1254_s16, %s1250_s15 }
  0x10   : > { %s1719_s23 = smov (%p41_p0, %s39_s23), 0  ;;  %p60_p5 = scmp.eq.s32.totalorder %s1342_s21, 0 }
  0x11   : > { %p1354_p4 = por %p54_p2, %p53_p1  ;;  %s43_s26 = ssub.s32 %s1266_s19, %s1719_s23 }
  0x12   : > { %p113_p6 = scmp.eq.s32.totalorder %s1342_s21, 3  ;;  %p44_p7 = scmp.eq.s32.totalorder %s43_s26, 0 }
  0x13   : > { %p1362_p8 = por %p60_p5, %p59_p3  ;;  %p119_p10 = scmp.eq.s32.totalorder %s1698_s22, 3 }
  0x14   : > { %p1366_p9 = por %p113_p6, %p53_p1  ;;  %p1005_p12 = scmp.lt.s32.totalorder %s1270_s20, 4 }
  0x15   : > { %s1702_s27 = scalar_select %p1362_p8, 1, 0 }
  0x16   : > { %s1703_s28 = scalar_select %p1366_p9, 1, 0 }
  0x17   : > { %s1373_s29 = scalar_select %p44_p7, %s1258_s17, %s46_s24  }
  0x18   : > { %p1375_p11 = por %p119_p10, %p59_p3  ;;  %s1381_s5 = sand.u32 1, %s1258_s17  }
  0x19   : > { %s760_s6 = sshll.u32 %s1381_s5, 5  ;;  %s787_s7 = sshll.u32 %s1266_s19, 9 }
  0x1a   : > { %s1704_s30 = scalar_select %p1375_p11, 1, 0 }
  0x1b   : > { %s1705_s0 = sld [smem:[#allocation15_spill]]  ;;  %s195_s11 = scalar_lea.vmem [#allocation2], %s760_s6 }
  0x1c   : > { %s202_s12 = sshll.u32 %s195_s11, 4  ;;  %p1394_p13 = pnand %p1005_p12, %p1354_p4  ;;  %s1390_s12 = int_to_ptr.vmem [resolvable:$true] %s202_s12 }
  0x1d   : > { %s192_s14 = scalar_lea.sflag [#allocation3], %s1381_s5 }
  0x1e   : > { %p1066_p2 = pneg %p1394_p13 }
  0x21   : > { %s1388_s10 = scalar_lea.hbm %s1705_s0, %s787_s7  ;;  %s1069_s25 = scalar_lea.hbm %s1705_s0, 2048 }
  0x22   : > { %s1064_s24 = scalar_lea.hbm %s1388_s10, 512  ;;  %p1070_p4 = scmp.lt.u32.totalorder %s1388_s10, %s1705_s0 }
  0x23   : > { %p1065_p1 = scmp.ne.s32.totalorder %s1388_s10, %s1064_s24  ;;  %p1071_p6 = scmp.lt.u32.totalorder %s1069_s25, %s1064_s24 }
  0x24   : > { %p1073_p10 = scmp.lt.u32.totalorder %s1064_s24, %s1388_s10 }
  0x25   : > { %p1067_p3 = pnand %p1066_p2, %p1065_p1  ;;  %p1072_p7 = por %p1071_p6, %p1070_p4 }
  0x27   : > { %p1068_p5 = pneg %p1067_p3  ;;  %p1074_p12 = por %p1073_p10, %p1072_p7 }
  0x29   : > { %p1075_p0 = pnand %p1074_p12, %p1068_p5 }
  0x2b   : > { %1078 = shalt.err (!%p1075_p0)
}
  0x2c   : > { %s1079_s9 = scalar_lea.vmem %s1390_s12, 512  ;;  %s1272_s11 = smov [#allocation2]  }
  0x2d   : > { %p1080_p1 = scmp.ne.s32.totalorder %s1390_s12, %s1079_s9  ;;  %s1084_s26 = sshll.u32 %s1272_s11, 4  ;;  %s1085_s26 = int_to_ptr.vmem [resolvable:$false] %s1084_s26 }
  0x2e   : > { %s1086_s6 = scalar_lea.vmem %s1085_s26, 1024  ;;  %p1087_p9 = scmp.lt.s32.totalorder %s1390_s12, %s1085_s26 }
  0x2f   : > { %p1082_p3 = pnand %p1080_p1, %p1066_p2  ;;  %p1088_p4 = scmp.lt.s32.totalorder %s1086_s6, %s1079_s9 }
  0x31   : > { %p1083_p11 = pneg %p1082_p3  ;;  %p1089_p6 = por %p1088_p4, %p1087_p9 }
  0x33   : > { %p1090_p7 = pnand %p1089_p6, %p1083_p11 }
  0x35   : > { %1093 = shalt.err (!%p1090_p7)
}
  0x36   : > { %s1273_s24 = smov 128   ;;  %s1274_s25 = smov 8  }
  0x37   : > { %991 = dma.hbm_to_vmem [thread:$0]  (!%p1394_p13), %s1388_s10, 512, %s1390_s12, %s192_s14, %s1273_s24, %s1273_s24, %s1274_s25  }
  0x38   : > { %p232_p0 = scmp.lt.s32.totalorder %s1270_s20, 5  ;;  %s763_s7 = sshll.u32 %s1381_s5, 7 }
  0x39   : > { %s788_s8 = sshll.u32 %s1266_s19, 11  ;;  %p1707_p9 = scmp.ge.s32.totalorder %s1270_s20, 1 }
  0x3a   : > { %s1439_s6 = scalar_lea.hbm %s1693_s1, %s788_s8  ;;  %s216_s22 = scalar_lea.vmem [#allocation5], %s763_s7 }
  0x3b   : > { %p1432_p11 = pnand %p1707_p9, %p232_p0  ;;  %s224_s0 = sshll.u32 %s216_s22, 4  ;;  %s1441_s0 = int_to_ptr.vmem [resolvable:$true] %s224_s0 }
  0x3c   : > { %s213_s10 = scalar_lea.sflag [#allocation6], %s1381_s5  ;;  %s1094_s12 = scalar_lea.hbm %s1439_s6, 2048 }
  0x3d   : > { %p1095_p5 = scmp.ne.s32.totalorder %s1439_s6, %s1094_s12  ;;  %s1099_s25 = scalar_lea.hbm %s1693_s1, 8192 }
  0x3e   : > { %p1100_p1 = scmp.lt.u32.totalorder %s1439_s6, %s1693_s1  ;;  %p1101_p3 = scmp.lt.u32.totalorder %s1099_s25, %s1094_s12 }
  0x3f   : > { %p1097_p10 = pnand %p1095_p5, %p1066_p2  ;;  %p1103_p6 = scmp.lt.u32.totalorder %s1094_s12, %s1439_s6 }
  0x40   : > { %p1102_p4 = por %p1101_p3, %p1100_p1 }
  0x41   : > { %p1098_p12 = pneg %p1097_p10 }
  0x42   : > { %p1104_p7 = por %p1103_p6, %p1102_p4 }
  0x44   : > { %p1105_p0 = pnand %p1104_p7, %p1098_p12 }
  0x46   : > { %1108 = shalt.err (!%p1105_p0)
}
  0x47   : > { %s1109_s22 = scalar_lea.vmem %s1441_s0, 2048  ;;  %s1275_s7 = smov [#allocation5]  }
  0x48   : > { %p1110_p9 = scmp.ne.s32.totalorder %s1441_s0, %s1109_s22  ;;  %s1114_s26 = sshll.u32 %s1275_s7, 4  ;;  %s1115_s26 = int_to_ptr.vmem [resolvable:$false] %s1114_s26 }
  0x49   : > { %s1116_s14 = scalar_lea.vmem %s1115_s26, 4096  ;;  %p1117_p8 = scmp.lt.s32.totalorder %s1441_s0, %s1115_s26 }
  0x4a   : > { %p1112_p5 = pnand %p1110_p9, %p1066_p2  ;;  %p1118_p1 = scmp.lt.s32.totalorder %s1116_s14, %s1109_s22 }
  0x4c   : > { %p1113_p10 = pneg %p1112_p5  ;;  %p1119_p3 = por %p1118_p1, %p1117_p8 }
  0x4e   : > { %p1120_p4 = pnand %p1119_p3, %p1113_p10 }
  0x50   : > { %1123 = shalt.err (!%p1120_p4)
}
  0x51   : > { %s1276_s12 = smov 64   ;;  %s1277_s24 = smov 4  }
  0x52   : > { %994 = dma.hbm_to_vmem [thread:$0]  (!%p1394_p13), %s1439_s6, 2048, %s1441_s0, %s213_s10, %s1276_s12, %s1276_s12, %s1277_s24  }
  0x53   : > { %236 = sbr.rel (%p1432_p11) target bundleno = 533 (0x215), region = 28  ;;  %s1472_s25 = sand.u32 (!%p1432_p11), 1, %s1254_s16  }
  0x54   : > { %s1475_s8 = sshll.u32 (!%p1432_p11), %s1472_s25, 5  ;;  %s239_s11 = scalar_lea.sflag (!%p1432_p11), [#allocation3], %s1472_s25 }
  0x55   : > { %s1479_s22 = scalar_lea.vmem (!%p1432_p11), [#allocation2], %s1475_s8  ;;  %p1709_p8 = scmp.ne.s32.totalorder (!%p1432_p11), %s1702_s27, 0 }
  0x5a   : > { %1233 = dma.done.wait (%p1709_p8), %s239_s11, 512  }
  0x5b   : > { %1235 = vsyncadd (%p1709_p8), %s239_s11, 4294966784  ;;  %s768_s0 = sshll.u32 %s1472_s25, 7  ;;  %s248_s5 = scalar_lea.sflag [#allocation6], %s1472_s25 }
  0x5c   : > { %s1487_s13 = scalar_lea.vmem [#allocation5], %s768_s0 }
  0x5d   : > { %1237 = dma.done.wait (%p1709_p8), %s248_s5, 2048  }
  0x5e   : > { %1239 = vsyncadd (%p1709_p8), %s248_s5, 4294965248  ;;  %v877_v0 = vld [vmem:[%s1487_s13 + $0x40] sm:$0xff]   ;;  %v878_v2 = vld [vmem:[%s1487_s13 + $0x48] sm:$0xff]   ;;  %vm295_vm0 = vcmask 7168   ;;  %s1514_s27 = scalar_lea.vmem [#allocation8], %s1475_s8  ;;  %v1278_v28 = vmov 0.0  }
  0x5f   : > { %v797_v1 = vld [vmem:[%s1487_s13] sm:$0xff]   ;;  %931 = vmatprep.subr.bf16.mxu0 %v877_v0  ;;  %962 = vmatprep.subr.bf16.mxu1 %v877_v0  ;;  %v870_v3 = vld [vmem:[%s1487_s13 + $0x8] sm:$0xff]   ;;  %v879_v4 = vld [vmem:[%s1487_s13 + $0x50] sm:$0xff]   ;;  %298 = vst.msk [vmem:[%s1514_s27 + $0x10] sm:$0xff] %vm295_vm0, %v1278_v28  ;;  %s769_s9 = sshll.u32 %s1472_s25, 4  ;;  %s1526_s10 = scalar_lea.vmem [#allocation10], %s1475_s8 }
  0x60   : > { %933 = vmatpush3.bf16.msra.mxu0 %v797_v1  ;;  %970 = vmatpush3.bf16.msra.mxu1 %v797_v1  ;;  %v368_v5 = vld [vmem:[%s1479_s22] sm:$0xff]  ;;  %v370_v6 = vld [vmem:[%s1479_s22 + $0x10] sm:$0xff]  ;;  %v880_v10 = vld [vmem:[%s1487_s13 + $0x58] sm:$0xff]   ;;  %296 = vst.msk [vmem:[%s1514_s27] sm:$0xff] %vm295_vm0, %v1278_v28  ;;  %s276_s6 = scalar_lea.vmem [#allocation7], %s769_s9  ;;  %s793_s26 = sshll.u32 %s1262_s18, 8 }
  0x61   : > { %935 = vmatprep.subr.bf16.mxu0 %v878_v2  ;;  %963 = vmatprep.subr.bf16.mxu1 %v878_v2  ;;  %v373_v7 = vunpack.c.h.bf16 %v368_v5  ;;  %v377_v8 = vunpack.c.h.bf16 %v370_v6  ;;  %v871_v9 = vld [vmem:[%s1487_s13 + $0x10] sm:$0xff]   ;;  %v872_v11 = vld [vmem:[%s1487_s13 + $0x18] sm:$0xff]   ;;  %v881_v12 = vld [vmem:[%s1487_s13 + $0x60] sm:$0xff]   ;;  %v372_v22 = vunpack.c.l.bf16 %v368_v5  ;;  %v376_v23 = vunpack.c.l.bf16 %v370_v6  ;;  %297 = vst.msk [vmem:[%s1514_s27 + $0x8] sm:$0xff] %vm295_vm0, %v1278_v28  ;;  %s555_s7 = sshll.u32 %s276_s6, 4  ;;  %s1542_s24 = scalar_lea.hbm %s1694_s2, %s793_s26  ;;  %s1536_s7 = int_to_ptr.vmem [resolvable:$true] %s555_s7 }
  0x62   : > { %v873_v13 = vld [vmem:[%s1487_s13 + $0x20] sm:$0xff]   ;;  %v882_v14 = vld [vmem:[%s1487_s13 + $0x68] sm:$0xff]   ;;  %v883_v16 = vld [vmem:[%s1487_s13 + $0x70] sm:$0xff]   ;;  %299 = vst.msk [vmem:[%s1514_s27 + $0x18] sm:$0xff] %vm295_vm0, %v1278_v28  ;;  %s531_s8 = scalar_lea.sflag [#allocation4], %s1472_s25  ;;  %s1124_s11 = scalar_lea.vmem %s1536_s7, 256 }
  0x63   : > { %444 = vmatprep.mubr.f32.mxu0 %v373_v7  ;;  %454 = vmatprep.mubr.f32.mxu1 %v377_v8  ;;  %v874_v15 = vld [vmem:[%s1487_s13 + $0x28] sm:$0xff]   ;;  %v875_v17 = vld [vmem:[%s1487_s13 + $0x30] sm:$0xff]   ;;  %v884_v18 = vld [vmem:[%s1487_s13 + $0x78] sm:$0xff]   ;;  %300 = vst.msk [vmem:[%s1526_s10] sm:$0xff] %vm295_vm0, %v1278_v28  ;;  %p1125_p13 = scmp.ne.s32.totalorder %s1536_s7, %s1124_s11  ;;  %p1710_p2 = scmp.ne.s32.totalorder %s1703_s28, 0 }
  0x64   : > { %937 = vmatpush3.bf16.msra.mxu0 %v870_v3  ;;  %971 = vmatpush3.bf16.msra.mxu1 %v870_v3  ;;  %v876_v19 = vld [vmem:[%s1487_s13 + $0x38] sm:$0xff]   ;;  %v369_v20 = vld [vmem:[%s1479_s22 + $0x8] sm:$0xff]  ;;  %301 = vst.msk [vmem:[%s1526_s10 + $0x8] sm:$0xff] %vm295_vm0, %v1278_v28  ;;  %302 = vst.msk [vmem:[%s1526_s10 + $0x10] sm:$0xff] %vm295_vm0, %v1278_v28 }
  0x65   : > { %939 = vmatprep.subr.bf16.mxu0 %v879_v4  ;;  %964 = vmatprep.subr.bf16.mxu1 %v879_v4  ;;  %v371_v21 = vld [vmem:[%s1479_s22 + $0x18] sm:$0xff]  ;;  %v375_v24 = vunpack.c.h.bf16 %v369_v20  ;;  %v374_v26 = vunpack.c.l.bf16 %v369_v20  ;;  %303 = vst.msk [vmem:[%s1526_s10 + $0x18] sm:$0xff] %vm295_vm0, %v1278_v28  ;;  %p1126_p11 = pnand %p1125_p13, %p1710_p2  ;;  %s1279_s22 = smov [#allocation7]  }
  0x66   : > { %v379_v25 = vunpack.c.h.bf16 %v371_v21  ;;  %v378_v27 = vunpack.c.l.bf16 %v371_v21  ;;  %s1128_s0 = sshll.u32 %s1279_s22, 4  ;;  %s1129_s0 = int_to_ptr.vmem [resolvable:$false] %s1128_s0 }
  0x67   : > { %p1127_p12 = pneg %p1126_p11  ;;  %s1130_s5 = scalar_lea.vmem %s1129_s0, 512 }
  0x68   : > { %941 = vmatpush3.bf16.msra.mxu0 %v871_v9  ;;  %972 = vmatpush3.bf16.msra.mxu1 %v871_v9  ;;  %p1131_p6 = scmp.lt.s32.totalorder %s1536_s7, %s1129_s0  ;;  %p1132_p7 = scmp.lt.s32.totalorder %s1130_s5, %s1124_s11 }
  0x69   : > { %943 = vmatprep.subr.bf16.mxu0 %v880_v10  ;;  %965 = vmatprep.subr.bf16.mxu1 %v880_v10 }
  0x6a   : > { %p1133_p0 = por %p1132_p7, %p1131_p6 }
  0x6c   : > { %945 = vmatpush3.bf16.msra.mxu0 %v872_v11  ;;  %973 = vmatpush3.bf16.msra.mxu1 %v872_v11  ;;  %p1134_p9 = pnand %p1133_p0, %p1127_p12 }
  0x6d   : > { %947 = vmatprep.subr.bf16.mxu0 %v881_v12  ;;  %966 = vmatprep.subr.bf16.mxu1 %v881_v12 }
  0x70   : > { %949 = vmatpush3.bf16.msra.mxu0 %v873_v13  ;;  %974 = vmatpush3.bf16.msra.mxu1 %v873_v13 }
  0x71   : > { %951 = vmatprep.subr.bf16.mxu0 %v882_v14  ;;  %967 = vmatprep.subr.bf16.mxu1 %v882_v14 }
  0x74   : > { %953 = vmatpush3.bf16.msra.mxu0 %v874_v15  ;;  %975 = vmatpush3.bf16.msra.mxu1 %v874_v15 }
  0x75   : > { %955 = vmatprep.subr.bf16.mxu0 %v883_v16  ;;  %968 = vmatprep.subr.bf16.mxu1 %v883_v16 }
  0x78   : > { %957 = vmatpush3.bf16.msra.mxu0 %v875_v17  ;;  %976 = vmatpush3.bf16.msra.mxu1 %v875_v17 }
  0x79   : > { %959 = vmatprep.subr.bf16.mxu0 %v884_v18  ;;  %969 = vmatprep.subr.bf16.mxu1 %v884_v18 }
  0x7c   : > { %961 = vmatpush3.bf16.msra.mxu0 %v876_v19  ;;  %977 = vmatpush3.bf16.msra.mxu1 %v876_v19 }
  0x7f   : > { %445 = vmatmul.mubr.f32.vlgmr.msra.gmra.mrb[0].mxu0 %v372_v22  ;;  %455 = vmatmul.mubr.f32.vlgmr.msra.gmra.mrb[0].mxu1 %v376_v23 }
  0x80   : > { %449 = vmatprep.mubr.f32.mxu0 %v375_v24  ;;  %459 = vmatprep.mubr.f32.mxu1 %v379_v25 }
  0x83   : > { %450 = vmatmul.mubr.f32.gmra.mrb[2].mxu0 %v374_v26  ;;  %460 = vmatmul.mubr.f32.gmra.mrb[2].mxu1 %v378_v27 }
 0x152   : > { %v918_v29 = vpop.f32.mrb[0].mxu0  ;;  %v924_v30 = vpop.f32.mrb[0].mxu1 }
 0x153   : > { %v919_v31 = vpop.f32.mrb[1].mxu0  ;;  %v925_v32 = vpop.f32.mrb[1].mxu1 }
 0x154   : > { %v920_v33 = vadd.f32 %v919_v31, %v918_v29  ;;  %v926_v34 = vadd.f32 %v925_v32, %v924_v30 }
 0x156   : > { %v927_v35 = vpop.f32.mrb[2].mxu1  ;;  %493 = vadd.xlane.f32.xlu1 %v926_v34  ;;  %v921_v36 = vpop.f32.mrb[2].mxu0  ;;  %489 = vadd.xlane.f32.xlu0 %v920_v33  ;;  %v510_v41 = vmul.f32 %v920_v33, %v920_v33  ;;  %v512_v46 = vmul.f32 %v926_v34, %v926_v34 }
 0x157   : > { %v922_v37 = vpop.f32.mrb[3].mxu0  ;;  %v928_v38 = vpop.f32.mrb[3].mxu1 }
 0x158   : > { %v923_v39 = vadd.f32 %v922_v37, %v921_v36  ;;  %v929_v40 = vadd.f32 %v928_v38, %v927_v35 }
 0x15a   : > { %v863_v42 = vpack.c.bf16 %v923_v39, %v920_v33  ;;  %v868_v43 = vpack.c.bf16 %v929_v40, %v926_v34  ;;  %495 = vadd.xlane.f32.xlu1 %v929_v40  ;;  %514 = vadd.xlane.f32.xlu0 %v510_v41  ;;  %v511_v44 = vmul.f32 %v923_v39, %v923_v39 }
 0x15b   : > { %v513_v45 = vmul.f32 %v929_v40, %v929_v40 }
 0x15c   : > { %864 = vst [vmem:[%s276_s6] sm:$0xff] %v863_v42   ;;  %885 = vst [vmem:[%s276_s6 + $0x8] sm:$0xff] %v868_v43  }
 0x15e   : > { %516 = vadd.xlane.f32.xlu1 %v511_v44  ;;  %491 = vadd.xlane.f32.xlu0 %v923_v39 }
 0x162   : > { %520 = vadd.xlane.f32.xlu1 %v513_v45  ;;  %518 = vadd.xlane.f32.xlu0 %v512_v46 }
 0x163   : > { %1137 = shalt.err (!%p1134_p9)
}
 0x164   : > { %s1138_s13 = scalar_lea.hbm %s1542_s24, 256  ;;  %s1142_s26 = scalar_lea.hbm %s1694_s2, 1024 }
 0x165   : > { %p1139_p5 = scmp.ne.s32.totalorder %s1542_s24, %s1138_s13  ;;  %p1143_p3 = scmp.lt.u32.totalorder %s1542_s24, %s1694_s2 }
 0x166   : > { %p1144_p4 = scmp.lt.u32.totalorder %s1142_s26, %s1138_s13  ;;  %p1146_p13 = scmp.lt.u32.totalorder %s1138_s13, %s1542_s24 }
 0x167   : > { %p1140_p10 = pnand %p1139_p5, %p1710_p2 }
 0x168   : > { %p1145_p8 = por %p1144_p4, %p1143_p3 }
 0x169   : > { %p1141_p1 = pneg %p1140_p10 }
 0x16a   : > { %p1147_p11 = por %p1146_p13, %p1145_p8 }
 0x16c   : > { %p1148_p12 = pnand %p1147_p11, %p1141_p1 }
 0x16e   : > { %1151 = shalt.err (!%p1148_p12)
}
 0x16f   : > { %s1280_s11 = smov 64   ;;  %s1281_s22 = smov 4   ;;  %v487_v47 = vld [vmem:[%s1514_s27 + $0x10] sm:$0xff]  ;;  %v485_v48 = vld [vmem:[%s1514_s27] sm:$0xff]  ;;  %v488_v53 = vld [vmem:[%s1514_s27 + $0x18] sm:$0xff] }
 0x170   : > { %982 = dma.vmem_to_hbm [thread:$0]  (%p1710_p2), %s1536_s7, 256, %s1542_s24, %s531_s8, %s1280_s11, %s1280_s11, %s1281_s22  }
 0x171   : > { %v506_v54 = vld [vmem:[%s1526_s10] sm:$0xff]  ;;  %s535_s25 = sand.u32 1, %s1342_s21   ;;  %s794_s7 = sshll.u32 %s1262_s18, 9  ;;  %v507_v59 = vld [vmem:[%s1526_s10 + $0x8] sm:$0xff]  ;;  %v509_v1 = vld [vmem:[%s1526_s10 + $0x18] sm:$0xff] }
 0x172   : > { %v486_v60 = vld [vmem:[%s1514_s27 + $0x8] sm:$0xff]  ;;  %s571_s24 = sshll.u32 %s1514_s27, 4  ;;  %s1590_s0 = scalar_lea.hbm %s1695_s3, %s794_s7  ;;  %v508_v2 = vld [vmem:[%s1526_s10 + $0x10] sm:$0xff]  ;;  %s1592_s24 = int_to_ptr.vmem [resolvable:$true] %s571_s24 }
 0x173   : > { %s587_s5 = sshll.u32 %s1526_s10, 4  ;;  %s1601_s13 = scalar_lea.sflag [#allocation9], %s535_s25  ;;  %s1637_s5 = int_to_ptr.vmem [resolvable:$true] %s587_s5 }
 0x174   : > { %s1152_s9 = scalar_lea.vmem %s1592_s24, 512  ;;  %s1282_s6 = smov [#allocation8]  }
 0x175   : > { %p1153_p6 = scmp.ne.s32.totalorder %s1592_s24, %s1152_s9  ;;  %s1156_s26 = sshll.u32 %s1282_s6, 4  ;;  %s1157_s26 = int_to_ptr.vmem [resolvable:$false] %s1156_s26 }
 0x176   : > { %s1158_s14 = scalar_lea.vmem %s1157_s26, 1024  ;;  %p1159_p9 = scmp.lt.s32.totalorder %s1592_s24, %s1157_s26 }
 0x177   : > { %p1154_p7 = pnand %p1153_p6, %p1710_p2  ;;  %p1160_p5 = scmp.lt.s32.totalorder %s1158_s14, %s1152_s9 }
 0x179   : > { %p1155_p0 = pneg %p1154_p7  ;;  %p1161_p10 = por %p1160_p5, %p1159_p9 }
 0x17b   : > { %p1162_p1 = pnand %p1161_p10, %p1155_p0 }
 0x1e3   : > { %v494_v49 = vpop.xlane.xlu1 %493  ;;  %v490_v50 = vpop.xlane.xlu0 %489 }
 0x1e4   : > { %v499_v51 = vadd.f32 %v494_v49, %v487_v47  ;;  %v497_v52 = vadd.f32 %v490_v50, %v485_v48 }
 0x1e6   : > { %504 = vst.msk [vmem:[%s1514_s27 + $0x10] sm:$0xff] %vm295_vm0, %v499_v51  ;;  %502 = vst.msk [vmem:[%s1514_s27] sm:$0xff] %vm295_vm0, %v497_v52 }
 0x1e7   : > { %v496_v55 = vpop.xlane.xlu1 %495  ;;  %v515_v56 = vpop.xlane.xlu0 %514 }
 0x1e8   : > { %v500_v57 = vadd.f32 %v496_v55, %v488_v53  ;;  %v522_v58 = vadd.f32 %v515_v56, %v506_v54 }
 0x1ea   : > { %505 = vst.msk [vmem:[%s1514_s27 + $0x18] sm:$0xff] %vm295_vm0, %v500_v57  ;;  %526 = vst.msk [vmem:[%s1526_s10] sm:$0xff] %vm295_vm0, %v522_v58 }
 0x1eb   : > { %v517_v61 = vpop.xlane.xlu1 %516  ;;  %v492_v62 = vpop.xlane.xlu0 %491 }
 0x1ec   : > { %v523_v63 = vadd.f32 %v517_v61, %v507_v59  ;;  %v498_v0 = vadd.f32 %v492_v62, %v486_v60 }
 0x1ee   : > { %527 = vst.msk [vmem:[%s1526_s10 + $0x8] sm:$0xff] %vm295_vm0, %v523_v63  ;;  %503 = vst.msk [vmem:[%s1514_s27 + $0x8] sm:$0xff] %vm295_vm0, %v498_v0 }
 0x1ef   : > { %v521_v3 = vpop.xlane.xlu1 %520  ;;  %v519_v4 = vpop.xlane.xlu0 %518 }
 0x1f0   : > { %1165 = shalt.err (!%p1162_p1)
}
 0x1f1   : > { %s1166_s27 = scalar_lea.hbm %s1590_s0, 512  ;;  %s1170_s22 = scalar_lea.hbm %s1695_s3, 2048 }
 0x1f2   : > { %p1167_p3 = scmp.ne.s32.totalorder %s1590_s0, %s1166_s27  ;;  %p1171_p13 = scmp.lt.u32.totalorder %s1590_s0, %s1695_s3 }
 0x1f3   : > { %p1172_p11 = scmp.lt.u32.totalorder %s1170_s22, %s1166_s27  ;;  %p1174_p6 = scmp.lt.u32.totalorder %s1166_s27, %s1590_s0 }
 0x1f4   : > { %p1168_p4 = pnand %p1167_p3, %p1710_p2 }
 0x1f5   : > { %p1173_p12 = por %p1172_p11, %p1171_p13 }
 0x1f6   : > { %p1169_p8 = pneg %p1168_p4 }
 0x1f7   : > { %p1175_p7 = por %p1174_p6, %p1173_p12 }
 0x1f9   : > { %p1176_p0 = pnand %p1175_p7, %p1169_p8 }
 0x1fb   : > { %1179 = shalt.err (!%p1176_p0)
}
 0x1fc   : > { %s1283_s21 = smov 128   ;;  %s1284_s9 = smov 8   ;;  %v525_v5 = vadd.f32 %v521_v3, %v509_v1  ;;  %v524_v6 = vadd.f32 %v519_v4, %v508_v2 }
 0x1fd   : > { %983 = dma.vmem_to_hbm [thread:$0]  (%p1710_p2), %s1592_s24, 512, %s1590_s0, %s1601_s13, %s1283_s21, %s1283_s21, %s1284_s9  }
 0x1fe   : > { %s1633_s14 = scalar_lea.hbm %s1696_s4, %s794_s7  ;;  %529 = vst.msk [vmem:[%s1526_s10 + $0x18] sm:$0xff] %vm295_vm0, %v525_v5  ;;  %528 = vst.msk [vmem:[%s1526_s10 + $0x10] sm:$0xff] %vm295_vm0, %v524_v6  ;;  %s1180_s27 = scalar_lea.vmem %s1637_s5, 512 }
 0x1ff   : > { %p1181_p9 = scmp.ne.s32.totalorder %s1637_s5, %s1180_s27  ;;  %s1285_s18 = smov [#allocation10]  }
 0x200   : > { %s1184_s24 = sshll.u32 %s1285_s18, 4  ;;  %s1185_s24 = int_to_ptr.vmem [resolvable:$false] %s1184_s24 }
 0x201   : > { %p1182_p5 = pnand %p1181_p9, %p1710_p2  ;;  %s1186_s7 = scalar_lea.vmem %s1185_s24, 1024 }
 0x202   : > { %p1187_p1 = scmp.lt.s32.totalorder %s1637_s5, %s1185_s24  ;;  %p1188_p3 = scmp.lt.s32.totalorder %s1186_s7, %s1180_s27 }
 0x203   : > { %p1183_p10 = pneg %p1182_p5 }
 0x204   : > { %p1189_p4 = por %p1188_p3, %p1187_p1 }
 0x206   : > { %p1190_p8 = pnand %p1189_p4, %p1183_p10 }
 0x208   : > { %1193 = shalt.err (!%p1190_p8)
}
 0x209   : > { %s1194_s10 = scalar_lea.hbm %s1633_s14, 512  ;;  %s1198_s11 = scalar_lea.hbm %s1696_s4, 2048 }
 0x20a   : > { %p1195_p13 = scmp.ne.s32.totalorder %s1633_s14, %s1194_s10  ;;  %p1199_p6 = scmp.lt.u32.totalorder %s1633_s14, %s1696_s4 }
 0x20b   : > { %p1200_p7 = scmp.lt.u32.totalorder %s1198_s11, %s1194_s10  ;;  %p1202_p9 = scmp.lt.u32.totalorder %s1194_s10, %s1633_s14 }
 0x20c   : > { %p1196_p11 = pnand %p1195_p13, %p1710_p2 }
 0x20d   : > { %p1201_p0 = por %p1200_p7, %p1199_p6 }
 0x20e   : > { %p1197_p12 = pneg %p1196_p11 }
 0x20f   : > { %p1203_p5 = por %p1202_p9, %p1201_p0 }
 0x211   : > { %p1204_p10 = pnand %p1203_p5, %p1197_p12 }
 0x213   : > { %1207 = shalt.err (!%p1204_p10)
}
 0x214   : > { %984 = dma.vmem_to_hbm [thread:$0]  (%p1710_p2), %s1637_s5, 512, %s1633_s14, %s1601_s13, %s1283_s21, %s1283_s21, %s1284_s9  }
 0x215 PF: > { %p1006_p1 = scmp.ge.s32.totalorder %s1270_s20, 2  ;;  %s602_s8 = sand.u32 1, %s1250_s15  }
 0x216   : > { %p1711_p3 = scmp.ne.s32.totalorder %s1704_s30, 0  ;;  %s603_s6 = scalar_lea.sflag [#allocation4], %s602_s8 }
 0x218   : > { %p996_p4 = pnand %p1006_p1, %p1711_p3 }
 0x21a   : > { %1241 = dma.done.wait (!%p996_p4), %s603_s6, 256  }
 0x21b   : > { %1243 = vsyncadd (!%p996_p4), %s603_s6, 4294967040  ;;  %s1712_s28 = sadd.s32 4294967294, %s1270_s20  }
 0x21c   : > { %s611_s26 = sand.u32 1, %s1712_s28  }
 0x21d   : > { %s612_s27 = scalar_lea.sflag [#allocation9], %s611_s26 }
 0x21e   : > { %1245 = dma.done.wait (!%p996_p4), %s612_s27, 1024  }
 0x21f   : > { %1247 = vsyncadd (!%p996_p4), %s612_s27, 4294966272  ;;  %s27_s20 = sadd.s32 1, %s1270_s20   ;;  %s1713_s15 = smov %s1254_s16 }
 0x220   : > { %p24_p2 = scmp.ge.s32.totalorder %s27_s20, 6   ;;  %s1714_s16 = smov %s1258_s17 }
 0x221   : > { %s1715_s17 = smov %s1373_s29  ;;  %s1716_s18 = smov %s1266_s19 }
 0x222   : > { %s1717_s19 = smov %s1719_s23  ;;  %26 = sbr.rel (!%p24_p2) target bundleno = 12 (0xc), region = 122 }
 0x229   :  { %626 = vsyncpa [#allocation3], 1 }
 0x22a   :  { %628 = vsyncpa [#allocation3 + $0x1], 1 }
 0x22b   :  { %629 = vsyncpa [#allocation6], 1 }
 0x22c   :  { %631 = vsyncpa [#allocation6 + $0x1], 1 }
 0x22d   :  { %632 = vsyncpa [#allocation4], 1 }
 0x22e   :  { %634 = vsyncpa [#allocation4 + $0x1], 1 }
 0x22f   :  { %635 = vsyncpa [#allocation9], 1 }
 0x230   :  { %637 = vsyncpa [#allocation9 + $0x1], 1 }

// kernel: generator_forward.7
= control target key start
LH: loop header
LB: loop body
LE: loop exit
PB: predicated region body
PF: predicated region fallthrough
CT: control target
= control target key end

     0   :  { %s1504_s0 = inlined_call_operand.hbm [shape: bf16[4,16,128], index: 0, kind: input, shape index: {}]   ;;  %s1505_s1 = inlined_call_operand.hbm [shape: bf16[4,128,128], index: 1, kind: input, shape index: {}]   ;;  %s1506_s2 = inlined_call_operand.hbm [shape: bf16[4,16,128], index: 2, kind: output, shape index: {0}]   ;;  %s1507_s3 = inlined_call_operand.hbm [shape: f32[4,16,1], index: 3, kind: output, shape index: {1}]   ;;  %s1508_s4 = inlined_call_operand.hbm [shape: f32[4,16,1], index: 4, kind: output, shape index: {2}]  }
   0x1   :  { %1513 = sst [smem:[#allocation15_spill]] %s1504_s0 }
   0x2   :  { %10 = vsyncpa [#allocation3], 0 }
   0x3   :  { %12 = vsyncpa [#allocation3 + $0x1], 0 }
   0x4   :  { %13 = vsyncpa [#allocation6], 0 }
   0x5   :  { %15 = vsyncpa [#allocation6 + $0x1], 0 }
   0x6   :  { %16 = vsyncpa [#allocation4], 0 }
   0x7   :  { %18 = vsyncpa [#allocation4 + $0x1], 0 }
   0x8   :  { %19 = vsyncpa [#allocation9], 0 }
   0x9   :  { %21 = vsyncpa [#allocation9 + $0x1], 0  ;;  %s1168_s15 = smov 0   ;;  %s1170_s16 = smov 0  }
   0xa   :  { %s1172_s17 = smov 0   ;;  %s1174_s18 = smov 0  }
   0xb   :  { %s1176_s19 = smov 0   ;;  %s1178_s20 = smov 0  }
   0xc LB: > { %s1199_s21 = sadd.s32 4294967295, %s1129_s20   ;;  %s1510_s22 = sadd.s32 4294967294, %s1129_s20   ;;  %s1129_s20 = sphi %s1178_s20, %s27_s20   ;;  %s1125_s19 = sphi %s1176_s19, %s1531_s19   ;;  %s1121_s18 = sphi %s1174_s18, %s1530_s18   ;;  %s1117_s17 = sphi %s1172_s17, %s1529_s17   ;;  %s1113_s16 = sphi %s1170_s16, %s1528_s16   ;;  %s1109_s15 = sphi %s1168_s15, %s1527_s15  }
   0xd   : > { %s39_s23 = sadd.s32 1, %s1125_s19  ;;  %s46_s24 = sadd.s32 1, %s1117_s17 }
   0xe   : > { %p41_p0 = scmp.ge.s32.totalorder %s39_s23, 4  ;;  %p53_p1 = scmp.ne.s32.totalorder %s1117_s17, %s1113_s16 }
   0xf   : > { %p54_p2 = scmp.eq.s32.totalorder %s1129_s20, 0  ;;  %p59_p3 = scmp.ne.s32.totalorder %s1113_s16, %s1109_s15 }
  0x10   : > { %s1533_s23 = smov (%p41_p0, %s39_s23), 0  ;;  %p60_p5 = scmp.eq.s32.totalorder %s1199_s21, 0 }
  0x11   : > { %p1211_p4 = por %p54_p2, %p53_p1  ;;  %s43_s26 = ssub.s32 %s1125_s19, %s1533_s23 }
  0x12   : > { %p113_p6 = scmp.eq.s32.totalorder %s1199_s21, 3  ;;  %p44_p7 = scmp.eq.s32.totalorder %s43_s26, 0 }
  0x13   : > { %p1219_p8 = por %p60_p5, %p59_p3  ;;  %p119_p10 = scmp.eq.s32.totalorder %s1510_s22, 3 }
  0x14   : > { %p1223_p9 = por %p113_p6, %p53_p1  ;;  %p866_p12 = scmp.lt.s32.totalorder %s1129_s20, 4 }
  0x15   : > { %s1515_s27 = scalar_select %p1219_p8, 1, 0 }
  0x16   : > { %s1516_s28 = scalar_select %p1223_p9, 1, 0 }
  0x17   : > { %s1230_s29 = scalar_select %p44_p7, %s1117_s17, %s46_s24  }
  0x18   : > { %p1232_p11 = por %p119_p10, %p59_p3  ;;  %s1238_s5 = sand.u32 1, %s1117_s17  }
  0x19   : > { %s674_s6 = sshll.u32 %s1238_s5, 3  ;;  %s699_s7 = sshll.u32 %s1125_s19, 7 }
  0x1a   : > { %s1517_s30 = scalar_select %p1232_p11, 1, 0 }
  0x1b   : > { %s1518_s0 = sld [smem:[#allocation15_spill]]  ;;  %s195_s11 = scalar_lea.vmem [#allocation2], %s674_s6 }
  0x1c   : > { %s202_s12 = sshll.u32 %s195_s11, 4  ;;  %p1251_p13 = pnand %p866_p12, %p1211_p4  ;;  %s1247_s12 = int_to_ptr.vmem [resolvable:$true] %s202_s12 }
  0x1d   : > { %s192_s14 = scalar_lea.sflag [#allocation3], %s1238_s5 }
  0x1e   : > { %p925_p2 = pneg %p1251_p13 }
  0x21   : > { %s1245_s10 = scalar_lea.hbm %s1518_s0, %s699_s7  ;;  %s928_s25 = scalar_lea.hbm %s1518_s0, 512 }
  0x22   : > { %s923_s24 = scalar_lea.hbm %s1245_s10, 128  ;;  %p929_p4 = scmp.lt.u32.totalorder %s1245_s10, %s1518_s0 }
  0x23   : > { %p924_p1 = scmp.ne.s32.totalorder %s1245_s10, %s923_s24  ;;  %p930_p6 = scmp.lt.u32.totalorder %s928_s25, %s923_s24 }
  0x24   : > { %p932_p10 = scmp.lt.u32.totalorder %s923_s24, %s1245_s10 }
  0x25   : > { %p926_p3 = pnand %p925_p2, %p924_p1  ;;  %p931_p7 = por %p930_p6, %p929_p4 }
  0x27   : > { %p927_p5 = pneg %p926_p3  ;;  %p933_p12 = por %p932_p10, %p931_p7 }
  0x29   : > { %p934_p0 = pnand %p933_p12, %p927_p5 }
  0x2b   : > { %937 = shalt.err (!%p934_p0)
}
  0x2c   : > { %s938_s9 = scalar_lea.vmem %s1247_s12, 128  ;;  %s1131_s11 = smov [#allocation2]  }
  0x2d   : > { %p939_p1 = scmp.ne.s32.totalorder %s1247_s12, %s938_s9  ;;  %s943_s26 = sshll.u32 %s1131_s11, 4  ;;  %s944_s26 = int_to_ptr.vmem [resolvable:$false] %s943_s26 }
  0x2e   : > { %s945_s6 = scalar_lea.vmem %s944_s26, 256  ;;  %p946_p9 = scmp.lt.s32.totalorder %s1247_s12, %s944_s26 }
  0x2f   : > { %p941_p3 = pnand %p939_p1, %p925_p2  ;;  %p947_p4 = scmp.lt.s32.totalorder %s945_s6, %s938_s9 }
  0x31   : > { %p942_p11 = pneg %p941_p3  ;;  %p948_p6 = por %p947_p4, %p946_p9 }
  0x33   : > { %p949_p7 = pnand %p948_p6, %p942_p11 }
  0x35   : > { %952 = shalt.err (!%p949_p7)
}
  0x36   : > { %s1511_s24 = smov 64   ;;  %s1133_s25 = smov 4  }
  0x37   : > { %852 = dma.hbm_to_vmem [thread:$0]  (!%p1251_p13), %s1245_s10, 128, %s1247_s12, %s192_s14, %s1511_s24, %s1511_s24, %s1133_s25  }
  0x38   : > { %p232_p9 = scmp.lt.s32.totalorder %s1129_s20, 5  ;;  %s677_s7 = sshll.u32 %s1238_s5, 6 }
  0x39   : > { %s700_s8 = sshll.u32 %s1125_s19, 10  ;;  %p1520_p11 = scmp.ge.s32.totalorder %s1129_s20, 1 }
  0x3a   : > { %s1299_s6 = scalar_lea.hbm %s1505_s1, %s700_s8  ;;  %s216_s22 = scalar_lea.vmem [#allocation5], %s677_s7 }
  0x3b   : > { %p1292_p0 = pnand %p1520_p11, %p232_p9  ;;  %s224_s0 = sshll.u32 %s216_s22, 4  ;;  %s1301_s0 = int_to_ptr.vmem [resolvable:$true] %s224_s0 }
  0x3c   : > { %s213_s10 = scalar_lea.sflag [#allocation6], %s1238_s5  ;;  %s953_s12 = scalar_lea.hbm %s1299_s6, 1024 }
  0x3d   : > { %p954_p5 = scmp.ne.s32.totalorder %s1299_s6, %s953_s12  ;;  %s958_s8 = scalar_lea.hbm %s1505_s1, 4096 }
  0x3e   : > { %p959_p1 = scmp.lt.u32.totalorder %s1299_s6, %s1505_s1  ;;  %p960_p3 = scmp.lt.u32.totalorder %s958_s8, %s953_s12 }
  0x3f   : > { %p956_p10 = pnand %p954_p5, %p925_p2  ;;  %p962_p6 = scmp.lt.u32.totalorder %s953_s12, %s1299_s6 }
  0x40   : > { %p961_p4 = por %p960_p3, %p959_p1 }
  0x41   : > { %p957_p12 = pneg %p956_p10 }
  0x42   : > { %p963_p7 = por %p962_p6, %p961_p4 }
  0x44   : > { %p964_p9 = pnand %p963_p7, %p957_p12 }
  0x46   : > { %967 = shalt.err (!%p964_p9)
}
  0x47   : > { %s968_s22 = scalar_lea.vmem %s1301_s0, 1024  ;;  %s1134_s24 = smov [#allocation5]  }
  0x48   : > { %p969_p11 = scmp.ne.s32.totalorder %s1301_s0, %s968_s22  ;;  %s973_s7 = sshll.u32 %s1134_s24, 4  ;;  %s974_s7 = int_to_ptr.vmem [resolvable:$false] %s973_s7 }
  0x49   : > { %s975_s14 = scalar_lea.vmem %s974_s7, 2048  ;;  %p976_p8 = scmp.lt.s32.totalorder %s1301_s0, %s974_s7 }
  0x4a   : > { %p971_p5 = pnand %p969_p11, %p925_p2  ;;  %p977_p1 = scmp.lt.s32.totalorder %s975_s14, %s968_s22 }
  0x4c   : > { %p972_p10 = pneg %p971_p5  ;;  %p978_p3 = por %p977_p1, %p976_p8 }
  0x4e   : > { %p979_p4 = pnand %p978_p3, %p972_p10 }
  0x50   : > { %982 = shalt.err (!%p979_p4)
}
  0x51   : > { %s1522_s12 = smov 64   ;;  %236 = sbr.rel (%p1292_p0) target bundleno = 523 (0x20b), region = 28 }
  0x52   : > { %855 = dma.hbm_to_vmem [thread:$0]  (!%p1251_p13), %s1299_s6, 1024, %s1301_s0, %s213_s10, %s1522_s12, %s1522_s12, %s1133_s25  }
  0x53   : > { %s1335_s8 = sand.u32 (!%p1292_p0), 1, %s1113_s16   ;;  %p1523_p8 = scmp.ne.s32.totalorder (!%p1292_p0), %s1515_s27, 0 }
  0x54   : > { %s681_s11 = sshll.u32 (!%p1292_p0), %s1335_s8, 3  ;;  %s239_s13 = scalar_lea.sflag (!%p1292_p0), [#allocation3], %s1335_s8 }
  0x55   : > { %s242_s26 = scalar_lea.vmem (!%p1292_p0), [#allocation2], %s681_s11 }
  0x58   : > { %1092 = dma.done.wait (%p1523_p8), %s239_s13, 128  }
  0x59   : > { %1094 = vsyncadd (%p1523_p8), %s239_s13, 4294967168  ;;  %s682_s0 = sshll.u32 %s1335_s8, 6  ;;  %s248_s5 = scalar_lea.sflag [#allocation6], %s1335_s8 }
  0x5a   : > { %s251_s25 = scalar_lea.vmem [#allocation5], %s682_s0 }
  0x5b   : > { %1096 = dma.done.wait (%p1523_p8), %s248_s5, 1024  }
  0x5c   : > { %1098 = vsyncadd (%p1523_p8), %s248_s5, 4294966272  ;;  %v707_v0 = vld [vmem:[%s251_s25] sm:$0xff]   ;;  %v747_v1 = vld [vmem:[%s251_s25 + $0x8] sm:$0xff]   ;;  %s684_s27 = sshll.u32 %s1335_s8, 4  ;;  %vm295_vm0 = vcmask 7168   ;;  %v1135_v11 = vmov 0.0  }
  0x5d   : > { %808 = vmatprep.subr.bf16.mxu0 %v707_v0  ;;  %v739_v2 = vld [vmem:[%s242_s26] sm:$0xff]   ;;  %v750_v6 = vld [vmem:[%s251_s25 + $0x20] sm:$0xff]   ;;  %v751_v7 = vld [vmem:[%s251_s25 + $0x28] sm:$0xff]   ;;  %s1352_s9 = scalar_lea.vmem [#allocation8], %s684_s27  ;;  %s276_s6 = scalar_lea.vmem [#allocation7], %s681_s11 }
  0x5e   : > { %810 = vmatpush3.bf16.msra.mxu0 %v707_v0  ;;  %v740_v3 = vunpack.c.l.bf16 %v739_v2  ;;  %v748_v4 = vld [vmem:[%s251_s25 + $0x10] sm:$0xff]   ;;  %v749_v5 = vld [vmem:[%s251_s25 + $0x18] sm:$0xff]   ;;  %v741_v10 = vunpack.c.h.bf16 %v739_v2  ;;  %296 = vst.msk [vmem:[%s1352_s9] sm:$0xff] %vm295_vm0, %v1135_v11  ;;  %297 = vst.msk [vmem:[%s1352_s9 + $0x8] sm:$0xff] %vm295_vm0, %v1135_v11  ;;  %s1360_s10 = scalar_lea.vmem [#allocation10], %s684_s27  ;;  %s469_s22 = sshll.u32 %s276_s6, 4  ;;  %s1366_s22 = int_to_ptr.vmem [resolvable:$true] %s469_s22 }
  0x5f   : > { %812 = vmatprep.subr.bf16.mxu0 %v747_v1  ;;  %v752_v8 = vld [vmem:[%s251_s25 + $0x30] sm:$0xff]   ;;  %v753_v9 = vld [vmem:[%s251_s25 + $0x38] sm:$0xff]   ;;  %298 = vst.msk [vmem:[%s1360_s10] sm:$0xff] %vm295_vm0, %v1135_v11  ;;  %299 = vst.msk [vmem:[%s1360_s10 + $0x8] sm:$0xff] %vm295_vm0, %v1135_v11  ;;  %s703_s24 = sshll.u32 %s1121_s18, 7  ;;  %s445_s11 = scalar_lea.sflag [#allocation4], %s1335_s8 }
  0x60   : > { %804 = vmatprep.mubr.f32.mxu0 %v740_v3  ;;  %s1372_s12 = scalar_lea.hbm %s1506_s2, %s703_s24  ;;  %s983_s13 = scalar_lea.vmem %s1366_s22, 128 }
  0x61   : > { %p984_p13 = scmp.ne.s32.totalorder %s1366_s22, %s983_s13  ;;  %p1524_p2 = scmp.ne.s32.totalorder %s1516_s28, 0 }
  0x62   : > { %814 = vmatpush3.bf16.msra.mxu0 %v747_v1  ;;  %s1136_s26 = smov [#allocation7]  }
  0x63   : > { %816 = vmatprep.subr.bf16.mxu0 %v748_v4  ;;  %p985_p0 = pnand %p984_p13, %p1524_p2  ;;  %s987_s0 = sshll.u32 %s1136_s26, 4  ;;  %s988_s0 = int_to_ptr.vmem [resolvable:$false] %s987_s0 }
  0x64   : > { %s989_s5 = scalar_lea.vmem %s988_s0, 256  ;;  %p990_p6 = scmp.lt.s32.totalorder %s1366_s22, %s988_s0 }
  0x65   : > { %p986_p12 = pneg %p985_p0  ;;  %p991_p7 = scmp.lt.s32.totalorder %s989_s5, %s983_s13 }
  0x66   : > { %818 = vmatpush3.bf16.msra.mxu0 %v748_v4 }
  0x67   : > { %820 = vmatprep.subr.bf16.mxu0 %v749_v5  ;;  %p992_p9 = por %p991_p7, %p990_p6 }
  0x69   : > { %p993_p11 = pnand %p992_p9, %p986_p12 }
  0x6a   : > { %822 = vmatpush3.bf16.msra.mxu0 %v749_v5 }
  0x6b   : > { %824 = vmatprep.subr.bf16.mxu0 %v750_v6 }
  0x6e   : > { %826 = vmatpush3.bf16.msra.mxu0 %v750_v6 }
  0x6f   : > { %828 = vmatprep.subr.bf16.mxu0 %v751_v7 }
  0x72   : > { %830 = vmatpush3.bf16.msra.mxu0 %v751_v7 }
  0x73   : > { %832 = vmatprep.subr.bf16.mxu0 %v752_v8 }
  0x76   : > { %834 = vmatpush3.bf16.msra.mxu0 %v752_v8 }
  0x77   : > { %836 = vmatprep.subr.bf16.mxu0 %v753_v9 }
  0x7a   : > { %838 = vmatpush3.bf16.msra.mxu0 %v753_v9 }
  0x7d   : > { %805 = vmatmul.mubr.f32.vlgmr.msra.gmra.mrb[0].mxu0 %v741_v10 }
 0x150   : > { %v806_v12 = vpop.f32.mrb[0].mxu0 }
 0x151   : > { %v402_v13 = vpop.f32.mrb[1].mxu0  ;;  %v435_v16 = vmul.f32 %v806_v12, %v806_v12 }
 0x152   : > { %v745_v14 = vpack.c.bf16 %v806_v12, %v402_v13  ;;  %423 = vadd.xlane.f32.xlu0 %v402_v13  ;;  %v434_v15 = vmul.f32 %v402_v13, %v402_v13 }
 0x154   : > { %746 = vst [vmem:[%s276_s6] sm:$0xff] %v745_v14   ;;  %436 = vadd.xlane.f32.xlu1 %v434_v15 }
 0x156   : > { %425 = vadd.xlane.f32.xlu0 %v806_v12 }
 0x158   : > { %438 = vadd.xlane.f32.xlu1 %v435_v16 }
 0x159   : > { %996 = shalt.err (!%p993_p11)
}
 0x15a   : > { %s997_s25 = scalar_lea.hbm %s1372_s12, 128  ;;  %s1001_s24 = scalar_lea.hbm %s1506_s2, 512 }
 0x15b   : > { %p998_p5 = scmp.ne.s32.totalorder %s1372_s12, %s997_s25  ;;  %p1002_p3 = scmp.lt.u32.totalorder %s1372_s12, %s1506_s2 }
 0x15c   : > { %p1003_p4 = scmp.lt.u32.totalorder %s1001_s24, %s997_s25  ;;  %p1005_p13 = scmp.lt.u32.totalorder %s997_s25, %s1372_s12 }
 0x15d   : > { %p999_p10 = pnand %p998_p5, %p1524_p2 }
 0x15e   : > { %p1004_p8 = por %p1003_p4, %p1002_p3 }
 0x15f   : > { %p1000_p1 = pneg %p999_p10 }
 0x160   : > { %p1006_p0 = por %p1005_p13, %p1004_p8 }
 0x162   : > { %p1007_p12 = pnand %p1006_p0, %p1000_p1 }
 0x164   : > { %1010 = shalt.err (!%p1007_p12)
}
 0x165   : > { %s1137_s13 = smov 64   ;;  %s1138_s26 = smov 4   ;;  %v421_v17 = vld [vmem:[%s1352_s9] sm:$0xff]  ;;  %v422_v22 = vld [vmem:[%s1352_s9 + $0x8] sm:$0xff] }
 0x166   : > { %843 = dma.vmem_to_hbm [thread:$0]  (%p1524_p2), %s1366_s22, 128, %s1372_s12, %s445_s11, %s1137_s13, %s1137_s13, %s1138_s26  }
 0x167   : > { %v432_v19 = vld [vmem:[%s1360_s10] sm:$0xff]  ;;  %s449_s0 = sand.u32 1, %s1199_s21   ;;  %s704_s5 = sshll.u32 %s1121_s18, 8  ;;  %v433_v25 = vld [vmem:[%s1360_s10 + $0x8] sm:$0xff] }
 0x168   : > { %s485_s25 = sshll.u32 %s1352_s9, 4  ;;  %s1409_s8 = scalar_lea.hbm %s1507_s3, %s704_s5  ;;  %s1415_s25 = int_to_ptr.vmem [resolvable:$true] %s485_s25 }
 0x169   : > { %s501_s22 = sshll.u32 %s1360_s10, 4  ;;  %s1422_s12 = scalar_lea.hbm %s1508_s4, %s704_s5  ;;  %s1424_s22 = int_to_ptr.vmem [resolvable:$true] %s501_s22 }
 0x16a   : > { %s1426_s11 = scalar_lea.sflag [#allocation9], %s449_s0  ;;  %s1011_s24 = scalar_lea.vmem %s1415_s25, 256 }
 0x16b   : > { %p1012_p6 = scmp.ne.s32.totalorder %s1415_s25, %s1011_s24  ;;  %s1139_s7 = smov [#allocation8]  }
 0x16c   : > { %s1015_s14 = sshll.u32 %s1139_s7, 4  ;;  %s1016_s14 = int_to_ptr.vmem [resolvable:$false] %s1015_s14 }
 0x16d   : > { %p1013_p7 = pnand %p1012_p6, %p1524_p2  ;;  %s1017_s13 = scalar_lea.vmem %s1016_s14, 512 }
 0x16e   : > { %p1018_p11 = scmp.lt.s32.totalorder %s1415_s25, %s1016_s14  ;;  %p1019_p5 = scmp.lt.s32.totalorder %s1017_s13, %s1011_s24 }
 0x16f   : > { %p1014_p9 = pneg %p1013_p7 }
 0x170   : > { %p1020_p10 = por %p1019_p5, %p1018_p11 }
 0x172   : > { %p1021_p1 = pnand %p1020_p10, %p1014_p9 }
 0x1df   : > { %v424_v18 = vpop.xlane.xlu0 %423 }
 0x1e0   : > { %v427_v20 = vadd.f32 %v424_v18, %v421_v17 }
 0x1e1   : > { %v437_v21 = vpop.xlane.xlu1 %436 }
 0x1e2   : > { %430 = vst.msk [vmem:[%s1352_s9] sm:$0xff] %vm295_vm0, %v427_v20  ;;  %v440_v23 = vadd.f32 %v437_v21, %v432_v19 }
 0x1e3   : > { %v426_v24 = vpop.xlane.xlu0 %425 }
 0x1e4   : > { %442 = vst.msk [vmem:[%s1360_s10] sm:$0xff] %vm295_vm0, %v440_v23  ;;  %v428_v26 = vadd.f32 %v426_v24, %v422_v22 }
 0x1e5   : > { %v439_v27 = vpop.xlane.xlu1 %438 }
 0x1e6   : > { %431 = vst.msk [vmem:[%s1352_s9 + $0x8] sm:$0xff] %vm295_vm0, %v428_v26  ;;  %v441_v28 = vadd.f32 %v439_v27, %v433_v25 }
 0x1e7   : > { %1024 = shalt.err (!%p1021_p1)
}
 0x1e8   : > { %s1025_s9 = scalar_lea.hbm %s1409_s8, 256  ;;  %s1029_s5 = scalar_lea.hbm %s1507_s3, 1024 }
 0x1e9   : > { %p1026_p3 = scmp.ne.s32.totalorder %s1409_s8, %s1025_s9  ;;  %p1030_p13 = scmp.lt.u32.totalorder %s1409_s8, %s1507_s3 }
 0x1ea   : > { %p1031_p0 = scmp.lt.u32.totalorder %s1029_s5, %s1025_s9  ;;  %p1033_p6 = scmp.lt.u32.totalorder %s1025_s9, %s1409_s8 }
 0x1eb   : > { %p1027_p4 = pnand %p1026_p3, %p1524_p2 }
 0x1ec   : > { %p1032_p12 = por %p1031_p0, %p1030_p13 }
 0x1ed   : > { %p1028_p8 = pneg %p1027_p4 }
 0x1ee   : > { %p1034_p7 = por %p1033_p6, %p1032_p12 }
 0x1f0   : > { %p1035_p9 = pnand %p1034_p7, %p1028_p8 }
 0x1f2   : > { %1038 = shalt.err (!%p1035_p9)
}
 0x1f3   : > { %s1140_s18 = smov 128   ;;  %s1141_s21 = smov 8   ;;  %443 = vst.msk [vmem:[%s1360_s10 + $0x8] sm:$0xff] %vm295_vm0, %v441_v28 }
 0x1f4   : > { %844 = dma.vmem_to_hbm [thread:$0]  (%p1524_p2), %s1415_s25, 256, %s1409_s8, %s1426_s11, %s1140_s18, %s1140_s18, %s1141_s21  }
 0x1f5   : > { %s1039_s24 = scalar_lea.vmem %s1424_s22, 256  ;;  %s1142_s7 = smov [#allocation10]  }
 0x1f6   : > { %p1040_p11 = scmp.ne.s32.totalorder %s1424_s22, %s1039_s24  ;;  %s1043_s14 = sshll.u32 %s1142_s7, 4  ;;  %s1044_s14 = int_to_ptr.vmem [resolvable:$false] %s1043_s14 }
 0x1f7   : > { %s1045_s13 = scalar_lea.vmem %s1044_s14, 512  ;;  %p1046_p1 = scmp.lt.s32.totalorder %s1424_s22, %s1044_s14 }
 0x1f8   : > { %p1041_p5 = pnand %p1040_p11, %p1524_p2  ;;  %p1047_p3 = scmp.lt.s32.totalorder %s1045_s13, %s1039_s24 }
 0x1fa   : > { %p1042_p10 = pneg %p1041_p5  ;;  %p1048_p4 = por %p1047_p3, %p1046_p1 }
 0x1fc   : > { %p1049_p8 = pnand %p1048_p4, %p1042_p10 }
 0x1fe   : > { %1052 = shalt.err (!%p1049_p8)
}
 0x1ff   : > { %s1053_s10 = scalar_lea.hbm %s1422_s12, 256  ;;  %s1057_s9 = scalar_lea.hbm %s1508_s4, 1024 }
 0x200   : > { %p1054_p13 = scmp.ne.s32.totalorder %s1422_s12, %s1053_s10  ;;  %p1058_p6 = scmp.lt.u32.totalorder %s1422_s12, %s1508_s4 }
 0x201   : > { %p1059_p7 = scmp.lt.u32.totalorder %s1057_s9, %s1053_s10  ;;  %p1061_p11 = scmp.lt.u32.totalorder %s1053_s10, %s1422_s12 }
 0x202   : > { %p1055_p0 = pnand %p1054_p13, %p1524_p2 }
 0x203   : > { %p1060_p9 = por %p1059_p7, %p1058_p6 }
 0x204   : > { %p1056_p12 = pneg %p1055_p0 }
 0x205   : > { %p1062_p5 = por %p1061_p11, %p1060_p9 }
 0x207   : > { %p1063_p10 = pnand %p1062_p5, %p1056_p12 }
 0x209   : > { %1066 = shalt.err (!%p1063_p10)
}
 0x20a   : > { %845 = dma.vmem_to_hbm [thread:$0]  (%p1524_p2), %s1424_s22, 256, %s1422_s12, %s1426_s11, %s1140_s18, %s1140_s18, %s1141_s21  }
 0x20b PF: > { %p867_p1 = scmp.ge.s32.totalorder %s1129_s20, 2  ;;  %s516_s5 = sand.u32 1, %s1109_s15  }
 0x20c   : > { %p1525_p3 = scmp.ne.s32.totalorder %s1517_s30, 0  ;;  %s517_s27 = scalar_lea.sflag [#allocation4], %s516_s5 }
 0x20e   : > { %p857_p4 = pnand %p867_p1, %p1525_p3 }
 0x210   : > { %1100 = dma.done.wait (!%p857_p4), %s517_s27, 128  }
 0x211   : > { %1102 = vsyncadd (!%p857_p4), %s517_s27, 4294967168  ;;  %s1526_s28 = sadd.s32 4294967294, %s1129_s20  }
 0x212   : > { %s525_s6 = sand.u32 1, %s1526_s28  }
 0x213   : > { %s526_s24 = scalar_lea.sflag [#allocation9], %s525_s6 }
 0x214   : > { %1104 = dma.done.wait (!%p857_p4), %s526_s24, 512  }
 0x215   : > { %1106 = vsyncadd (!%p857_p4), %s526_s24, 4294966784  ;;  %s27_s20 = sadd.s32 1, %s1129_s20   ;;  %s1527_s15 = smov %s1113_s16 }
 0x216   : > { %p24_p2 = scmp.ge.s32.totalorder %s27_s20, 6   ;;  %s1528_s16 = smov %s1117_s17 }
 0x217   : > { %s1529_s17 = smov %s1230_s29  ;;  %s1530_s18 = smov %s1125_s19 }
 0x218   : > { %s1531_s19 = smov %s1533_s23  ;;  %26 = sbr.rel (!%p24_p2) target bundleno = 12 (0xc), region = 122 }
 0x21f   :  { %540 = vsyncpa [#allocation3], 1 }
 0x220   :  { %542 = vsyncpa [#allocation3 + $0x1], 1 }
 0x221   :  { %543 = vsyncpa [#allocation6], 1 }
 0x222   :  { %545 = vsyncpa [#allocation6 + $0x1], 1 }
 0x223   :  { %546 = vsyncpa [#allocation4], 1 }
 0x224   :  { %548 = vsyncpa [#allocation4 + $0x1], 1 }
 0x225   :  { %549 = vsyncpa [#allocation9], 1 }
 0x226   :  { %551 = vsyncpa [#allocation9 + $0x1], 1 }

// kernel: generator_forward.8
= control target key start
LH: loop header
LB: loop body
LE: loop exit
PB: predicated region body
PF: predicated region fallthrough
CT: control target
= control target key end

     0   :  { %10 = vsyncpa [#allocation3], 0  ;;  %s1507_s0 = inlined_call_operand.hbm [shape: bf16[4,8,64], index: 0, kind: input, shape index: {}]   ;;  %s1508_s1 = inlined_call_operand.hbm [shape: bf16[4,64,512], index: 1, kind: input, shape index: {}]   ;;  %s1509_s2 = inlined_call_operand.hbm [shape: bf16[4,8,512], index: 2, kind: output, shape index: {0}]   ;;  %s1510_s3 = inlined_call_operand.hbm [shape: f32[4,8,1], index: 3, kind: output, shape index: {1}]   ;;  %s1511_s4 = inlined_call_operand.hbm [shape: f32[4,8,1], index: 4, kind: output, shape index: {2}]  }
   0x1   :  { %12 = vsyncpa [#allocation3 + $0x1], 0 }
   0x2   :  { %13 = vsyncpa [#allocation6], 0 }
   0x3   :  { %15 = vsyncpa [#allocation6 + $0x1], 0 }
   0x4   :  { %16 = vsyncpa [#allocation4], 0 }
   0x5   :  { %18 = vsyncpa [#allocation4 + $0x1], 0 }
   0x6   :  { %19 = vsyncpa [#allocation9], 0 }
   0x7   :  { %21 = vsyncpa [#allocation9 + $0x1], 0  ;;  %s1179_s15 = smov 0   ;;  %s1181_s16 = smov 0  }
   0x8   :  { %s1183_s17 = smov 0   ;;  %s1185_s18 = smov 0  }
   0x9   :  { %s1187_s19 = smov 0   ;;  %s1189_s20 = smov 0  }
   0xa LB: > { %s1210_s21 = sadd.s32 4294967295, %s1144_s20   ;;  %s1513_s22 = sadd.s32 4294967294, %s1144_s20   ;;  %s1144_s20 = sphi %s1189_s20, %s27_s20   ;;  %s1140_s19 = sphi %s1187_s19, %s1531_s19   ;;  %s1136_s18 = sphi %s1185_s18, %s1530_s18   ;;  %s1132_s17 = sphi %s1183_s17, %s1529_s17   ;;  %s1128_s16 = sphi %s1181_s16, %s1528_s16   ;;  %s1124_s15 = sphi %s1179_s15, %s1527_s15  }
   0xb   : > { %s39_s23 = sadd.s32 1, %s1140_s19  ;;  %s46_s24 = sadd.s32 1, %s1132_s17 }
   0xc   : > { %p41_p0 = scmp.ge.s32.totalorder %s39_s23, 4  ;;  %p53_p1 = scmp.ne.s32.totalorder %s1132_s17, %s1128_s16 }
   0xd   : > { %p54_p2 = scmp.eq.s32.totalorder %s1144_s20, 0  ;;  %p59_p3 = scmp.ne.s32.totalorder %s1128_s16, %s1124_s15 }
   0xe   : > { %s1533_s23 = smov (%p41_p0, %s39_s23), 0  ;;  %p60_p5 = scmp.eq.s32.totalorder %s1210_s21, 0 }
   0xf   : > { %p1222_p4 = por %p54_p2, %p53_p1  ;;  %s43_s26 = ssub.s32 %s1140_s19, %s1533_s23 }
  0x10   : > { %p113_p6 = scmp.eq.s32.totalorder %s1210_s21, 3  ;;  %p44_p7 = scmp.eq.s32.totalorder %s43_s26, 0 }
  0x11   : > { %p1230_p8 = por %p60_p5, %p59_p3  ;;  %p119_p10 = scmp.eq.s32.totalorder %s1513_s22, 3 }
  0x12   : > { %p1234_p9 = por %p113_p6, %p53_p1  ;;  %p861_p12 = scmp.lt.s32.totalorder %s1144_s20, 4 }
  0x13   : > { %s1516_s27 = scalar_select %p1230_p8, 1, 0 }
  0x14   : > { %s1517_s28 = scalar_select %p1234_p9, 1, 0 }
  0x15   : > { %s1241_s29 = scalar_select %p44_p7, %s1132_s17, %s46_s24  }
  0x16   : > { %p1243_p11 = por %p119_p10, %p59_p3  ;;  %s1249_s5 = sand.u32 1, %s1132_s17  }
  0x17   : > { %s758_s6 = sshll.u32 %s1249_s5, 2  ;;  %s759_s7 = sshll.u32 %s1140_s19, 6 }
  0x18   : > { %s1518_s30 = scalar_select %p1243_p11, 1, 0 }
  0x19   : > { %s1256_s10 = scalar_lea.hbm %s1507_s0, %s759_s7  ;;  %s195_s11 = scalar_lea.vmem [#allocation2], %s758_s6 }
  0x1a   : > { %s202_s12 = sshll.u32 %s195_s11, 4  ;;  %p1262_p13 = pnand %p861_p12, %p1222_p4  ;;  %s1258_s12 = int_to_ptr.vmem [resolvable:$true] %s202_s12 }
  0x1b   : > { %s192_s14 = scalar_lea.sflag [#allocation3], %s1249_s5  ;;  %s938_s24 = scalar_lea.hbm %s1256_s10, 64 }
  0x1c   : > { %p939_p2 = scmp.ne.s32.totalorder %s1256_s10, %s938_s24  ;;  %p940_p3 = pneg %p1262_p13 }
  0x1d   : > { %s943_s25 = scalar_lea.hbm %s1507_s0, 256  ;;  %p944_p4 = scmp.lt.u32.totalorder %s1256_s10, %s1507_s0 }
  0x1e   : > { %p941_p5 = pnand %p940_p3, %p939_p2  ;;  %p945_p7 = scmp.lt.u32.totalorder %s943_s25, %s938_s24 }
  0x1f   : > { %p947_p12 = scmp.lt.u32.totalorder %s938_s24, %s1256_s10 }
  0x20   : > { %p942_p6 = pneg %p941_p5  ;;  %p946_p10 = por %p945_p7, %p944_p4 }
  0x22   : > { %p948_p0 = por %p947_p12, %p946_p10 }
  0x24   : > { %p949_p1 = pnand %p948_p0, %p942_p6 }
  0x26   : > { %952 = shalt.err (!%p949_p1)
}
  0x27   : > { %s953_s9 = scalar_lea.vmem %s1258_s12, 64  ;;  %s1146_s11 = smov [#allocation2]  }
  0x28   : > { %p954_p2 = scmp.ne.s32.totalorder %s1258_s12, %s953_s9  ;;  %s958_s26 = sshll.u32 %s1146_s11, 4  ;;  %s959_s26 = int_to_ptr.vmem [resolvable:$false] %s958_s26 }
  0x29   : > { %s960_s6 = scalar_lea.vmem %s959_s26, 128  ;;  %p961_p9 = scmp.lt.s32.totalorder %s1258_s12, %s959_s26 }
  0x2a   : > { %p956_p5 = pnand %p954_p2, %p940_p3  ;;  %p962_p4 = scmp.lt.s32.totalorder %s960_s6, %s953_s9 }
  0x2c   : > { %p957_p11 = pneg %p956_p5  ;;  %p963_p7 = por %p962_p4, %p961_p9 }
  0x2e   : > { %p964_p10 = pnand %p963_p7, %p957_p11 }
  0x30   : > { %967 = shalt.err (!%p964_p10)
}
  0x31   : > { %847 = dma.hbm_to_vmem [thread:$0]  (!%p1262_p13), %s1256_s10, 64, %s1258_s12, %s192_s14  }
  0x32   : > { %p1520_p0 = scmp.lt.s32.totalorder %s1144_s20, 5  ;;  %p1521_p1 = scmp.ge.s32.totalorder %s1144_s20, 1 }
  0x33   : > { %s760_s25 = sshll.u32 %s1249_s5, 7  ;;  %s782_s7 = sshll.u32 %s1140_s19, 11 }
  0x34   : > { %p1298_p6 = pnand %p1521_p1, %p1520_p0  ;;  %s1307_s11 = scalar_lea.hbm %s1508_s1, %s782_s7 }
  0x35   : > { %s213_s26 = scalar_lea.vmem [#allocation5], %s760_s25  ;;  %s210_s10 = scalar_lea.sflag [#allocation6], %s1249_s5 }
  0x36   : > { %s222_s6 = sshll.u32 %s213_s26, 4  ;;  %s968_s12 = scalar_lea.hbm %s1307_s11, 2048  ;;  %s1309_s6 = int_to_ptr.vmem [resolvable:$true] %s222_s6 }
  0x37   : > { %p969_p9 = scmp.ne.s32.totalorder %s1307_s11, %s968_s12  ;;  %s973_s7 = scalar_lea.hbm %s1508_s1, 8192 }
  0x38   : > { %p974_p2 = scmp.lt.u32.totalorder %s1307_s11, %s1508_s1  ;;  %p975_p5 = scmp.lt.u32.totalorder %s973_s7, %s968_s12 }
  0x39   : > { %p971_p11 = pnand %p969_p9, %p940_p3  ;;  %p977_p7 = scmp.lt.u32.totalorder %s968_s12, %s1307_s11 }
  0x3a   : > { %p976_p4 = por %p975_p5, %p974_p2 }
  0x3b   : > { %p972_p12 = pneg %p971_p11 }
  0x3c   : > { %p978_p10 = por %p977_p7, %p976_p4 }
  0x3e   : > { %p979_p0 = pnand %p978_p10, %p972_p12 }
  0x40   : > { %982 = shalt.err (!%p979_p0)
}
  0x41   : > { %s983_s25 = scalar_lea.vmem %s1309_s6, 2048  ;;  %s1147_s22 = smov [#allocation5]  }
  0x42   : > { %p984_p1 = scmp.ne.s32.totalorder %s1309_s6, %s983_s25  ;;  %s988_s26 = sshll.u32 %s1147_s22, 4  ;;  %s989_s26 = int_to_ptr.vmem [resolvable:$false] %s988_s26 }
  0x43   : > { %s990_s14 = scalar_lea.vmem %s989_s26, 4096  ;;  %p991_p8 = scmp.lt.s32.totalorder %s1309_s6, %s989_s26 }
  0x44   : > { %p986_p9 = pnand %p984_p1, %p940_p3  ;;  %p992_p2 = scmp.lt.s32.totalorder %s990_s14, %s983_s25 }
  0x46   : > { %p987_p11 = pneg %p986_p9  ;;  %p993_p5 = por %p992_p2, %p991_p8 }
  0x48   : > { %p994_p4 = pnand %p993_p5, %p987_p11 }
  0x4a   : > { %997 = shalt.err (!%p994_p4)
}
  0x4b   : > { %s1148_s12 = smov 256   ;;  %s1149_s7 = smov 16  }
  0x4c   : > { %850 = dma.hbm_to_vmem [thread:$0]  (!%p1262_p13), %s1307_s11, 2048, %s1309_s6, %s210_s10, %s1148_s12, %s1148_s12, %s1149_s7  }
  0x4d   : > { %234 = sbr.rel (%p1298_p6) target bundleno = 507 (0x1fb), region = 28  ;;  %s1340_s8 = sand.u32 (!%p1298_p6), 1, %s1128_s16  }
  0x4e   : > { %s764_s9 = sshll.u32 (!%p1298_p6), %s1340_s8, 2  ;;  %s237_s25 = scalar_lea.sflag (!%p1298_p6), [#allocation3], %s1340_s8 }
  0x4f   : > { %s1344_s22 = scalar_lea.vmem (!%p1298_p6), [#allocation2], %s764_s9  ;;  %p1523_p8 = scmp.ne.s32.totalorder (!%p1298_p6), %s1516_s27, 0 }
  0x54   : > { %1107 = dma.done.wait (%p1523_p8), %s237_s25, 64  }
  0x55   : > { %1109 = vsyncadd (%p1523_p8), %s237_s25, 4294967232  ;;  %s765_s5 = sshll.u32 %s1340_s8, 7  ;;  %s246_s13 = scalar_lea.sflag [#allocation6], %s1340_s8 }
  0x56   : > { %s1352_s24 = scalar_lea.vmem [#allocation5], %s765_s5 }
  0x57   : > { %1111 = dma.done.wait (%p1523_p8), %s246_s13, 2048  }
  0x58   : > { %1113 = vsyncadd (%p1523_p8), %s246_s13, 4294965248  ;;  %v1150_v0 = vmov 0.0   ;;  %v914_v1 = vld [vmem:[%s1352_s24 + $0x4] ss:$16 sps:$4 sm:$0xff]   ;;  %v916_v2 = vld [vmem:[%s1352_s24] ss:$16 sps:$4 sm:$0xff]  }
  0x59   : > { %416 = vmatprep.mubr.f32.mxu0 %v1150_v0  ;;  %487 = vmatprep.mubr.f32.mxu1 %v1150_v0  ;;  %v917_v3 = vld [vmem:[%s1352_s24 + $0xc] ss:$16 sps:$4 sm:$0xff]   ;;  %v919_v4 = vld [vmem:[%s1352_s24 + $0x8] ss:$16 sps:$4 sm:$0xff]   ;;  %v920_v5 = vld [vmem:[%s1352_s24 + $0x24] ss:$16 sps:$4 sm:$0xff]  }
  0x5a   : > { %787 = vmatprep.subr.bf16.mxu0 %v914_v1  ;;  %v922_v6 = vld [vmem:[%s1352_s24 + $0x20] ss:$16 sps:$4 sm:$0xff]   ;;  %803 = vmatprep.subr.bf16.mxu1 %v917_v3  ;;  %v923_v7 = vld [vmem:[%s1352_s24 + $0x2c] ss:$16 sps:$4 sm:$0xff]   ;;  %v925_v8 = vld [vmem:[%s1352_s24 + $0x28] ss:$16 sps:$4 sm:$0xff]  }
  0x5b   : > { %789 = vmatpush1.bf16.msra.mxu0 %v916_v2  ;;  %805 = vmatpush1.bf16.msra.mxu1 %v919_v4  ;;  %v926_v9 = vld [vmem:[%s1352_s24 + $0x44] ss:$16 sps:$4 sm:$0xff]   ;;  %v928_v10 = vld [vmem:[%s1352_s24 + $0x40] ss:$16 sps:$4 sm:$0xff]   ;;  %v929_v11 = vld [vmem:[%s1352_s24 + $0x4c] ss:$16 sps:$4 sm:$0xff]  }
  0x5c   : > { %791 = vmatprep.subr.bf16.mxu0 %v920_v5  ;;  %807 = vmatprep.subr.bf16.mxu1 %v923_v7  ;;  %v932_v12 = vld [vmem:[%s1352_s24 + $0x64] ss:$16 sps:$4 sm:$0xff]   ;;  %v931_v13 = vld [vmem:[%s1352_s24 + $0x48] ss:$16 sps:$4 sm:$0xff]   ;;  %v935_v14 = vld [vmem:[%s1352_s24 + $0x6c] ss:$16 sps:$4 sm:$0xff]  }
  0x5d   : > { %v934_v15 = vld [vmem:[%s1352_s24 + $0x60] ss:$16 sps:$4 sm:$0xff]   ;;  %v346_v16 = vld [vmem:[%s1344_s22] sm:$0xf]  ;;  %vm348_vm0 = vcmask 523264   ;;  %s767_s27 = sshll.u32 %s1340_s8, 3 }
  0x5e   : > { %v937_v17 = vld [vmem:[%s1352_s24 + $0x68] ss:$16 sps:$4 sm:$0xff]   ;;  %v347_v18 = vunpack.c.l.bf16 %v346_v16  ;;  %vm295_vm1 = vcmask 7168   ;;  %s1378_s11 = scalar_lea.vmem [#allocation8], %s767_s27  ;;  %s766_s6 = sshll.u32 %s1340_s8, 4 }
  0x5f   : > { %793 = vmatpush1.bf16.msra.mxu0 %v922_v6  ;;  %809 = vmatpush1.bf16.msra.mxu1 %v925_v8  ;;  %296 = vst.msk [vmem:[%s1378_s11] sm:$0xff] %vm295_vm1, %v1150_v0  ;;  %s274_s10 = scalar_lea.vmem [#allocation7], %s766_s6  ;;  %s1384_s26 = scalar_lea.vmem [#allocation10], %s767_s27 }
  0x60   : > { %795 = vmatprep.subr.bf16.mxu0 %v926_v9  ;;  %811 = vmatprep.subr.bf16.mxu1 %v929_v11  ;;  %297 = vst.msk [vmem:[%s1384_s26] sm:$0xff] %vm295_vm1, %v1150_v0  ;;  %s785_s14 = sshll.u32 %s1136_s18, 8  ;;  %s560_s12 = sshll.u32 %s274_s10, 4  ;;  %s561_s12 = int_to_ptr.vmem [resolvable:$true] %s560_s12 }
  0x61   : > { %s1393_s25 = scalar_lea.hbm %s1509_s2, %s785_s14  ;;  %s534_s22 = scalar_lea.sflag [#allocation4], %s1340_s8 }
  0x62   : > { %s998_s5 = scalar_lea.vmem %s561_s12, 256  ;;  %p1524_p3 = scmp.ne.s32.totalorder %s1517_s28, 0 }
  0x63   : > { %797 = vmatpush1.bf16.msra.mxu0 %v928_v10  ;;  %813 = vmatpush1.bf16.msra.mxu1 %v931_v13  ;;  %p999_p13 = scmp.ne.s32.totalorder %s561_s12, %s998_s5  ;;  %s1151_s13 = smov [#allocation7]  }
  0x64   : > { %799 = vmatprep.subr.bf16.mxu0 %v932_v12  ;;  %815 = vmatprep.subr.bf16.mxu1 %v935_v14  ;;  %s1002_s24 = sshll.u32 %s1151_s13, 4  ;;  %s1003_s24 = int_to_ptr.vmem [resolvable:$false] %s1002_s24 }
  0x65   : > { %p1000_p6 = pnand %p999_p13, %p1524_p3  ;;  %s1004_s27 = scalar_lea.vmem %s1003_s24, 512 }
  0x66   : > { %p1005_p7 = scmp.lt.s32.totalorder %s561_s12, %s1003_s24  ;;  %p1006_p10 = scmp.lt.s32.totalorder %s1004_s27, %s998_s5 }
  0x67   : > { %801 = vmatpush1.bf16.msra.mxu0 %v934_v15  ;;  %817 = vmatpush1.bf16.msra.mxu1 %v937_v17  ;;  %p1001_p12 = pneg %p1000_p6 }
  0x68   : > { %p1007_p0 = por %p1006_p10, %p1005_p7 }
  0x6a   : > { %769 = vmatmul.mubr.msk.f32.vlgmr.msra.gmra.mrb[0].mxu0 %vm348_vm0, %v347_v18  ;;  %770 = vmatmul.mubr.msk.f32.vlgmr.msra.gmra.mrb[0].mxu1 %vm348_vm0, %v347_v18  ;;  %p1008_p1 = pnand %p1007_p0, %p1001_p12 }
 0x13d   : > { %v418_v19 = vpop.f32.mrb[0].mxu0  ;;  %v489_v25 = vpop.f32.mrb[0].mxu1 }
 0x13e   : > { %v522_v20 = vmul.f32 %v418_v19, %v418_v19  ;;  %v420_v21 = vpop.f32.mrb[1].mxu0  ;;  %v524_v26 = vmul.f32 %v489_v25, %v489_v25  ;;  %v491_v27 = vpop.f32.mrb[1].mxu1 }
 0x13f   : > { %v783_v22 = vpack.c.bf16 %v420_v21, %v418_v19  ;;  %v513_v23 = vadd.f32 %v420_v21, %v418_v19  ;;  %v523_v24 = vmul.f32 %v420_v21, %v420_v21  ;;  %v784_v29 = vpack.c.bf16 %v491_v27, %v489_v25 }
 0x140   : > { %v525_v31 = vmul.f32 %v491_v27, %v491_v27 }
 0x141   : > { %510 = vst [vmem:[%s274_s10] sm:$0xff] %v783_v22  ;;  %v526_v28 = vadd.f32 %v523_v24, %v522_v20  ;;  %v514_v30 = vadd.f32 %v513_v23, %v489_v25  ;;  %511 = vst [vmem:[%s274_s10 + $0x8] sm:$0xff] %v784_v29 }
 0x143   : > { %v515_v32 = vadd.f32 %v514_v30, %v491_v27  ;;  %v527_v33 = vadd.f32 %v526_v28, %v524_v26 }
 0x145   : > { %516 = vadd.xlane.f32.xlu0 %v515_v32  ;;  %v528_v34 = vadd.f32 %v527_v33, %v525_v31 }
 0x149   : > { %529 = vadd.xlane.f32.xlu0 %v528_v34 }
 0x14a   : > { %1011 = shalt.err (!%p1008_p1)
}
 0x14b   : > { %s1012_s8 = scalar_lea.hbm %s1393_s25, 256  ;;  %s1016_s14 = scalar_lea.hbm %s1509_s2, 1024 }
 0x14c   : > { %p1013_p9 = scmp.ne.s32.totalorder %s1393_s25, %s1012_s8  ;;  %p1017_p5 = scmp.lt.u32.totalorder %s1393_s25, %s1509_s2 }
 0x14d   : > { %p1018_p4 = scmp.lt.u32.totalorder %s1016_s14, %s1012_s8  ;;  %p1020_p13 = scmp.lt.u32.totalorder %s1012_s8, %s1393_s25 }
 0x14e   : > { %p1014_p11 = pnand %p1013_p9, %p1524_p3 }
 0x14f   : > { %p1019_p8 = por %p1018_p4, %p1017_p5 }
 0x150   : > { %p1015_p2 = pneg %p1014_p11 }
 0x151   : > { %p1021_p6 = por %p1020_p13, %p1019_p8 }
 0x153   : > { %p1022_p12 = pnand %p1021_p6, %p1015_p2 }
 0x155   : > { %1025 = shalt.err (!%p1022_p12)
}
 0x156   : > { %838 = dma.vmem_to_hbm [thread:$0]  (%p1524_p3), %s561_s12, 256, %s1393_s25, %s534_s22   ;;  %v512_v35 = vld [vmem:[%s1378_s11] sm:$0xff]  ;;  %v521_v38 = vld [vmem:[%s1384_s26] sm:$0xff] }
 0x157   : > { %s538_s5 = sand.u32 1, %s1210_s21   ;;  %s778_s13 = sshll.u32 %s1136_s18, 7 }
 0x158   : > { %s573_s24 = sshll.u32 %s1378_s11, 4  ;;  %s1422_s6 = scalar_lea.hbm %s1510_s3, %s778_s13  ;;  %s1424_s24 = int_to_ptr.vmem [resolvable:$true] %s573_s24 }
 0x159   : > { %s586_s12 = sshll.u32 %s1384_s26, 4  ;;  %s1430_s21 = scalar_lea.sflag [#allocation9], %s538_s5  ;;  %s587_s12 = int_to_ptr.vmem [resolvable:$true] %s586_s12 }
 0x15a   : > { %s1026_s25 = scalar_lea.vmem %s1424_s24, 128  ;;  %s1152_s22 = smov [#allocation8]  }
 0x15b   : > { %p1027_p7 = scmp.ne.s32.totalorder %s1424_s24, %s1026_s25  ;;  %s1030_s10 = sshll.u32 %s1152_s22, 4  ;;  %s1031_s10 = int_to_ptr.vmem [resolvable:$false] %s1030_s10 }
 0x15c   : > { %s1032_s14 = scalar_lea.vmem %s1031_s10, 256  ;;  %p1033_p1 = scmp.lt.s32.totalorder %s1424_s24, %s1031_s10 }
 0x15d   : > { %p1028_p10 = pnand %p1027_p7, %p1524_p3  ;;  %p1034_p9 = scmp.lt.s32.totalorder %s1032_s14, %s1026_s25 }
 0x15f   : > { %p1029_p0 = pneg %p1028_p10  ;;  %p1035_p11 = por %p1034_p9, %p1033_p1 }
 0x161   : > { %p1036_p2 = pnand %p1035_p11, %p1029_p0 }
 0x1d2   : > { %v517_v36 = vpop.xlane.xlu0 %516 }
 0x1d3   : > { %v518_v37 = vadd.f32 %v517_v36, %v512_v35 }
 0x1d5   : > { %520 = vst.msk [vmem:[%s1378_s11] sm:$0xff] %vm295_vm1, %v518_v37 }
 0x1d6   : > { %v530_v39 = vpop.xlane.xlu0 %529 }
 0x1d7   : > { %1039 = shalt.err (!%p1036_p2)
}
 0x1d8   : > { %s1040_s11 = scalar_lea.hbm %s1422_s6, 128  ;;  %s1044_s5 = scalar_lea.hbm %s1510_s3, 512 }
 0x1d9   : > { %p1041_p5 = scmp.ne.s32.totalorder %s1422_s6, %s1040_s11  ;;  %p1045_p13 = scmp.lt.u32.totalorder %s1422_s6, %s1510_s3 }
 0x1da   : > { %p1046_p6 = scmp.lt.u32.totalorder %s1044_s5, %s1040_s11  ;;  %p1048_p7 = scmp.lt.u32.totalorder %s1040_s11, %s1422_s6 }
 0x1db   : > { %p1042_p4 = pnand %p1041_p5, %p1524_p3 }
 0x1dc   : > { %p1047_p12 = por %p1046_p6, %p1045_p13 }
 0x1dd   : > { %p1043_p8 = pneg %p1042_p4 }
 0x1de   : > { %p1049_p10 = por %p1048_p7, %p1047_p12 }
 0x1e0   : > { %p1050_p0 = pnand %p1049_p10, %p1043_p8 }
 0x1e2   : > { %1053 = shalt.err (!%p1050_p0)
}
 0x1e3   : > { %839 = dma.vmem_to_hbm [thread:$0]  (%p1524_p3), %s1424_s24, 128, %s1422_s6, %s1430_s21   ;;  %v531_v40 = vadd.f32 %v530_v39, %v521_v38 }
 0x1e4   : > { %s1459_s10 = scalar_lea.hbm %s1511_s4, %s778_s13  ;;  %s1054_s14 = scalar_lea.vmem %s587_s12, 128 }
 0x1e5   : > { %532 = vst.msk [vmem:[%s1384_s26] sm:$0xff] %vm295_vm1, %v531_v40  ;;  %p1055_p1 = scmp.ne.s32.totalorder %s587_s12, %s1054_s14  ;;  %s1153_s11 = smov [#allocation10]  }
 0x1e6   : > { %s1058_s7 = sshll.u32 %s1153_s11, 4  ;;  %s1059_s7 = int_to_ptr.vmem [resolvable:$false] %s1058_s7 }
 0x1e7   : > { %p1056_p9 = pnand %p1055_p1, %p1524_p3  ;;  %s1060_s24 = scalar_lea.vmem %s1059_s7, 256 }
 0x1e8   : > { %p1061_p2 = scmp.lt.s32.totalorder %s587_s12, %s1059_s7  ;;  %p1062_p5 = scmp.lt.s32.totalorder %s1060_s24, %s1054_s14 }
 0x1e9   : > { %p1057_p11 = pneg %p1056_p9 }
 0x1ea   : > { %p1063_p4 = por %p1062_p5, %p1061_p2 }
 0x1ec   : > { %p1064_p8 = pnand %p1063_p4, %p1057_p11 }
 0x1ee   : > { %1067 = shalt.err (!%p1064_p8)
}
 0x1ef   : > { %s1068_s18 = scalar_lea.hbm %s1459_s10, 128  ;;  %s1072_s6 = scalar_lea.hbm %s1511_s4, 512 }
 0x1f0   : > { %p1069_p13 = scmp.ne.s32.totalorder %s1459_s10, %s1068_s18  ;;  %p1073_p7 = scmp.lt.u32.totalorder %s1459_s10, %s1511_s4 }
 0x1f1   : > { %p1074_p10 = scmp.lt.u32.totalorder %s1072_s6, %s1068_s18  ;;  %p1076_p1 = scmp.lt.u32.totalorder %s1068_s18, %s1459_s10 }
 0x1f2   : > { %p1070_p6 = pnand %p1069_p13, %p1524_p3 }
 0x1f3   : > { %p1075_p0 = por %p1074_p10, %p1073_p7 }
 0x1f4   : > { %p1071_p12 = pneg %p1070_p6 }
 0x1f5   : > { %p1077_p9 = por %p1076_p1, %p1075_p0 }
 0x1f7   : > { %p1078_p11 = pnand %p1077_p9, %p1071_p12 }
 0x1f9   : > { %1081 = shalt.err (!%p1078_p11)
}
 0x1fa   : > { %840 = dma.vmem_to_hbm [thread:$0]  (%p1524_p3), %s587_s12, 128, %s1459_s10, %s1430_s21  }
 0x1fb PF: > { %p862_p2 = scmp.ge.s32.totalorder %s1144_s20, 2  ;;  %s598_s27 = sand.u32 1, %s1124_s15  }
 0x1fc   : > { %p1525_p5 = scmp.ne.s32.totalorder %s1518_s30, 0  ;;  %s599_s8 = scalar_lea.sflag [#allocation4], %s598_s27 }
 0x1fe   : > { %p852_p4 = pnand %p862_p2, %p1525_p5 }
 0x200   : > { %1115 = dma.done.wait (!%p852_p4), %s599_s8, 256  }
 0x201   : > { %1117 = vsyncadd (!%p852_p4), %s599_s8, 4294967040  ;;  %s1526_s25 = sadd.s32 4294967294, %s1144_s20  }
 0x202   : > { %s607_s22 = sand.u32 1, %s1526_s25  }
 0x203   : > { %s608_s14 = scalar_lea.sflag [#allocation9], %s607_s22 }
 0x204   : > { %1119 = dma.done.wait (!%p852_p4), %s608_s14, 256  }
 0x205   : > { %1121 = vsyncadd (!%p852_p4), %s608_s14, 4294967040  ;;  %s27_s20 = sadd.s32 1, %s1144_s20   ;;  %s1527_s15 = smov %s1128_s16 }
 0x206   : > { %p24_p3 = scmp.ge.s32.totalorder %s27_s20, 6   ;;  %s1528_s16 = smov %s1132_s17 }
 0x207   : > { %s1529_s17 = smov %s1241_s29  ;;  %s1530_s18 = smov %s1140_s19 }
 0x208   : > { %s1531_s19 = smov %s1533_s23  ;;  %26 = sbr.rel (!%p24_p3) target bundleno = 10 (0xa), region = 122 }
 0x20f   :  { %622 = vsyncpa [#allocation3], 1 }
 0x210   :  { %624 = vsyncpa [#allocation3 + $0x1], 1 }
 0x211   :  { %625 = vsyncpa [#allocation6], 1 }
 0x212   :  { %627 = vsyncpa [#allocation6 + $0x1], 1 }
 0x213   :  { %628 = vsyncpa [#allocation4], 1 }
 0x214   :  { %630 = vsyncpa [#allocation4 + $0x1], 1 }
 0x215   :  { %631 = vsyncpa [#allocation9], 1 }
 0x216   :  { %633 = vsyncpa [#allocation9 + $0x1], 1 }

// kernel: generator_forward.9
= control target key start
LH: loop header
LB: loop body
LE: loop exit
PB: predicated region body
PF: predicated region fallthrough
CT: control target
= control target key end

     0   :  { %7 = vsyncpa [#allocation3], 0  ;;  %s1760_s0 = inlined_call_operand.hbm [shape: bf16[4,3,32], index: 0, kind: input, shape index: {}]   ;;  %s1761_s1 = inlined_call_operand.hbm [shape: bf16[4,32,2048], index: 1, kind: input, shape index: {}]   ;;  %s1762_s2 = inlined_call_operand.hbm [shape: f32[4,3,2048], index: 2, kind: output, shape index: {}]  }
   0x1   :  { %9 = vsyncpa [#allocation3 + $0x1], 0 }
   0x2   :  { %10 = vsyncpa [#allocation6], 0 }
   0x3   :  { %12 = vsyncpa [#allocation6 + $0x1], 0 }
   0x4   :  { %13 = vsyncpa [#allocation4], 0 }
   0x5   :  { %15 = vsyncpa [#allocation4 + $0x1], 0  ;;  %s1464_s9 = smov 0   ;;  %s1466_s10 = smov 0  }
   0x6   :  { %s1468_s11 = smov 0   ;;  %s1470_s12 = smov 0  }
   0x7   :  { %s1472_s13 = smov 0   ;;  %s1474_s14 = smov 0  }
   0x8 LB: > { %s1069_s15 = sadd.s32 4294967295, %s1441_s14   ;;  %s1070_s16 = sadd.s32 4294967294, %s1441_s14   ;;  %s1441_s14 = sphi %s1474_s14, %s21_s14   ;;  %s1437_s13 = sphi %s1472_s13, %s1780_s13   ;;  %s1433_s12 = sphi %s1470_s12, %s1779_s12   ;;  %s1429_s11 = sphi %s1468_s11, %s1778_s11   ;;  %s1425_s10 = sphi %s1466_s10, %s1777_s10   ;;  %s1421_s9 = sphi %s1464_s9, %s1776_s9  }
   0x9   : > { %s33_s17 = sadd.s32 1, %s1437_s13  ;;  %s40_s18 = sadd.s32 1, %s1429_s11 }
   0xa   : > { %p35_p0 = scmp.ge.s32.totalorder %s33_s17, 4  ;;  %p47_p1 = scmp.ne.s32.totalorder %s1429_s11, %s1425_s10 }
   0xb   : > { %p48_p2 = scmp.eq.s32.totalorder %s1441_s14, 0  ;;  %p53_p3 = scmp.ne.s32.totalorder %s1425_s10, %s1421_s9 }
   0xc   : > { %s1782_s17 = smov (%p35_p0, %s33_s17), 0  ;;  %p54_p5 = scmp.eq.s32.totalorder %s1069_s15, 0 }
   0xd   : > { %p1505_p4 = por %p48_p2, %p47_p1  ;;  %s37_s20 = ssub.s32 %s1437_s13, %s1782_s17 }
   0xe   : > { %p107_p6 = scmp.eq.s32.totalorder %s1069_s15, 3  ;;  %p38_p7 = scmp.eq.s32.totalorder %s37_s20, 0 }
   0xf   : > { %p1511_p8 = por %p54_p5, %p53_p3  ;;  %p113_p10 = scmp.eq.s32.totalorder %s1070_s16, 3 }
  0x10   : > { %p1515_p9 = por %p107_p6, %p47_p1  ;;  %p1210_p12 = scmp.lt.s32.totalorder %s1441_s14, 4 }
  0x11   : > { %s1766_s21 = scalar_select %p1511_p8, 1, 0 }
  0x12   : > { %s1767_s22 = scalar_select %p1515_p9, 1, 0 }
  0x13   : > { %s1520_s23 = scalar_select %p38_p7, %s1429_s11, %s40_s18  }
  0x14   : > { %p1522_p11 = por %p113_p10, %p53_p3  ;;  %s1528_s25 = sand.u32 1, %s1429_s11  }
  0x15   : > { %s1073_s26 = sshll.u32 %s1528_s25, 1  ;;  %s1074_s27 = sshll.u32 %s1437_s13, 5 }
  0x16   : > { %s1768_s24 = scalar_select %p1522_p11, 1, 0 }
  0x17   : > { %s1535_s30 = scalar_lea.hbm %s1760_s0, %s1074_s27  ;;  %s137_s3 = scalar_lea.vmem [#allocation2], %s1073_s26 }
  0x18   : > { %s144_s4 = sshll.u32 %s137_s3, 4  ;;  %p1541_p13 = pnand %p1210_p12, %p1505_p4  ;;  %s1537_s4 = int_to_ptr.vmem [resolvable:$true] %s144_s4 }
  0x19   : > { %s134_s6 = scalar_lea.sflag [#allocation3], %s1528_s25  ;;  %s1295_s7 = scalar_lea.hbm %s1535_s30, 32 }
  0x1a   : > { %p1296_p2 = scmp.ne.s32.totalorder %s1535_s30, %s1295_s7  ;;  %p1297_p3 = pneg %p1541_p13 }
  0x1b   : > { %s1300_s16 = scalar_lea.hbm %s1760_s0, 128  ;;  %p1301_p4 = scmp.lt.u32.totalorder %s1535_s30, %s1760_s0 }
  0x1c   : > { %p1298_p5 = pnand %p1297_p3, %p1296_p2  ;;  %p1302_p7 = scmp.lt.u32.totalorder %s1300_s16, %s1295_s7 }
  0x1d   : > { %p1304_p12 = scmp.lt.u32.totalorder %s1295_s7, %s1535_s30 }
  0x1e   : > { %p1299_p6 = pneg %p1298_p5  ;;  %p1303_p10 = por %p1302_p7, %p1301_p4 }
  0x20   : > { %p1305_p0 = por %p1304_p12, %p1303_p10 }
  0x22   : > { %p1306_p1 = pnand %p1305_p0, %p1299_p6 }
  0x24   : > { %1309 = shalt.err (!%p1306_p1)
}
  0x25   : > { %s1310_s20 = scalar_lea.vmem %s1537_s4, 32  ;;  %s1443_s26 = smov [#allocation2]  }
  0x26   : > { %p1311_p2 = scmp.ne.s32.totalorder %s1537_s4, %s1310_s20  ;;  %s1315_s27 = sshll.u32 %s1443_s26, 4  ;;  %s1316_s27 = int_to_ptr.vmem [resolvable:$false] %s1315_s27 }
  0x27   : > { %s1317_s28 = scalar_lea.vmem %s1316_s27, 64  ;;  %p1318_p9 = scmp.lt.s32.totalorder %s1537_s4, %s1316_s27 }
  0x28   : > { %p1313_p5 = pnand %p1311_p2, %p1297_p3  ;;  %p1319_p4 = scmp.lt.s32.totalorder %s1317_s28, %s1310_s20 }
  0x2a   : > { %p1314_p11 = pneg %p1313_p5  ;;  %p1320_p7 = por %p1319_p4, %p1318_p9 }
  0x2c   : > { %p1321_p10 = pnand %p1320_p7, %p1314_p11 }
  0x2e   : > { %1324 = shalt.err (!%p1321_p10)
}
  0x2f   : > { %1202 = dma.hbm_to_vmem [thread:$0]  (!%p1541_p13), %s1535_s30, 32, %s1537_s4, %s134_s6  }
  0x30   : > { %p1770_p0 = scmp.lt.s32.totalorder %s1441_s14, 5  ;;  %p1771_p1 = scmp.ge.s32.totalorder %s1441_s14, 1 }
  0x31   : > { %s1075_s3 = sshll.u32 %s1528_s25, 8  ;;  %s1095_s7 = sshll.u32 %s1437_s13, 12 }
  0x32   : > { %p1577_p6 = pnand %p1771_p1, %p1770_p0  ;;  %s1586_s16 = scalar_lea.hbm %s1761_s1, %s1095_s7 }
  0x33   : > { %s155_s18 = scalar_lea.vmem [#allocation5], %s1075_s3  ;;  %s152_s30 = scalar_lea.sflag [#allocation6], %s1528_s25 }
  0x34   : > { %s164_s19 = sshll.u32 %s155_s18, 4  ;;  %s1325_s4 = scalar_lea.hbm %s1586_s16, 4096  ;;  %s1588_s19 = int_to_ptr.vmem [resolvable:$true] %s164_s19 }
  0x35   : > { %p1326_p9 = scmp.ne.s32.totalorder %s1586_s16, %s1325_s4  ;;  %s1330_s26 = scalar_lea.hbm %s1761_s1, 16384 }
  0x36   : > { %p1331_p2 = scmp.lt.u32.totalorder %s1586_s16, %s1761_s1  ;;  %p1332_p5 = scmp.lt.u32.totalorder %s1330_s26, %s1325_s4 }
  0x37   : > { %p1328_p11 = pnand %p1326_p9, %p1297_p3  ;;  %p1334_p7 = scmp.lt.u32.totalorder %s1325_s4, %s1586_s16 }
  0x38   : > { %p1333_p4 = por %p1332_p5, %p1331_p2 }
  0x39   : > { %p1329_p12 = pneg %p1328_p11 }
  0x3a   : > { %p1335_p10 = por %p1334_p7, %p1333_p4 }
  0x3c   : > { %p1336_p0 = pnand %p1335_p10, %p1329_p12 }
  0x3e   : > { %1339 = shalt.err (!%p1336_p0)
}
  0x3f   : > { %s1340_s3 = scalar_lea.vmem %s1588_s19, 4096  ;;  %s1444_s7 = smov [#allocation5]  }
  0x40   : > { %p1341_p1 = scmp.ne.s32.totalorder %s1588_s19, %s1340_s3  ;;  %s1345_s8 = sshll.u32 %s1444_s7, 4  ;;  %s1346_s8 = int_to_ptr.vmem [resolvable:$false] %s1345_s8 }
  0x41   : > { %s1347_s15 = scalar_lea.vmem %s1346_s8, 8192  ;;  %p1348_p8 = scmp.lt.s32.totalorder %s1588_s19, %s1346_s8 }
  0x42   : > { %p1343_p9 = pnand %p1341_p1, %p1297_p3  ;;  %p1349_p2 = scmp.lt.s32.totalorder %s1347_s15, %s1340_s3 }
  0x44   : > { %p1344_p11 = pneg %p1343_p9  ;;  %p1350_p5 = por %p1349_p2, %p1348_p8 }
  0x46   : > { %p1351_p4 = pnand %p1350_p5, %p1344_p11 }
  0x48   : > { %1354 = shalt.err (!%p1351_p4)
}
  0x49   : > { %s1445_s18 = smov 1024   ;;  %s1446_s4 = smov 64  }
  0x4a   : > { %1205 = dma.hbm_to_vmem [thread:$0]  (!%p1541_p13), %s1586_s16, 4096, %s1588_s19, %s152_s30, %s1445_s18, %s1445_s18, %s1446_s4  }
  0x4b   : > { %176 = sbr.rel (%p1577_p6) target bundleno = 364 (0x16c), region = 28  ;;  %s1619_s6 = sand.u32 (!%p1577_p6), 1, %s1425_s10  }
  0x4c   : > { %s1079_s20 = sshll.u32 (!%p1577_p6), %s1619_s6, 1  ;;  %s179_s26 = scalar_lea.sflag (!%p1577_p6), [#allocation3], %s1619_s6 }
  0x4d   : > { %s1623_s27 = scalar_lea.vmem (!%p1577_p6), [#allocation2], %s1079_s20  ;;  %p1773_p8 = scmp.ne.s32.totalorder (!%p1577_p6), %s1766_s21, 0 }
  0x52   : > { %1408 = dma.done.wait (%p1773_p8), %s179_s26, 32  }
  0x53   : > { %1410 = vsyncadd (%p1773_p8), %s179_s26, 4294967264  ;;  %s1080_s25 = sshll.u32 %s1619_s6, 8  ;;  %s188_s5 = scalar_lea.sflag [#allocation6], %s1619_s6 }
  0x54   : > { %s1631_s29 = scalar_lea.vmem [#allocation5], %s1080_s25 }
  0x55   : > { %1412 = dma.done.wait (%p1773_p8), %s188_s5, 4096  }
  0x56   : > { %1414 = vsyncadd (%p1773_p8), %s188_s5, 4294963200  ;;  %v1447_v0 = vmov 0.0   ;;  %v219_v1 = vld [vmem:[%s1631_s29] sm:$0xff]  ;;  %v220_v3 = vld [vmem:[%s1631_s29 + $0x8] sm:$0xff]  ;;  %vm317_vm0 = vcmask 261120   ;;  %s1081_s21 = sshll.u32 %s1619_s6, 6 }
  0x57   : > { %385 = vmatprep.mubr.f32.mxu0 %v1447_v0  ;;  %456 = vmatprep.mubr.f32.mxu1 %v1447_v0  ;;  %v227_v2 = vld [vmem:[%s1631_s29 + $0x40] sm:$0xff]  ;;  %v228_v5 = vld [vmem:[%s1631_s29 + $0x48] sm:$0xff]  ;;  %v221_v15 = vld [vmem:[%s1631_s29 + $0x10] sm:$0xff]  ;;  %s1697_s16 = scalar_lea.vmem [#allocation7], %s1081_s21  ;;  %s1096_s19 = sshll.u32 %s1433_s12, 10 }
  0x58   : > { %v1161_v4 = vcombine.high %v219_v1, %v227_v2  ;;  %v1162_v6 = vcombine.low %v219_v1, %v227_v2  ;;  %v235_v7 = vld [vmem:[%s1631_s29 + $0x80] sm:$0xff]  ;;  %v1165_v9 = vcombine.high %v220_v3, %v228_v5  ;;  %v1166_v10 = vcombine.low %v220_v3, %v228_v5  ;;  %v236_v12 = vld [vmem:[%s1631_s29 + $0x88] sm:$0xff]  ;;  %v229_v16 = vld [vmem:[%s1631_s29 + $0x50] sm:$0xff]  ;;  %s962_s30 = sshll.u32 %s1697_s16, 4  ;;  %s1710_s7 = scalar_lea.hbm %s1762_s2, %s1096_s19  ;;  %s1712_s30 = int_to_ptr.vmem [resolvable:$true] %s962_s30 }
  0x59   : > { %v243_v8 = vld [vmem:[%s1631_s29 + $0xc0] sm:$0xff]  ;;  %v244_v13 = vld [vmem:[%s1631_s29 + $0xc8] sm:$0xff]  ;;  %v222_v17 = vld [vmem:[%s1631_s29 + $0x18] sm:$0xff]  ;;  %v1169_v22 = vcombine.high %v221_v15, %v229_v16  ;;  %v1170_v29 = vcombine.low %v221_v15, %v229_v16  ;;  %s946_s8 = scalar_lea.sflag [#allocation4], %s1619_s6  ;;  %s1355_s15 = scalar_lea.vmem %s1712_s30, 1024 }
  0x5a   : > { %v1163_v11 = vcombine.high %v235_v7, %v243_v8  ;;  %1098 = vmatprep.subr.bf16.mxu0 %v1161_v4  ;;  %v1167_v14 = vcombine.high %v236_v12, %v244_v13  ;;  %1106 = vmatprep.subr.bf16.mxu1 %v1165_v9  ;;  %v1164_v18 = vcombine.low %v235_v7, %v243_v8  ;;  %v315_v19 = vld [vmem:[%s1623_s27] sm:$0x3]  ;;  %v237_v24 = vld [vmem:[%s1631_s29 + $0x90] sm:$0xff]  ;;  %v223_v33 = vld [vmem:[%s1631_s29 + $0x20] sm:$0xff]  ;;  %p1356_p13 = scmp.ne.s32.totalorder %s1712_s30, %s1355_s15  ;;  %p1774_p3 = scmp.ne.s32.totalorder %s1767_s22, 0 }
  0x5b   : > { %1100 = vmatpush1.bf16.msra.mxu0 %v1162_v6  ;;  %v230_v20 = vld [vmem:[%s1631_s29 + $0x58] sm:$0xff]  ;;  %1108 = vmatpush1.bf16.msra.mxu1 %v1166_v10  ;;  %v1168_v21 = vcombine.low %v236_v12, %v244_v13  ;;  %v245_v25 = vld [vmem:[%s1631_s29 + $0xd0] sm:$0xff]  ;;  %v1654_v26 = vunpack.c.l.bf16 %v315_v19  ;;  %v231_v34 = vld [vmem:[%s1631_s29 + $0x60] sm:$0xff]  ;;  %s1448_s12 = smov [#allocation7]  }
  0x5c   : > { %1102 = vmatprep.subr.bf16.mxu0 %v1163_v11  ;;  %1110 = vmatprep.subr.bf16.mxu1 %v1167_v14  ;;  %v1173_v23 = vcombine.high %v222_v17, %v230_v20  ;;  %v238_v27 = vld [vmem:[%s1631_s29 + $0x98] sm:$0xff]  ;;  %v1174_v30 = vcombine.low %v222_v17, %v230_v20  ;;  %v1171_v31 = vcombine.high %v237_v24, %v245_v25  ;;  %v224_v35 = vld [vmem:[%s1631_s29 + $0x28] sm:$0xff]  ;;  %v239_v41 = vld [vmem:[%s1631_s29 + $0xa0] sm:$0xff]  ;;  %p1357_p6 = pnand %p1356_p13, %p1774_p3  ;;  %s1359_s18 = sshll.u32 %s1448_s12, 4  ;;  %s1360_s18 = int_to_ptr.vmem [resolvable:$false] %s1359_s18 }
  0x5d   : > { %v246_v28 = vld [vmem:[%s1631_s29 + $0xd8] sm:$0xff]  ;;  %v232_v36 = vld [vmem:[%s1631_s29 + $0x68] sm:$0xff]  ;;  %v1172_v37 = vcombine.low %v237_v24, %v245_v25  ;;  %v1177_v39 = vcombine.high %v223_v33, %v231_v34  ;;  %v247_v42 = vld [vmem:[%s1631_s29 + $0xe0] sm:$0xff]  ;;  %v1178_v45 = vcombine.low %v223_v33, %v231_v34  ;;  %s1361_s4 = scalar_lea.vmem %s1360_s18, 2048  ;;  %p1362_p7 = scmp.lt.s32.totalorder %s1712_s30, %s1360_s18 }
  0x5e   : > { %v1175_v32 = vcombine.high %v238_v27, %v246_v28  ;;  %v1176_v38 = vcombine.low %v238_v27, %v246_v28  ;;  %v1181_v40 = vcombine.high %v224_v35, %v232_v36  ;;  %v240_v43 = vld [vmem:[%s1631_s29 + $0xa8] sm:$0xff]  ;;  %v1182_v46 = vcombine.low %v224_v35, %v232_v36  ;;  %v225_v49 = vld [vmem:[%s1631_s29 + $0x30] sm:$0xff]  ;;  %v226_v51 = vld [vmem:[%s1631_s29 + $0x38] sm:$0xff]  ;;  %p1358_p12 = pneg %p1357_p6  ;;  %p1363_p10 = scmp.lt.s32.totalorder %s1361_s4, %s1355_s15 }
  0x5f   : > { %1104 = vmatpush1.bf16.msra.mxu0 %v1164_v18  ;;  %1112 = vmatpush1.bf16.msra.mxu1 %v1168_v21  ;;  %v248_v44 = vld [vmem:[%s1631_s29 + $0xe8] sm:$0xff]  ;;  %v1179_v47 = vcombine.high %v239_v41, %v247_v42  ;;  %v233_v50 = vld [vmem:[%s1631_s29 + $0x70] sm:$0xff]  ;;  %v234_v52 = vld [vmem:[%s1631_s29 + $0x78] sm:$0xff]  ;;  %v1180_v53 = vcombine.low %v239_v41, %v247_v42 }
  0x60   : > { %1114 = vmatprep.subr.bf16.mxu0 %v1169_v22  ;;  %1122 = vmatprep.subr.bf16.mxu1 %v1173_v23  ;;  %v1183_v48 = vcombine.high %v240_v43, %v248_v44  ;;  %v1184_v54 = vcombine.low %v240_v43, %v248_v44  ;;  %v1185_v55 = vcombine.high %v225_v49, %v233_v50  ;;  %v241_v57 = vld [vmem:[%s1631_s29 + $0xb0] sm:$0xff]  ;;  %v242_v59 = vld [vmem:[%s1631_s29 + $0xb8] sm:$0xff]  ;;  %p1364_p0 = por %p1363_p10, %p1362_p7 }
  0x61   : > { %v1189_v56 = vcombine.high %v226_v51, %v234_v52  ;;  %v249_v58 = vld [vmem:[%s1631_s29 + $0xf0] sm:$0xff]  ;;  %v250_v60 = vld [vmem:[%s1631_s29 + $0xf8] sm:$0xff]  ;;  %v1186_v61 = vcombine.low %v225_v49, %v233_v50  ;;  %v1190_v62 = vcombine.low %v226_v51, %v234_v52 }
  0x62   : > { %1082 = vmatmul.mubr.msk.f32.vlgmr.msra.gmra.mrb[0].mxu0 %vm317_vm0, %v1654_v26  ;;  %1083 = vmatmul.mubr.msk.f32.vlgmr.msra.gmra.mrb[0].mxu1 %vm317_vm0, %v1654_v26  ;;  %v1187_v63 = vcombine.high %v241_v57, %v249_v58  ;;  %v1191_v1 = vcombine.high %v242_v59, %v250_v60  ;;  %v1188_v2 = vcombine.low %v241_v57, %v249_v58  ;;  %p1365_p1 = pnand %p1364_p0, %p1358_p12 }
  0x63   : > { %1116 = vmatpush1.bf16.msra.mxu0 %v1170_v29  ;;  %1124 = vmatpush1.bf16.msra.mxu1 %v1174_v30  ;;  %v1192_v3 = vcombine.low %v242_v59, %v250_v60 }
  0x64   : > { %1118 = vmatprep.subr.bf16.mxu0 %v1171_v31  ;;  %1126 = vmatprep.subr.bf16.mxu1 %v1175_v32 }
  0x65   : > { %527 = vmatprep.mubr.f32.mxu0 %v1447_v0  ;;  %598 = vmatprep.mubr.f32.mxu1 %v1447_v0 }
  0x67   : > { %1120 = vmatpush1.bf16.msra.mxu0 %v1172_v37  ;;  %1128 = vmatpush1.bf16.msra.mxu1 %v1176_v38 }
  0x68   : > { %1130 = vmatprep.subr.bf16.mxu0 %v1177_v39  ;;  %1138 = vmatprep.subr.bf16.mxu1 %v1181_v40 }
  0x6a   : > { %1084 = vmatmul.mubr.msk.f32.vlgmr.msra.gmra.mrb[2].mxu0 %vm317_vm0, %v1654_v26  ;;  %1085 = vmatmul.mubr.msk.f32.vlgmr.msra.gmra.mrb[2].mxu1 %vm317_vm0, %v1654_v26 }
  0x6b   : > { %1132 = vmatpush1.bf16.msra.mxu0 %v1178_v45  ;;  %1140 = vmatpush1.bf16.msra.mxu1 %v1182_v46 }
  0x6c   : > { %1134 = vmatprep.subr.bf16.mxu0 %v1179_v47  ;;  %1142 = vmatprep.subr.bf16.mxu1 %v1183_v48 }
  0x6d   : > { %669 = vmatprep.mubr.f32.mxu0 %v1447_v0  ;;  %740 = vmatprep.mubr.f32.mxu1 %v1447_v0 }
  0x6f   : > { %1136 = vmatpush1.bf16.msra.mxu0 %v1180_v53  ;;  %1144 = vmatpush1.bf16.msra.mxu1 %v1184_v54 }
  0x70   : > { %1146 = vmatprep.subr.bf16.mxu0 %v1185_v55  ;;  %1154 = vmatprep.subr.bf16.mxu1 %v1189_v56 }
  0x72   : > { %1086 = vmatmul.mubr.msk.f32.vlgmr.msra.gmra.mrb[4].mxu0 %vm317_vm0, %v1654_v26  ;;  %1087 = vmatmul.mubr.msk.f32.vlgmr.msra.gmra.mrb[4].mxu1 %vm317_vm0, %v1654_v26 }
  0x73   : > { %1148 = vmatpush1.bf16.msra.mxu0 %v1186_v61  ;;  %1156 = vmatpush1.bf16.msra.mxu1 %v1190_v62 }
  0x74   : > { %1150 = vmatprep.subr.bf16.mxu0 %v1187_v63  ;;  %1158 = vmatprep.subr.bf16.mxu1 %v1191_v1 }
  0x75   : > { %811 = vmatprep.mubr.f32.mxu0 %v1447_v0  ;;  %882 = vmatprep.mubr.f32.mxu1 %v1447_v0 }
  0x77   : > { %1152 = vmatpush1.bf16.msra.mxu0 %v1188_v2  ;;  %1160 = vmatpush1.bf16.msra.mxu1 %v1192_v3 }
  0x7a   : > { %1088 = vmatmul.mubr.msk.f32.vlgmr.msra.gmra.mrb[6].mxu0 %vm317_vm0, %v1654_v26  ;;  %1089 = vmatmul.mubr.msk.f32.vlgmr.msra.gmra.mrb[6].mxu1 %vm317_vm0, %v1654_v26 }
 0x135   : > { %v387_v4 = vpop.f32.mrb[0].mxu0  ;;  %v458_v5 = vpop.f32.mrb[0].mxu1 }
 0x136   : > { %1263 = vtanh.f32 %v387_v4  ;;  %v389_v6 = vpop.f32.mrb[1].mxu0  ;;  %v460_v7 = vpop.f32.mrb[1].mxu1 }
 0x137   : > { %1265 = vtanh.f32 %v458_v5 }
 0x138   : > { %1267 = vtanh.f32 %v389_v6 }
 0x139   : > { %1269 = vtanh.f32 %v460_v7 }
 0x13d   : > { %v529_v8 = vpop.f32.mrb[2].mxu0  ;;  %v600_v0 = vpop.f32.mrb[2].mxu1 }
 0x13e   : > { %1271 = vtanh.f32 %v529_v8  ;;  %v531_v9 = vpop.f32.mrb[3].mxu0  ;;  %v602_v10 = vpop.f32.mrb[3].mxu1 }
 0x13f   : > { %1273 = vtanh.f32 %v600_v0 }
 0x140   : > { %v1264_v11 = vpop.eup %1263  ;;  %1275 = vtanh.f32 %v531_v9 }
 0x141   : > { %v1266_v12 = vpop.eup %1265  ;;  %1277 = vtanh.f32 %v602_v10 }
 0x142   : > { %v1268_v13 = vpop.eup %1267 }
 0x143   : > { %v1270_v14 = vpop.eup %1269  ;;  %v921_v15 = vcombine.low %v1264_v11, %v1268_v13 }
 0x144   : > { %v922_v16 = vcombine.low %v1266_v12, %v1270_v14 }
 0x145   : > { %937 = vst [vmem:[%s1697_s16] sm:$0x77] %v921_v15  ;;  %v671_v17 = vpop.f32.mrb[4].mxu0  ;;  %v742_v18 = vpop.f32.mrb[4].mxu1 }
 0x146   : > { %938 = vst [vmem:[%s1697_s16 + $0x8] sm:$0x77] %v922_v16  ;;  %1279 = vtanh.f32 %v671_v17  ;;  %v673_v19 = vpop.f32.mrb[5].mxu0  ;;  %v744_v20 = vpop.f32.mrb[5].mxu1 }
 0x147   : > { %1281 = vtanh.f32 %v742_v18 }
 0x148   : > { %v1272_v21 = vpop.eup %1271  ;;  %1283 = vtanh.f32 %v673_v19 }
 0x149   : > { %v1274_v22 = vpop.eup %1273  ;;  %1285 = vtanh.f32 %v744_v20 }
 0x14a   : > { %v1276_v23 = vpop.eup %1275 }
 0x14b   : > { %v1278_v24 = vpop.eup %1277  ;;  %v923_v25 = vcombine.low %v1272_v21, %v1276_v23 }
 0x14c   : > { %v924_v26 = vcombine.low %v1274_v22, %v1278_v24 }
 0x14d   : > { %939 = vst [vmem:[%s1697_s16 + $0x10] sm:$0x77] %v923_v25  ;;  %v813_v27 = vpop.f32.mrb[6].mxu0  ;;  %v884_v28 = vpop.f32.mrb[6].mxu1 }
 0x14e   : > { %940 = vst [vmem:[%s1697_s16 + $0x18] sm:$0x77] %v924_v26  ;;  %1287 = vtanh.f32 %v813_v27  ;;  %v815_v29 = vpop.f32.mrb[7].mxu0  ;;  %v886_v30 = vpop.f32.mrb[7].mxu1 }
 0x14f   : > { %1289 = vtanh.f32 %v884_v28 }
 0x150   : > { %v1280_v31 = vpop.eup %1279  ;;  %1291 = vtanh.f32 %v815_v29 }
 0x151   : > { %v1282_v32 = vpop.eup %1281  ;;  %1293 = vtanh.f32 %v886_v30 }
 0x152   : > { %v1284_v33 = vpop.eup %1283 }
 0x153   : > { %v1286_v34 = vpop.eup %1285  ;;  %v925_v35 = vcombine.low %v1280_v31, %v1284_v33 }
 0x154   : > { %v926_v36 = vcombine.low %v1282_v32, %v1286_v34 }
 0x155   : > { %941 = vst [vmem:[%s1697_s16 + $0x20] sm:$0x77] %v925_v35 }
 0x156   : > { %942 = vst [vmem:[%s1697_s16 + $0x28] sm:$0x77] %v926_v36 }
 0x158   : > { %v1288_v37 = vpop.eup %1287 }
 0x159   : > { %v1290_v38 = vpop.eup %1289 }
 0x15a   : > { %v1292_v39 = vpop.eup %1291 }
 0x15b   : > { %v1294_v40 = vpop.eup %1293  ;;  %v927_v41 = vcombine.low %v1288_v37, %v1292_v39 }
 0x15c   : > { %v928_v42 = vcombine.low %v1290_v38, %v1294_v40 }
 0x15d   : > { %943 = vst [vmem:[%s1697_s16 + $0x30] sm:$0x77] %v927_v41 }
 0x15e   : > { %944 = vst [vmem:[%s1697_s16 + $0x38] sm:$0x77] %v928_v42 }
 0x15f   : > { %1368 = shalt.err (!%p1365_p1)
}
 0x160   : > { %s1369_s6 = scalar_lea.hbm %s1710_s7, 1024  ;;  %s1373_s27 = scalar_lea.hbm %s1762_s2, 4096 }
 0x161   : > { %p1370_p9 = scmp.ne.s32.totalorder %s1710_s7, %s1369_s6  ;;  %p1374_p5 = scmp.lt.u32.totalorder %s1710_s7, %s1762_s2 }
 0x162   : > { %p1375_p4 = scmp.lt.u32.totalorder %s1373_s27, %s1369_s6  ;;  %p1377_p13 = scmp.lt.u32.totalorder %s1369_s6, %s1710_s7 }
 0x163   : > { %p1371_p11 = pnand %p1370_p9, %p1774_p3 }
 0x164   : > { %p1376_p8 = por %p1375_p4, %p1374_p5 }
 0x165   : > { %p1372_p2 = pneg %p1371_p11 }
 0x166   : > { %p1378_p6 = por %p1377_p13, %p1376_p8 }
 0x168   : > { %p1379_p12 = pnand %p1378_p6, %p1372_p2 }
 0x16a   : > { %1382 = shalt.err (!%p1379_p12)
}
 0x16b   : > { %1197 = dma.vmem_to_hbm [thread:$0]  (%p1774_p3), %s1712_s30, 1024, %s1710_s7, %s946_s8  }
 0x16c PF: > { %p1211_p7 = scmp.ge.s32.totalorder %s1441_s14, 2  ;;  %s974_s29 = sand.u32 1, %s1421_s9  }
 0x16d   : > { %p1775_p10 = scmp.ne.s32.totalorder %s1768_s24, 0  ;;  %s975_s21 = scalar_lea.sflag [#allocation4], %s974_s29 }
 0x16f   : > { %p1207_p0 = pnand %p1211_p7, %p1775_p10 }
 0x171   : > { %1416 = dma.done.wait (!%p1207_p0), %s975_s21, 1024  }
 0x172   : > { %1418 = vsyncadd (!%p1207_p0), %s975_s21, 4294966272  ;;  %s21_s14 = sadd.s32 1, %s1441_s14   ;;  %s1776_s9 = smov %s1425_s10 }
 0x173   : > { %p18_p1 = scmp.ge.s32.totalorder %s21_s14, 6   ;;  %s1777_s10 = smov %s1429_s11 }
 0x174   : > { %s1778_s11 = smov %s1520_s23  ;;  %s1779_s12 = smov %s1437_s13 }
 0x175   : > { %s1780_s13 = smov %s1782_s17  ;;  %20 = sbr.rel (!%p18_p1) target bundleno = 8 (0x8), region = 86 }
 0x17c   :  { %980 = vsyncpa [#allocation3], 1 }
 0x17d   :  { %982 = vsyncpa [#allocation3 + $0x1], 1 }
 0x17e   :  { %983 = vsyncpa [#allocation6], 1 }
 0x17f   :  { %985 = vsyncpa [#allocation6 + $0x1], 1 }
 0x180   :  { %986 = vsyncpa [#allocation4], 1 }
 0x181   :  { %988 = vsyncpa [#allocation4 + $0x1], 1 }

</bundles_post_ra>
